<compile_context>
chip_gen: v7x
topology: tpu7x:2x2x1
jax: 0.10.0
libtpu: 0.0.40
codegen_flags: <defaults>
</compile_context>

<pallas_src>
import functools

import numpy as np

import jax
import jax.numpy as jnp
from jax.experimental import pallas as pl
from jax.experimental.pallas import tpu as pltpu


# ---------------------------------------------------------------------------
# Config / helpers
# ---------------------------------------------------------------------------
_STAGES = [(64, 3, 1), (128, 8, 2), (256, 36, 2), (512, 3, 2)]   # resnet152


def _vmem_limit_bytes():
    # <= 40 MiB, and at most half of physical VMEM so v7x (64 MiB) keeps
    # headroom for double-buffered input blocks; fine on v5e/v6e (128 MiB).
    try:
        cap = int(pltpu.get_tpu_info().vmem_capacity_bytes)
        return int(min(40 * 1024 * 1024, max(cap // 2, 16 * 1024 * 1024)))
    except Exception:
        return 32 * 1024 * 1024


_VMEM_LIMIT = _vmem_limit_bytes()


def _round_up(x, m):
    return (x + m - 1) // m * m


def _m_tile(m):
    tm = min(256, _round_up(m, 8))
    return _round_up(m, tm), tm


def _pad_tile(dim, unit, candidates):
    """Pad `dim` to a lane/sublane friendly size and pick a tile dividing it."""
    if dim < unit:
        return dim, dim          # full-dim (un-tiled) block
    p = _round_up(dim, unit)
    for t in candidates:
        if p % t == 0:
            return p, t
    return p, unit


# ---------------------------------------------------------------------------
# Pallas kernels
# ---------------------------------------------------------------------------
def _mm_kernel(x_ref, w_ref, b_ref, o_ref, acc_ref, *, relu):
    """Tiled matmul: acc over K grid axis, fused bias (+ReLU) epilogue."""
    k = pl.program_id(2)

    @pl.when(k == 0)
    def _():
        acc_ref[...] = jnp.zeros_like(acc_ref)

    acc_ref[...] += jnp.dot(x_ref[...], w_ref[...],
                            preferred_element_type=jnp.float32)

    @pl.when(k == pl.num_programs(2) - 1)
    def _():
        y = acc_ref[...] + b_ref[...]
        if relu:
            y = jnp.maximum(y, 0.0)
        o_ref[...] = y.astype(o_ref.dtype)


def _mm_res_kernel(x_ref, w_ref, b_ref, r_ref, o_ref, acc_ref, *, relu):
    """Same as _mm_kernel but with the bottleneck residual add fused (fp32)."""
    k = pl.program_id(2)

    @pl.when(k == 0)
    def _():
        acc_ref[...] = jnp.zeros_like(acc_ref)

    acc_ref[...] += jnp.dot(x_ref[...], w_ref[...],
                            preferred_element_type=jnp.float32)

    @pl.when(k == pl.num_programs(2) - 1)
    def _():
        y = acc_ref[...] + b_ref[...] + r_ref[...].astype(jnp.float32)
        if relu:
            y = jnp.maximum(y, 0.0)
        o_ref[...] = y.astype(o_ref.dtype)


def _conv3x3_kernel(x_ref, w_ref, b_ref, o_ref, acc_ref, *, wp, win_rows, relu):
    """3x3 stride-1 conv: 9 in-kernel tap matmuls on a flattened padded NHWC
    activation (no k*k im2col in HBM).  Output rows follow the padded grid; the
    wrapper slices the valid (h < H, w < W) positions."""
    tm = o_ref.shape[0]
    row0 = pl.multiple_of(pl.program_id(0) * tm, 8)
    win = x_ref[pl.ds(row0, win_rows), :]          # one aligned window load
    acc_ref[...] = jnp.zeros_like(acc_ref)
    for t in range(9):                             # unrolled 3x3 taps
        d = (t // 3) * wp + (t % 3)
        acc_ref[...] += jnp.dot(win[d:d + tm, :], w_ref[t],
                                preferred_element_type=jnp.float32)
    y = acc_ref[...] + b_ref[...]
    if relu:
        y = jnp.maximum(y, 0.0)
    o_ref[...] = y.astype(o_ref.dtype)


def _maxpool9_kernel(x_ref, o_ref):
    """Max over 9 pre-gathered stride-2 taps -> stride-2 output written directly."""
    m = x_ref[0]
    for t in range(1, 9):
        m = jnp.maximum(m, x_ref[t])
    o_ref[...] = m


def _head_kernel(x_ref, w1_ref, b1_ref, w2_ref, b2_ref, o_ref):
    """Fused: global avg pool (fp32) -> relu -> dropout(0) -> fc1 -> relu ->
    dropout(0) -> fc2."""
    feat = jnp.mean(x_ref[...].astype(jnp.float32), axis=1)       # (B, C)
    feat = jnp.maximum(feat, 0.0)
    h = jnp.dot(feat.astype(jnp.bfloat16), w1_ref[...],
                preferred_element_type=jnp.float32) + b1_ref[...]
    h = jnp.maximum(h, 0.0)
    o = jnp.dot(h.astype(jnp.bfloat16), w2_ref[...],
                preferred_element_type=jnp.float32) + b2_ref[...]
    o_ref[...] = o


# ---------------------------------------------------------------------------
# Op wrappers (called from inside jitted block/stem/head functions)
# ---------------------------------------------------------------------------
def _gemm(x2, w2, b, residual=None, *, relu):
    """Tiled (M, N, K) matmul with fused bias / residual / ReLU epilogue.

    x2: (M, K) bf16, w2: (K, N) bf16, b: (1, N) f32, residual: (M, N) or None.
    Returns (M, N) bf16.
    """
    M, K = x2.shape
    N = w2.shape[1]
    Mp, tm = _m_tile(M)
    Np, tn = _pad_tile(N, 128, (256, 128))
    Kp, tk = _pad_tile(K, 128, (512, 256, 128))

    x2 = jnp.pad(x2.astype(jnp.bfloat16), ((0, Mp - M), (0, Kp - K)))
    w2 = jnp.pad(w2.astype(jnp.bfloat16), ((0, Kp - K), (0, Np - N)))
    b = jnp.pad(b.astype(jnp.float32), ((0, 0), (0, Np - N)))

    in_specs = [
        pl.BlockSpec((tm, tk), lambda mi, ni, ki: (mi, ki)),
        pl.BlockSpec((tk, tn), lambda mi, ni, ki: (ki, ni)),
        pl.BlockSpec((1, tn), lambda mi, ni, ki: (0, ni)),
    ]
    args = [x2, w2, b]
    if residual is None:
        kernel = functools.partial(_mm_kernel, relu=relu)
    else:
        r = jnp.pad(residual.astype(jnp.bfloat16), ((0, Mp - M), (0, Np - N)))
        in_specs.append(pl.BlockSpec((tm, tn), lambda mi, ni, ki: (mi, ni)))
        args.append(r)
        kernel = functools.partial(_mm_res_kernel, relu=relu)

    grid = (Mp // tm, Np // tn, Kp // tk)
    out = pl.pallas_call(
        kernel,
        out_shape=jax.ShapeDtypeStruct((Mp, Np), jnp.bfloat16),
        grid_spec=pltpu.PrefetchScalarGridSpec(
            num_scalar_prefetch=0,
            grid=grid,
            in_specs=in_specs,
            out_specs=pl.BlockSpec((tm, tn), lambda mi, ni, ki: (mi, ni)),
            scratch_shapes=[pltpu.VMEM((tm, tn), jnp.float32)],
        ),
        compiler_params=pltpu.CompilerParams(
            dimension_semantics=("parallel", "parallel", "arbitrary"),
            vmem_limit_bytes=_VMEM_LIMIT),
        cost_estimate=pl.CostEstimate(
            flops=2 * Mp * Np * Kp, transcendentals=0,
            bytes_accessed=2 * (Mp * Kp + Kp * Np + 2 * Mp * Np)),
    )(*args)
    return out[:M, :N]


def _conv1x1(x, w, b, *, stride, relu, residual=None):
    """1x1 conv (+ folded BN, optional fused residual/ReLU).  NHWC in/out."""
    if stride != 1:
        x = x[:, ::stride, ::stride, :]
    B, H, W, C = x.shape
    N = w.shape[1]
    res2 = None if residual is None else residual.reshape(B * H * W, N)
    y = _gemm(x.reshape(B * H * W, C), w, b, res2, relu=relu)
    return y.reshape(B, H, W, N)


def _conv_im2col(x, w2d, b, *, k, stride, relu):
    """General k x k conv via im2col + tiled matmul (used only for the 7x7 stem
    conv and the three stride-2 3x3 convs)."""
    B, H, W, C = x.shape
    N = w2d.shape[1]
    pad = (k - 1) // 2
    xp = jnp.pad(x, ((0, 0), (pad, pad), (pad, pad), (0, 0))) if pad else x
    Ho = (H + 2 * pad - k) // stride + 1
    Wo = (W + 2 * pad - k) // stride + 1
    parts = [xp[:, i:i + stride * (Ho - 1) + 1:stride,
                j:j + stride * (Wo - 1) + 1:stride, :]
             for i in range(k) for j in range(k)]
    cols = jnp.concatenate(parts, axis=-1).reshape(B * Ho * Wo, k * k * C)
    y = _gemm(cols, w2d, b, relu=relu)
    return y.reshape(B, Ho, Wo, N)


def _conv3x3_s1(x, w9, b, *, relu):
    """3x3 stride-1 pad-1 conv with in-kernel tap accumulation."""
    B, H, W, C = x.shape
    N = w9.shape[2]
    Hp, Wp = H + 2, W + 2
    xp = jnp.pad(x, ((0, 0), (1, 1), (1, 1), (0, 0)))
    R = B * Hp * Wp
    Rp, tm = _m_tile(R)
    win_rows = tm + 2 * Wp + 2
    rows_total = _round_up(Rp + 2 * Wp + 2, 8)
    x2 = jnp.pad(xp.reshape(R, C).astype(jnp.bfloat16),
                 ((0, rows_total - R), (0, 0)))
    Np, tn = _pad_tile(N, 128, (256, 128))
    w9 = jnp.pad(w9.astype(jnp.bfloat16), ((0, 0), (0, 0), (0, Np - N)))
    b = jnp.pad(b.astype(jnp.float32), ((0, 0), (0, Np - N)))

    grid = (Rp // tm, Np // tn)
    out = pl.pallas_call(
        functools.partial(_conv3x3_kernel, wp=Wp, win_rows=win_rows, relu=relu),
        out_shape=jax.ShapeDtypeStruct((Rp, Np), jnp.bfloat16),
        grid_spec=pltpu.PrefetchScalarGridSpec(
            num_scalar_prefetch=0,
            grid=grid,
            in_specs=[
                pl.BlockSpec((rows_total, C), lambda mi, ni: (0, 0)),
                pl.BlockSpec((9, C, tn), lambda mi, ni: (0, 0, ni)),
                pl.BlockSpec((1, tn), lambda mi, ni: (0, ni)),
            ],
            out_specs=pl.BlockSpec((tm, tn), lambda mi, ni: (mi, ni)),
            scratch_shapes=[pltpu.VMEM((tm, tn), jnp.float32)],
        ),
        compiler_params=pltpu.CompilerParams(
            dimension_semantics=("parallel", "parallel"),
            vmem_limit_bytes=_VMEM_LIMIT),
        cost_estimate=pl.CostEstimate(
            flops=2 * 9 * Rp * C * Np, transcendentals=0,
            bytes_accessed=2 * (rows_total * C + 9 * C * Np + Rp * Np)),
    )(x2, w9, b)
    # Output rows are laid out on the padded (B, Hp, Wp) grid; valid conv
    # outputs are at h < H, w < W.
    return out[:R, :N].reshape(B, Hp, Wp, N)[:, :H, :W, :]


def _maxpool_3x3_s2(x):
    """3x3 stride-2 pad-1 max pool; the kernel writes the stride-2 output."""
    B, H, W, C = x.shape
    Ho, Wo = H // 2, W // 2
    xp = jnp.pad(x, ((0, 0), (1, 1), (1, 1), (0, 0)), constant_values=-jnp.inf)
    taps = [xp[:, i:i + 2 * Ho:2, j:j + 2 * Wo:2, :].reshape(1, B * Ho * Wo, C)
            for i in range(3) for j in range(3)]
    t = jnp.concatenate(taps, axis=0)              # (9, B*Ho*Wo, C)
    y = pl.pallas_call(
        _maxpool9_kernel,
        out_shape=jax.ShapeDtypeStruct((B * Ho * Wo, C), x.dtype),
        compiler_params=pltpu.CompilerParams(vmem_limit_bytes=_VMEM_LIMIT),
    )(t)
    return y.reshape(B, Ho, Wo, C)


# ---------------------------------------------------------------------------
# Jitted network pieces (cached per shape signature)
# ---------------------------------------------------------------------------
@jax.jit
def _stem(x_nchw, w, b):
    x = jnp.transpose(x_nchw, (0, 2, 3, 1)).astype(jnp.bfloat16)   # NCHW -> NHWC
    x = _conv_im2col(x, w, b, k=7, stride=2, relu=True)            # conv1+bn1+relu
    return _maxpool_3x3_s2(x)                                      # maxpool 3x3 s2


@functools.partial(jax.jit, static_argnames=("stride",))
def _bottleneck(x, c1w, c1b, c2w, c2b, c3w, c3b, dsw, dsb, *, stride):
    out = _conv1x1(x, c1w, c1b, stride=1, relu=True)               # 1x1 + BN + ReLU
    if stride == 1:
        out = _conv3x3_s1(out, c2w, c2b, relu=True)                # 3x3 (in-kernel taps)
    else:
        out = _conv_im2col(out, c2w, c2b, k=3, stride=stride, relu=True)
    if dsw is None:
        identity = x
    else:
        identity = _conv1x1(x, dsw, dsb, stride=stride, relu=False)
    # 1x1 expansion + BN with residual add and final ReLU fused in the epilogue.
    return _conv1x1(out, c3w, c3b, stride=1, relu=True, residual=identity)


@jax.jit
def _head(x, w1, b1, w2, b2):
    B, H, W, C = x.shape
    return pl.pallas_call(
        _head_kernel,
        out_shape=jax.ShapeDtypeStruct((B, w2.shape[1]), jnp.float32),
        compiler_params=pltpu.CompilerParams(vmem_limit_bytes=_VMEM_LIMIT),
    )(x.reshape(B, H * W, C), w1, b1, w2, b2)


def resnet_forward(x_nchw, params):
    x = _stem(x_nchw, params["conv1"]["w"], params["conv1"]["b"])
    idx = 0
    for planes, n_blocks, stride in _STAGES:                       # layer1..layer4
        for bi in range(n_blocks):
            blk = params["blocks"][idx]
            idx += 1
            s = stride if bi == 0 else 1
            x = _bottleneck(x, blk["c1w"], blk["c1b"], blk["c2w"], blk["c2b"],
                            blk["c3w"], blk["c3b"],
                            blk.get("ds_w"), blk.get("ds_b"), stride=s)
    return _head(x, params["fc1_w"], params["fc1_b"],
                 params["fc2_w"], params["fc2_b"])


# ---------------------------------------------------------------------------
# Deterministic synthetic parameters (resnet152: blocks [3, 8, 36, 3], exp=4),
# eval-mode BatchNorm folded into the conv weights/biases.
# ---------------------------------------------------------------------------
def make_resnet152_params(seed=0, num_classes=2, fc1_out=512):
    rng = np.random.default_rng(seed)

    def conv_bn(cin, cout, k, fmt):
        fan_in = cin * k * k
        w = rng.normal(0.0, 0.1 / np.sqrt(fan_in),
                       size=(k, k, cin, cout)).astype(np.float32)
        gamma = (1.0 + 0.01 * rng.normal(size=cout)).astype(np.float32)
        beta = (0.01 * rng.normal(size=cout)).astype(np.float32)
        mean = (0.01 * rng.normal(size=cout)).astype(np.float32)
        var = (1.0 + 0.01 * np.abs(rng.normal(size=cout))).astype(np.float32)
        scale = gamma / np.sqrt(var + np.float32(1e-5))            # BN fold
        wf = w * scale[None, None, None, :]
        bias = (beta - mean * scale).reshape(1, cout).astype(np.float32)
        if fmt == "tap":                                           # (9, Cin, Cout)
            wj = jnp.asarray(wf.reshape(k * k, cin, cout), dtype=jnp.bfloat16)
        else:                                                      # (k*k*Cin, Cout)
            wj = jnp.asarray(wf.reshape(k * k * cin, cout), dtype=jnp.bfloat16)
        return {"w": wj, "b": jnp.asarray(bias)}

    params = {"conv1": conv_bn(3, 64, 7, "mm")}
    blocks = []
    inplanes = 64
    for planes, n_blocks, stride in _STAGES:
        for bi in range(n_blocks):
            s = stride if bi == 0 else 1
            c1 = conv_bn(inplanes, planes, 1, "mm")
            c2 = conv_bn(planes, planes, 3, "tap" if s == 1 else "mm")
            c3 = conv_bn(planes, planes * 4, 1, "mm")
            blk = {"c1w": c1["w"], "c1b": c1["b"],
                   "c2w": c2["w"], "c2b": c2["b"],
                   "c3w": c3["w"], "c3b": c3["b"]}
            if s != 1 or inplanes != planes * 4:
                ds = conv_bn(inplanes, planes * 4, 1, "mm")
                blk["ds_w"] = ds["w"]
                blk["ds_b"] = ds["b"]
            blocks.append(blk)
            inplanes = planes * 4
    params["blocks"] = blocks

    feat = inplanes                                                # 2048
    params["fc1_w"] = jnp.asarray(
        rng.normal(0.0, 1.0 / np.sqrt(feat),
                   size=(feat, fc1_out)).astype(np.float32), dtype=jnp.bfloat16)
    params["fc1_b"] = jnp.asarray(
        (0.01 * rng.normal(size=(1, fc1_out))).astype(np.float32))
    params["fc2_w"] = jnp.asarray(
        rng.normal(0.0, 1.0 / np.sqrt(fc1_out),
                   size=(fc1_out, num_classes)).astype(np.float32),
        dtype=jnp.bfloat16)
    params["fc2_b"] = jnp.asarray(
        (0.01 * rng.normal(size=(1, num_classes))).astype(np.float32))
    return params


if __name__ == "__main__":
    params = make_resnet152_params(seed=0, num_classes=2, fc1_out=512)
    x = jax.random.normal(jax.random.PRNGKey(0), (2, 3, 64, 64), dtype=jnp.float32)
    out = resnet_forward(x, params)
    out = jax.block_until_ready(out)
    assert out.shape == (2, 2), out.shape
    assert bool(jnp.all(jnp.isfinite(out)))
    print("KERNEL_OK")
</pallas_src>

<mosaic_0001>
module attributes {stable_mosaic.version = 11 : i64} {
  func.func @_mm_kernel(%arg0: i32, %arg1: i32, %arg2: i32, %arg3: memref<256x256xbf16, #tpu.memory_space<vmem>>, %arg4: memref<256x64xbf16, #tpu.memory_space<vmem>>, %arg5: memref<1x64xf32, #tpu.memory_space<vmem>>, %arg6: memref<256x64xbf16, #tpu.memory_space<vmem>>, %arg7: memref<256x64xf32, #tpu.memory_space<vmem>>) attributes {dimension_semantics = [#tpu.dimension_semantics<parallel>, #tpu.dimension_semantics<parallel>, #tpu.dimension_semantics<arbitrary>], iteration_bounds = array<i64: 8, 1, 1>, scalar_prefetch = 0 : i64, scratch_operands = 1 : i64, tpu.core_type = #tpu.core_type<tc>, window_params = [{transform_indices = @transform_0, window_bounds = array<i64: 256, 256>}, {transform_indices = @transform_1, window_bounds = array<i64: 256, 64>}, {transform_indices = @transform_2, window_bounds = array<i64: 1, 64>}, {transform_indices = @transform_3, window_bounds = array<i64: 256, 64>}]} {
    %c0_i32 = arith.constant 0 : i32
    %0 = arith.cmpi eq, %arg2, %c0_i32 : i32
    %1 = arith.extui %0 : i1 to i32
    %c0_i32_0 = arith.constant 0 : i32
    %2 = arith.cmpi ne, %1, %c0_i32_0 : i32
    scf.if %2 {
      %cst_10 = arith.constant 0.000000e+00 : f32
      %12 = vector.broadcast %cst_10 : f32 to vector<256x64xf32>
      %c0_11 = arith.constant 0 : index
      %c0_12 = arith.constant 0 : index
      %13 = vector.load %arg7[%c0_11, %c0_12] : memref<256x64xf32, #tpu.memory_space<vmem>>, vector<256x64xf32>
      tpu.vector_store %arg7[%c0_11, %c0_12], %12 {strides = array<i32>} : memref<256x64xf32, #tpu.memory_space<vmem>>, vector<256x64xf32>,
    } else {
    }
    %c0 = arith.constant 0 : index
    %c0_1 = arith.constant 0 : index
    %3 = vector.load %arg7[%c0, %c0_1] : memref<256x64xf32, #tpu.memory_space<vmem>>, vector<256x64xf32>
    %c0_2 = arith.constant 0 : index
    %c0_3 = arith.constant 0 : index
    %4 = vector.load %arg3[%c0_2, %c0_3] : memref<256x256xbf16, #tpu.memory_space<vmem>>, vector<256x256xbf16>
    %c0_4 = arith.constant 0 : index
    %c0_5 = arith.constant 0 : index
    %5 = vector.load %arg4[%c0_4, %c0_5] : memref<256x64xbf16, #tpu.memory_space<vmem>>, vector<256x64xbf16>
    %cst = arith.constant dense<0.000000e+00> : vector<256x64xf32>
    %6 = tpu.matmul %4, %5, %cst {dimension_numbers = #tpu.dot_dimension_numbers<[1], [0], [0], [1], [0, 0, 1, 1], [], []>} : vector<256x256xbf16>, vector<256x64xbf16>, vector<256x64xf32> -> vector<256x64xf32>
    %7 = arith.addf %3, %6 : vector<256x64xf32>
    %c0_6 = arith.constant 0 : index
    %c0_7 = arith.constant 0 : index
    %8 = vector.load %arg7[%c0_6, %c0_7] : memref<256x64xf32, #tpu.memory_space<vmem>>, vector<256x64xf32>
    tpu.vector_store %arg7[%c0_6, %c0_7], %7 {strides = array<i32>} : memref<256x64xf32, #tpu.memory_space<vmem>>, vector<256x64xf32>,
    %c0_i32_8 = arith.constant 0 : i32
    %9 = arith.cmpi eq, %arg2, %c0_i32_8 : i32
    %10 = arith.extui %9 : i1 to i32
    %c0_i32_9 = arith.constant 0 : i32
    %11 = arith.cmpi ne, %10, %c0_i32_9 : i32
    scf.if %11 {
      %c0_10 = arith.constant 0 : index
      %c0_11 = arith.constant 0 : index
      %12 = vector.load %arg7[%c0_10, %c0_11] : memref<256x64xf32, #tpu.memory_space<vmem>>, vector<256x64xf32>
      %c0_12 = arith.constant 0 : index
      %c0_13 = arith.constant 0 : index
      %13 = vector.load %arg5[%c0_12, %c0_13] : memref<1x64xf32, #tpu.memory_space<vmem>>, vector<1x64xf32>
      %14 = vector.broadcast %13 : vector<1x64xf32> to vector<256x64xf32>
      %15 = arith.addf %12, %14 : vector<256x64xf32>
      %cst_14 = arith.constant 0.000000e+00 : f32
      %16 = vector.broadcast %cst_14 : f32 to vector<256x64xf32>
      %17 = arith.maximumf %15, %16 : vector<256x64xf32>
      %18 = arith.truncf %17 : vector<256x64xf32> to vector<256x64xbf16>
      %c0_15 = arith.constant 0 : index
      %c0_16 = arith.constant 0 : index
      %19 = vector.load %arg6[%c0_15, %c0_16] : memref<256x64xbf16, #tpu.memory_space<vmem>>, vector<256x64xbf16>
      tpu.vector_store %arg6[%c0_15, %c0_16], %18 {strides = array<i32>} : memref<256x64xbf16, #tpu.memory_space<vmem>>, vector<256x64xbf16>,
    } else {
    }
    return
  }
  func.func @transform_0(%arg0: i32, %arg1: i32, %arg2: i32) -> (i32, i32) {
    %c0_i32 = arith.constant 0 : i32
    return %arg0, %arg2 : i32, i32
  }
  func.func @transform_1(%arg0: i32, %arg1: i32, %arg2: i32) -> (i32, i32) {
    %c0_i32 = arith.constant 0 : i32
    return %arg2, %arg1 : i32, i32
  }
  func.func @transform_2(%arg0: i32, %arg1: i32, %arg2: i32) -> (i32, i32) {
    %c0_i32 = arith.constant 0 : i32
    %c0_i32_0 = arith.constant 0 : i32
    return %c0_i32, %arg1 : i32, i32
  }
  func.func @transform_3(%arg0: i32, %arg1: i32, %arg2: i32) -> (i32, i32) {
    %c0_i32 = arith.constant 0 : i32
    return %arg0, %arg1 : i32, i32
  }
}

module attributes {stable_mosaic.version = 11 : i64} {
  func.func @_maxpool9_kernel(%arg0: memref<9x512x64xbf16, #tpu.memory_space<vmem>>, %arg1: memref<512x64xbf16, #tpu.memory_space<vmem>>) attributes {dimension_semantics = [], scalar_prefetch = 0 : i64, scratch_operands = 0 : i64, tpu.core_type = #tpu.core_type<tc>} {
    %c0 = arith.constant 0 : index
    %c0_0 = arith.constant 0 : index
    %c0_1 = arith.constant 0 : index
    %0 = vector.load %arg0[%c0, %c0_0, %c0_1] : memref<9x512x64xbf16, #tpu.memory_space<vmem>>, vector<1x512x64xbf16>
    %1 = vector.shape_cast %0 : vector<1x512x64xbf16> to vector<512x64xbf16>
    %c1 = arith.constant 1 : index
    %c0_2 = arith.constant 0 : index
    %c0_3 = arith.constant 0 : index
    %2 = vector.load %arg0[%c1, %c0_2, %c0_3] : memref<9x512x64xbf16, #tpu.memory_space<vmem>>, vector<1x512x64xbf16>
    %3 = vector.shape_cast %2 : vector<1x512x64xbf16> to vector<512x64xbf16>
    %4 = arith.maximumf %1, %3 : vector<512x64xbf16>
    %c2 = arith.constant 2 : index
    %c0_4 = arith.constant 0 : index
    %c0_5 = arith.constant 0 : index
    %5 = vector.load %arg0[%c2, %c0_4, %c0_5] : memref<9x512x64xbf16, #tpu.memory_space<vmem>>, vector<1x512x64xbf16>
    %6 = vector.shape_cast %5 : vector<1x512x64xbf16> to vector<512x64xbf16>
    %7 = arith.maximumf %4, %6 : vector<512x64xbf16>
    %c3 = arith.constant 3 : index
    %c0_6 = arith.constant 0 : index
    %c0_7 = arith.constant 0 : index
    %8 = vector.load %arg0[%c3, %c0_6, %c0_7] : memref<9x512x64xbf16, #tpu.memory_space<vmem>>, vector<1x512x64xbf16>
    %9 = vector.shape_cast %8 : vector<1x512x64xbf16> to vector<512x64xbf16>
    %10 = arith.maximumf %7, %9 : vector<512x64xbf16>
    %c4 = arith.constant 4 : index
    %c0_8 = arith.constant 0 : index
    %c0_9 = arith.constant 0 : index
    %11 = vector.load %arg0[%c4, %c0_8, %c0_9] : memref<9x512x64xbf16, #tpu.memory_space<vmem>>, vector<1x512x64xbf16>
    %12 = vector.shape_cast %11 : vector<1x512x64xbf16> to vector<512x64xbf16>
    %13 = arith.maximumf %10, %12 : vector<512x64xbf16>
    %c5 = arith.constant 5 : index
    %c0_10 = arith.constant 0 : index
    %c0_11 = arith.constant 0 : index
    %14 = vector.load %arg0[%c5, %c0_10, %c0_11] : memref<9x512x64xbf16, #tpu.memory_space<vmem>>, vector<1x512x64xbf16>
    %15 = vector.shape_cast %14 : vector<1x512x64xbf16> to vector<512x64xbf16>
    %16 = arith.maximumf %13, %15 : vector<512x64xbf16>
    %c6 = arith.constant 6 : index
    %c0_12 = arith.constant 0 : index
    %c0_13 = arith.constant 0 : index
    %17 = vector.load %arg0[%c6, %c0_12, %c0_13] : memref<9x512x64xbf16, #tpu.memory_space<vmem>>, vector<1x512x64xbf16>
    %18 = vector.shape_cast %17 : vector<1x512x64xbf16> to vector<512x64xbf16>
    %19 = arith.maximumf %16, %18 : vector<512x64xbf16>
    %c7 = arith.constant 7 : index
    %c0_14 = arith.constant 0 : index
    %c0_15 = arith.constant 0 : index
    %20 = vector.load %arg0[%c7, %c0_14, %c0_15] : memref<9x512x64xbf16, #tpu.memory_space<vmem>>, vector<1x512x64xbf16>
    %21 = vector.shape_cast %20 : vector<1x512x64xbf16> to vector<512x64xbf16>
    %22 = arith.maximumf %19, %21 : vector<512x64xbf16>
    %c8 = arith.constant 8 : index
    %c0_16 = arith.constant 0 : index
    %c0_17 = arith.constant 0 : index
    %23 = vector.load %arg0[%c8, %c0_16, %c0_17] : memref<9x512x64xbf16, #tpu.memory_space<vmem>>, vector<1x512x64xbf16>
    %24 = vector.shape_cast %23 : vector<1x512x64xbf16> to vector<512x64xbf16>
    %25 = arith.maximumf %22, %24 : vector<512x64xbf16>
    %c0_18 = arith.constant 0 : index
    %c0_19 = arith.constant 0 : index
    %26 = vector.load %arg1[%c0_18, %c0_19] : memref<512x64xbf16, #tpu.memory_space<vmem>>, vector<512x64xbf16>
    tpu.vector_store %arg1[%c0_18, %c0_19], %25 {strides = array<i32>} : memref<512x64xbf16, #tpu.memory_space<vmem>>, vector<512x64xbf16>,
    return
  }
}

</mosaic_0001>

<bundles_post_ra>
// kernel: _stem.2
= control target key start
LH: loop header
LB: loop body
LE: loop exit
PB: predicated region body
PF: predicated region fallthrough
CT: control target
= control target key end

     0   :  { %s1654_s12 = smov 0   ;;  %s1656_s13 = smov 0   ;;  %s1940_s0 = inlined_call_operand.vmem [shape: bf16[2048,256], index: 0, kind: input, shape index: {}]   ;;  %s1941_s1 = inlined_call_operand.vmem [shape: bf16[256,64], index: 1, kind: input, shape index: {}]   ;;  %s1942_s2 = inlined_call_operand.vmem [shape: f32[1,64], index: 2, kind: input, shape index: {}]   ;;  %s1943_s3 = inlined_call_operand.vmem [shape: bf16[2048,64], index: 3, kind: output, shape index: {}]  }
   0x1   :  { %s1658_s14 = smov 0  }
   0x2 LB: > { %s32_s15 = sadd.s32 1, %s1627_s13  ;;  %p1270_p0 = scmp.ge.s32.totalorder %s1631_s14, 1  ;;  %s1631_s14 = sphi %s1658_s14, %s13_s14   ;;  %s1627_s13 = sphi %s1656_s13, %s1945_s13   ;;  %s1623_s12 = sphi %s1654_s12, %s1944_s12  }
   0x3   : > { %p34_p1 = scmp.ge.s32.totalorder %s32_s15, 8  ;;  %p191_p2 = scmp.lt.s32.totalorder %s1631_s14, 9 }
   0x5   : > { %s1947_s15 = smov (%p34_p1, %s32_s15), 0  ;;  %p192_p3 = pnand %p1270_p0, %p191_p2 }
   0x6   : > { %v1545_v0 = vld [vmem:[%s1941_s1 + $0x40] sm:$0xff] (!%p192_p3)   ;;  %s1271_s18 = sshll.u32 (!%p192_p3), %s1623_s12, 5  ;;  %v1547_v2 = vld [vmem:[%s1941_s1 + $0x48] sm:$0xff] (!%p192_p3)   ;;  %v1549_v4 = vld [vmem:[%s1941_s1 + $0x50] sm:$0xff] (!%p192_p3)   ;;  %vm272_vm0 = vcmask (!%p192_p3), 523264   ;;  %v1633_v48 = vmov (!%p192_p3), 0.0  }
   0x7   : > { %195 = sbr.rel (%p192_p3) target bundleno = 332 (0x14c), region = 32  ;;  %v1546_v1 = vld [vmem:[%s1941_s1] sm:$0xff] (!%p192_p3)   ;;  %1392 = vmatprep.subr.bf16.mxu0 (!%p192_p3), %v1545_v0  ;;  %1504 = vmatprep.subr.bf16.mxu1 (!%p192_p3), %v1545_v0  ;;  %v1548_v3 = vld [vmem:[%s1941_s1 + $0x8] sm:$0xff] (!%p192_p3)   ;;  %p236_p4 = scmp.lt.s32.totalorder (!%p192_p3), %s1271_s18, 255  ;;  %v1550_v5 = vld [vmem:[%s1941_s1 + $0x10] sm:$0xff] (!%p192_p3)   ;;  %273 = vst.msk [vmem:[#allocation2] sm:$0xff] (!%p192_p3), %vm272_vm0, %v1633_v48 }
   0x8   : > { %1393 = vmatpush3.bf16.msra.mxu0 (!%p192_p3), %v1546_v1  ;;  %1512 = vmatpush3.bf16.msra.mxu1 (!%p192_p3), %v1546_v1  ;;  %v1551_v6 = vld [vmem:[%s1941_s1 + $0x58] sm:$0xff] (!%p192_p3)   ;;  %v1553_v8 = vld [vmem:[%s1941_s1 + $0x60] sm:$0xff] (!%p192_p3)   ;;  %v1555_v10 = vld [vmem:[%s1941_s1 + $0x68] sm:$0xff] (!%p192_p3)   ;;  %274 = vst.msk [vmem:[#allocation2 + $0x8] sm:$0xff] (!%p192_p3), %vm272_vm0, %v1633_v48  ;;  %vm1117_vm1 = vcmask (!%p192_p3), 519168  }
   0x9   : > { %1394 = vmatprep.subr.bf16.mxu0 (!%p192_p3), %v1547_v2  ;;  %1505 = vmatprep.subr.bf16.mxu1 (!%p192_p3), %v1547_v2  ;;  %v1552_v7 = vld [vmem:[%s1941_s1 + $0x18] sm:$0xff] (!%p192_p3)   ;;  %v1554_v9 = vld [vmem:[%s1941_s1 + $0x20] sm:$0xff] (!%p192_p3)   ;;  %v1556_v13 = vld [vmem:[%s1941_s1 + $0x28] sm:$0xff] (!%p192_p3)   ;;  %275 = vst.msk [vmem:[#allocation2 + $0x10] sm:$0xff] (!%p192_p3), %vm272_vm0, %v1633_v48 }
   0xa   : > { %v1557_v14 = vld [vmem:[%s1941_s1 + $0x70] sm:$0xff] (!%p192_p3)   ;;  %v1559_v16 = vld [vmem:[%s1941_s1 + $0x78] sm:$0xff] (!%p192_p3)   ;;  %276 = vst.msk [vmem:[#allocation2 + $0x18] sm:$0xff] (!%p192_p3), %vm272_vm0, %v1633_v48  ;;  %277 = vst.msk [vmem:[#allocation2 + $0x20] sm:$0xff] (!%p192_p3), %vm272_vm0, %v1633_v48 }
   0xb   : > { %v1558_v15 = vld [vmem:[%s1941_s1 + $0x30] sm:$0xff] (!%p192_p3)   ;;  %v1560_v17 = vld [vmem:[%s1941_s1 + $0x38] sm:$0xff] (!%p192_p3)   ;;  %278 = vst.msk [vmem:[#allocation2 + $0x28] sm:$0xff] (!%p192_p3), %vm272_vm0, %v1633_v48  ;;  %279 = vst.msk [vmem:[#allocation2 + $0x30] sm:$0xff] (!%p192_p3), %vm272_vm0, %v1633_v48 }
   0xc   : > { %1395 = vmatpush3.bf16.msra.mxu0 (!%p192_p3), %v1548_v3  ;;  %1513 = vmatpush3.bf16.msra.mxu1 (!%p192_p3), %v1548_v3  ;;  %280 = vst.msk [vmem:[#allocation2 + $0x38] sm:$0xff] (!%p192_p3), %vm272_vm0, %v1633_v48  ;;  %281 = vst.msk [vmem:[#allocation2 + $0x40] sm:$0xff] (!%p192_p3), %vm272_vm0, %v1633_v48 }
   0xd   : > { %1396 = vmatprep.subr.bf16.mxu0 (!%p192_p3), %v1549_v4  ;;  %1506 = vmatprep.subr.bf16.mxu1 (!%p192_p3), %v1549_v4  ;;  %282 = vst.msk [vmem:[#allocation2 + $0x48] sm:$0xff] (!%p192_p3), %vm272_vm0, %v1633_v48  ;;  %283 = vst.msk [vmem:[#allocation2 + $0x50] sm:$0xff] (!%p192_p3), %vm272_vm0, %v1633_v48 }
   0xe   : > { %s1949_s18 = smov (!%p236_p4, %s1271_s18), 255  ;;  %284 = vst.msk [vmem:[#allocation2 + $0x58] sm:$0xff] %vm272_vm0, %v1633_v48  ;;  %285 = vst.msk [vmem:[#allocation2 + $0x60] sm:$0xff] %vm272_vm0, %v1633_v48  ;;  %v305_v51 = vld [vmem:[#allocation2] sm:$0xff] }
   0xf   : > { %s1359_s6 = sshll.u32 %s1949_s18, 3  ;;  %286 = vst.msk [vmem:[#allocation2 + $0x68] sm:$0xff] %vm272_vm0, %v1633_v48  ;;  %287 = vst.msk [vmem:[#allocation2 + $0x70] sm:$0xff] %vm272_vm0, %v1633_v48  ;;  %v306_v59 = vld [vmem:[#allocation2 + $0x8] sm:$0xff]  ;;  %s1275_s5 = sshll.u32 %s1949_s18, 2 }
  0x10   : > { %1397 = vmatpush3.bf16.msra.mxu0 %v1550_v5  ;;  %1514 = vmatpush3.bf16.msra.mxu1 %v1550_v5  ;;  %s1705_s11 = scalar_lea.vmem %s1940_s0, %s1359_s6  ;;  %288 = vst.msk [vmem:[#allocation2 + $0x78] sm:$0xff] %vm272_vm0, %v1633_v48  ;;  %289 = vst.msk [vmem:[#allocation2 + $0x80] sm:$0xff] %vm272_vm0, %v1633_v48  ;;  %s1813_s7 = scalar_lea.vmem %s1943_s3, %s1275_s5 }
  0x11   : > { %1398 = vmatprep.subr.bf16.mxu0 %v1551_v6  ;;  %1507 = vmatprep.subr.bf16.mxu1 %v1551_v6  ;;  %v1563_v11 = vld [vmem:[%s1705_s11 + $0x4] ss:$8 sps:$4 sm:$0xff]   ;;  %v1561_v18 = vld [vmem:[%s1705_s11] ss:$8 sps:$4 sm:$0xff]   ;;  %v1567_v20 = vld [vmem:[%s1705_s11 + $0x14] ss:$8 sps:$4 sm:$0xff]  }
  0x12   : > { %v1566_v12 = vld [vmem:[%s1705_s11 + $0x84] ss:$8 sps:$4 sm:$0xff]   ;;  %689 = vmatprep.mubr.bf16.mxu0 %v1563_v11  ;;  %v1564_v19 = vld [vmem:[%s1705_s11 + $0x80] ss:$8 sps:$4 sm:$0xff]   ;;  %v1569_v21 = vld [vmem:[%s1705_s11 + $0x94] ss:$8 sps:$4 sm:$0xff]  }
  0x13   : > { %753 = vmatprep.mubr.bf16.mxu1 %v1566_v12  ;;  %v1571_v22 = vld [vmem:[%s1705_s11 + $0x10] ss:$8 sps:$4 sm:$0xff]   ;;  %v1573_v24 = vld [vmem:[%s1705_s11 + $0x24] ss:$8 sps:$4 sm:$0xff]   ;;  %v1577_v26 = vld [vmem:[%s1705_s11 + $0x20] ss:$8 sps:$4 sm:$0xff]  }
  0x14   : > { %1399 = vmatpush3.bf16.msra.mxu0 %v1552_v7  ;;  %1515 = vmatpush3.bf16.msra.mxu1 %v1552_v7  ;;  %v1572_v23 = vld [vmem:[%s1705_s11 + $0x90] ss:$8 sps:$4 sm:$0xff]   ;;  %v1575_v25 = vld [vmem:[%s1705_s11 + $0xa4] ss:$8 sps:$4 sm:$0xff]   ;;  %v1578_v27 = vld [vmem:[%s1705_s11 + $0xa0] ss:$8 sps:$4 sm:$0xff]  }
  0x15   : > { %1400 = vmatprep.subr.bf16.mxu0 %v1553_v8  ;;  %1508 = vmatprep.subr.bf16.mxu1 %v1553_v8  ;;  %v1579_v28 = vld [vmem:[%s1705_s11 + $0x34] ss:$8 sps:$4 sm:$0xff]   ;;  %v1583_v30 = vld [vmem:[%s1705_s11 + $0x30] ss:$8 sps:$4 sm:$0xff]   ;;  %v1585_v32 = vld [vmem:[%s1705_s11 + $0x44] ss:$8 sps:$4 sm:$0xff]  }
  0x16   : > { %v1581_v29 = vld [vmem:[%s1705_s11 + $0xb4] ss:$8 sps:$4 sm:$0xff]   ;;  %v1584_v31 = vld [vmem:[%s1705_s11 + $0xb0] ss:$8 sps:$4 sm:$0xff]   ;;  %v1587_v33 = vld [vmem:[%s1705_s11 + $0xc4] ss:$8 sps:$4 sm:$0xff]  }
  0x17   : > { %v1589_v34 = vld [vmem:[%s1705_s11 + $0x40] ss:$8 sps:$4 sm:$0xff]   ;;  %v1591_v36 = vld [vmem:[%s1705_s11 + $0x54] ss:$8 sps:$4 sm:$0xff]   ;;  %v1595_v38 = vld [vmem:[%s1705_s11 + $0x50] ss:$8 sps:$4 sm:$0xff]  }
  0x18   : > { %1401 = vmatpush3.bf16.msra.mxu0 %v1554_v9  ;;  %1516 = vmatpush3.bf16.msra.mxu1 %v1554_v9  ;;  %v1590_v35 = vld [vmem:[%s1705_s11 + $0xc0] ss:$8 sps:$4 sm:$0xff]   ;;  %v1593_v37 = vld [vmem:[%s1705_s11 + $0xd4] ss:$8 sps:$4 sm:$0xff]   ;;  %v1596_v39 = vld [vmem:[%s1705_s11 + $0xd0] ss:$8 sps:$4 sm:$0xff]  }
  0x19   : > { %1402 = vmatprep.subr.bf16.mxu0 %v1555_v10  ;;  %1509 = vmatprep.subr.bf16.mxu1 %v1555_v10  ;;  %v1597_v40 = vld [vmem:[%s1705_s11 + $0x64] ss:$8 sps:$4 sm:$0xff]   ;;  %v1601_v42 = vld [vmem:[%s1705_s11 + $0x60] ss:$8 sps:$4 sm:$0xff]   ;;  %v1603_v44 = vld [vmem:[%s1705_s11 + $0x74] ss:$8 sps:$4 sm:$0xff]  }
  0x1a   : > { %v1599_v41 = vld [vmem:[%s1705_s11 + $0xe4] ss:$8 sps:$4 sm:$0xff]   ;;  %v1602_v43 = vld [vmem:[%s1705_s11 + $0xe0] ss:$8 sps:$4 sm:$0xff]   ;;  %v1605_v45 = vld [vmem:[%s1705_s11 + $0xf4] ss:$8 sps:$4 sm:$0xff]  }
  0x1b   : > { %v1607_v46 = vld [vmem:[%s1705_s11 + $0x70] ss:$8 sps:$4 sm:$0xff]   ;;  %290 = vst.msk [vmem:[#allocation2 + $0x88] sm:$0xff] %vm272_vm0, %v1633_v48  ;;  %291 = vst.msk [vmem:[#allocation2 + $0x90] sm:$0xff] %vm272_vm0, %v1633_v48  ;;  %v321_v53 = vld [vmem:[#allocation2 + $0x80] sm:$0xff] }
  0x1c   : > { %1403 = vmatpush3.bf16.msra.mxu0 %v1556_v13  ;;  %1517 = vmatpush3.bf16.msra.mxu1 %v1556_v13  ;;  %v1608_v47 = vld [vmem:[%s1705_s11 + $0xf0] ss:$8 sps:$4 sm:$0xff]   ;;  %292 = vst.msk [vmem:[#allocation2 + $0x98] sm:$0xff] %vm272_vm0, %v1633_v48  ;;  %293 = vst.msk [vmem:[#allocation2 + $0xa0] sm:$0xff] %vm272_vm0, %v1633_v48 }
  0x1d   : > { %1404 = vmatprep.subr.bf16.mxu0 %v1557_v14  ;;  %1510 = vmatprep.subr.bf16.mxu1 %v1557_v14  ;;  %294 = vst.msk [vmem:[#allocation2 + $0xa8] sm:$0xff] %vm272_vm0, %v1633_v48  ;;  %295 = vst.msk [vmem:[#allocation2 + $0xb0] sm:$0xff] %vm272_vm0, %v1633_v48  ;;  %v307_v7 = vld [vmem:[#allocation2 + $0x10] sm:$0xff] }
  0x1e   : > { %296 = vst.msk [vmem:[#allocation2 + $0xb8] sm:$0xff] %vm272_vm0, %v1633_v48  ;;  %297 = vst.msk [vmem:[#allocation2 + $0xc0] sm:$0xff] %vm272_vm0, %v1633_v48 }
  0x1f   : > { %298 = vst.msk [vmem:[#allocation2 + $0xc8] sm:$0xff] %vm272_vm0, %v1633_v48  ;;  %299 = vst.msk [vmem:[#allocation2 + $0xd0] sm:$0xff] %vm272_vm0, %v1633_v48 }
  0x20   : > { %1405 = vmatpush3.bf16.msra.mxu0 %v1558_v15  ;;  %1518 = vmatpush3.bf16.msra.mxu1 %v1558_v15  ;;  %300 = vst.msk [vmem:[#allocation2 + $0xd8] sm:$0xff] %vm272_vm0, %v1633_v48  ;;  %301 = vst.msk [vmem:[#allocation2 + $0xe0] sm:$0xff] %vm272_vm0, %v1633_v48  ;;  %v1799_v15 = vld [vmem:[%s1942_s2] ss:$0 sm:$0xff] }
  0x21   : > { %1406 = vmatprep.subr.bf16.mxu0 %v1559_v16  ;;  %1511 = vmatprep.subr.bf16.mxu1 %v1559_v16  ;;  %302 = vst.msk [vmem:[#allocation2 + $0xe8] sm:$0xff] %vm272_vm0, %v1633_v48  ;;  %303 = vst.msk [vmem:[#allocation2 + $0xf0] sm:$0xff] %vm272_vm0, %v1633_v48  ;;  %v308_v16 = vld [vmem:[#allocation2 + $0x18] sm:$0xff] }
  0x22   : > { %304 = vst.msk [vmem:[#allocation2 + $0xf8] sm:$0xff] %vm272_vm0, %v1633_v48  ;;  %v322_v61 = vld [vmem:[#allocation2 + $0x88] sm:$0xff]  ;;  %v323_v9 = vld [vmem:[#allocation2 + $0x90] sm:$0xff] }
  0x24   : > { %1407 = vmatpush3.bf16.msra.mxu0 %v1560_v17  ;;  %1519 = vmatpush3.bf16.msra.mxu1 %v1560_v17 }
  0x27   : > { %690 = vmatmul.mubr.bf16.vlgmr.msra.gmra.mrb[0].mxu0 %v1561_v18  ;;  %754 = vmatmul.mubr.bf16.vlgmr.msra.gmra.mrb[0].mxu1 %v1564_v19  ;;  %v324_v18 = vld [vmem:[#allocation2 + $0x98] sm:$0xff] }
  0x28   : > { %697 = vmatprep.mubr.bf16.mxu0 %v1567_v20  ;;  %761 = vmatprep.mubr.bf16.mxu1 %v1569_v21 }
  0x2f   : > { %698 = vmatmul.mubr.bf16.gmra.mrb[4].mxu0 %v1571_v22  ;;  %762 = vmatmul.mubr.bf16.gmra.mrb[4].mxu1 %v1572_v23 }
  0x30   : > { %705 = vmatprep.mubr.bf16.mxu0 %v1573_v24  ;;  %769 = vmatprep.mubr.bf16.mxu1 %v1575_v25 }
  0x37   : > { %706 = vmatmul.mubr.bf16.gmra.mrb[8].mxu0 %v1577_v26  ;;  %770 = vmatmul.mubr.bf16.gmra.mrb[8].mxu1 %v1578_v27 }
  0x38   : > { %713 = vmatprep.mubr.bf16.mxu0 %v1579_v28  ;;  %777 = vmatprep.mubr.bf16.mxu1 %v1581_v29 }
  0x3f   : > { %714 = vmatmul.mubr.bf16.gmra.mrb[12].mxu0 %v1583_v30  ;;  %778 = vmatmul.mubr.bf16.gmra.mrb[12].mxu1 %v1584_v31 }
  0x40   : > { %721 = vmatprep.mubr.bf16.mxu0 %v1585_v32  ;;  %785 = vmatprep.mubr.bf16.mxu1 %v1587_v33 }
  0x47   : > { %722 = vmatmul.mubr.bf16.gmra.mrb[16].mxu0 %v1589_v34  ;;  %786 = vmatmul.mubr.bf16.gmra.mrb[16].mxu1 %v1590_v35 }
  0x48   : > { %729 = vmatprep.mubr.bf16.mxu0 %v1591_v36  ;;  %793 = vmatprep.mubr.bf16.mxu1 %v1593_v37 }
  0x4f   : > { %730 = vmatmul.mubr.bf16.gmra.mrb[20].mxu0 %v1595_v38  ;;  %794 = vmatmul.mubr.bf16.gmra.mrb[20].mxu1 %v1596_v39 }
  0x50   : > { %737 = vmatprep.mubr.bf16.mxu0 %v1597_v40  ;;  %801 = vmatprep.mubr.bf16.mxu1 %v1599_v41 }
  0x57   : > { %738 = vmatmul.mubr.bf16.gmra.mrb[24].mxu0 %v1601_v42  ;;  %802 = vmatmul.mubr.bf16.gmra.mrb[24].mxu1 %v1602_v43 }
  0x58   : > { %745 = vmatprep.mubr.bf16.mxu0 %v1603_v44  ;;  %809 = vmatprep.mubr.bf16.mxu1 %v1605_v45  ;;  %v309_v44 = vld [vmem:[#allocation2 + $0x20] sm:$0xff] }
  0x59   : > { %v325_v45 = vld [vmem:[#allocation2 + $0xa0] sm:$0xff] }
  0x5f   : > { %746 = vmatmul.mubr.bf16.gmra.mrb[28].mxu0 %v1607_v46  ;;  %810 = vmatmul.mubr.bf16.gmra.mrb[28].mxu1 %v1608_v47 }
  0xfa   : > { %v1408_v49 = vpop.f32.mrb[0].mxu0  ;;  %v1456_v50 = vpop.f32.mrb[0].mxu1 }
  0xfb   : > { %v1409_v52 = vpop.f32.mrb[1].mxu0  ;;  %v1457_v54 = vpop.f32.mrb[1].mxu1 }
  0xfc   : > { %v1410_v55 = vadd.f32 %v1409_v52, %v1408_v49  ;;  %v1458_v56 = vadd.f32 %v1457_v54, %v1456_v50  ;;  %v1411_v57 = vpop.f32.mrb[2].mxu0  ;;  %v1459_v58 = vpop.f32.mrb[2].mxu1  ;;  %v310_v50 = vld [vmem:[#allocation2 + $0x28] sm:$0xff] }
  0xfd   : > { %v1412_v60 = vpop.f32.mrb[3].mxu0  ;;  %v1460_v62 = vpop.f32.mrb[3].mxu1  ;;  %v326_v52 = vld [vmem:[#allocation2 + $0xa8] sm:$0xff] }
  0xfe   : > { %v818_v63 = vadd.f32 %v1410_v55, %v305_v51  ;;  %v834_v0 = vadd.f32 %v1458_v56, %v321_v53  ;;  %v1413_v1 = vadd.f32 %v1412_v60, %v1411_v57  ;;  %v1461_v2 = vadd.f32 %v1460_v62, %v1459_v58 }
 0x100   : > { %851 = vst.msk [vmem:[#allocation2] sm:$0xff] %vm272_vm0, %v818_v63  ;;  %867 = vst.msk [vmem:[#allocation2 + $0x80] sm:$0xff] %vm272_vm0, %v834_v0  ;;  %v819_v3 = vadd.f32 %v1413_v1, %v306_v59  ;;  %v835_v4 = vadd.f32 %v1461_v2, %v322_v61 }
 0x102   : > { %852 = vst.msk [vmem:[#allocation2 + $0x8] sm:$0xff] %vm272_vm0, %v819_v3  ;;  %868 = vst.msk [vmem:[#allocation2 + $0x88] sm:$0xff] %vm272_vm0, %v835_v4  ;;  %v1414_v5 = vpop.f32.mrb[4].mxu0  ;;  %v1462_v6 = vpop.f32.mrb[4].mxu1 }
 0x103   : > { %v1415_v8 = vpop.f32.mrb[5].mxu0  ;;  %v1463_v10 = vpop.f32.mrb[5].mxu1 }
 0x104   : > { %v1416_v11 = vadd.f32 %v1415_v8, %v1414_v5  ;;  %v1464_v12 = vadd.f32 %v1463_v10, %v1462_v6  ;;  %v1417_v13 = vpop.f32.mrb[6].mxu0  ;;  %v1465_v14 = vpop.f32.mrb[6].mxu1 }
 0x105   : > { %v1418_v17 = vpop.f32.mrb[7].mxu0  ;;  %v1466_v19 = vpop.f32.mrb[7].mxu1 }
 0x106   : > { %v820_v20 = vadd.f32 %v1416_v11, %v307_v7  ;;  %v836_v21 = vadd.f32 %v1464_v12, %v323_v9  ;;  %v1419_v22 = vadd.f32 %v1418_v17, %v1417_v13  ;;  %v1467_v23 = vadd.f32 %v1466_v19, %v1465_v14  ;;  %v311_v17 = vld [vmem:[#allocation2 + $0x30] sm:$0xff] }
 0x107   : > { %v886_v24 = vld [vmem:[#allocation2] sm:$0xff] }
 0x108   : > { %v902_v25 = vld [vmem:[#allocation2 + $0x80] sm:$0xff]  ;;  %v925_v26 = vadd.f32 %v1799_v15, %v886_v24  ;;  %853 = vst.msk [vmem:[#allocation2 + $0x10] sm:$0xff] %vm272_vm0, %v820_v20  ;;  %869 = vst.msk [vmem:[#allocation2 + $0x90] sm:$0xff] %vm272_vm0, %v836_v21  ;;  %v821_v28 = vadd.f32 %v1419_v22, %v308_v16  ;;  %v837_v29 = vadd.f32 %v1467_v23, %v324_v18  ;;  %v327_v18 = vld [vmem:[#allocation2 + $0xb0] sm:$0xff] }
 0x109   : > { %v941_v27 = vadd.f32 %v1799_v15, %v902_v25  ;;  %v887_v30 = vld [vmem:[#allocation2 + $0x8] sm:$0xff]  ;;  %v312_v23 = vld [vmem:[#allocation2 + $0x38] sm:$0xff] }
 0x10a   : > { %v903_v31 = vld [vmem:[#allocation2 + $0x88] sm:$0xff]  ;;  %v957_v32 = vmax.f32 %v925_v26, 0.0  ;;  %v926_v34 = vadd.f32 %v1799_v15, %v887_v30  ;;  %854 = vst.msk [vmem:[#allocation2 + $0x18] sm:$0xff] %vm272_vm0, %v821_v28  ;;  %870 = vst.msk [vmem:[#allocation2 + $0x98] sm:$0xff] %vm272_vm0, %v837_v29  ;;  %v1420_v36 = vpop.f32.mrb[8].mxu0  ;;  %v1468_v37 = vpop.f32.mrb[8].mxu1 }
 0x10b   : > { %v973_v33 = vmax.f32 %v941_v27, 0.0  ;;  %v942_v35 = vadd.f32 %v1799_v15, %v903_v31  ;;  %v1421_v38 = vpop.f32.mrb[9].mxu0  ;;  %v1469_v39 = vpop.f32.mrb[9].mxu1  ;;  %v328_v25 = vld [vmem:[#allocation2 + $0xb8] sm:$0xff] }
 0x10c   : > { %v1360_v40 = vpack.c.bf16 %v957_v32, %v957_v32  ;;  %v958_v42 = vmax.f32 %v926_v34, 0.0  ;;  %v1423_v46 = vpop.f32.mrb[10].mxu0  ;;  %v1471_v47 = vpop.f32.mrb[10].mxu1  ;;  %v1422_v48 = vadd.f32 %v1421_v38, %v1420_v36  ;;  %v1470_v49 = vadd.f32 %v1469_v39, %v1468_v37 }
 0x10d   : > { %v1376_v41 = vpack.c.bf16 %v973_v33, %v973_v33  ;;  %v974_v43 = vmax.f32 %v942_v35, 0.0  ;;  %v1424_v51 = vpop.f32.mrb[11].mxu0  ;;  %v1472_v53 = vpop.f32.mrb[11].mxu1 }
 0x10e   : > { %1118 = vst.msk [vmem:[%s1813_s7] sm:$0xf] %vm1117_vm1, %v1360_v40  ;;  %v1361_v54 = vpack.c.bf16 %v958_v42, %v958_v42  ;;  %v1425_v56 = vadd.f32 %v1424_v51, %v1423_v46  ;;  %v1473_v57 = vadd.f32 %v1472_v53, %v1471_v47  ;;  %v822_v60 = vadd.f32 %v1422_v48, %v309_v44  ;;  %v313_v47 = vld [vmem:[#allocation2 + $0x40] sm:$0xff] }
 0x10f   : > { %1134 = vst.msk [vmem:[%s1813_s7 + $0x40] sm:$0xf] %vm1117_vm1, %v1376_v41  ;;  %v1377_v55 = vpack.c.bf16 %v974_v43, %v974_v43  ;;  %v888_v58 = vld [vmem:[#allocation2 + $0x10] sm:$0xff]  ;;  %v838_v61 = vadd.f32 %v1470_v49, %v325_v45  ;;  %v329_v49 = vld [vmem:[#allocation2 + $0xc0] sm:$0xff] }
 0x110   : > { %v904_v59 = vld [vmem:[#allocation2 + $0x90] sm:$0xff]  ;;  %1119 = vst.msk [vmem:[%s1813_s7 + $0x4] sm:$0xf] %vm1117_vm1, %v1361_v54  ;;  %v927_v62 = vadd.f32 %v1799_v15, %v888_v58  ;;  %v823_v0 = vadd.f32 %v1425_v56, %v310_v50  ;;  %v839_v1 = vadd.f32 %v1473_v57, %v326_v52 }
 0x111   : > { %1135 = vst.msk [vmem:[%s1813_s7 + $0x44] sm:$0xf] %vm1117_vm1, %v1377_v55  ;;  %v943_v63 = vadd.f32 %v1799_v15, %v904_v59  ;;  %v889_v2 = vld [vmem:[#allocation2 + $0x18] sm:$0xff] }
 0x112   : > { %v905_v3 = vld [vmem:[#allocation2 + $0x98] sm:$0xff]  ;;  %855 = vst.msk [vmem:[#allocation2 + $0x20] sm:$0xff] %vm272_vm0, %v822_v60  ;;  %871 = vst.msk [vmem:[#allocation2 + $0xa0] sm:$0xff] %vm272_vm0, %v838_v61  ;;  %v959_v4 = vmax.f32 %v927_v62, 0.0  ;;  %v928_v6 = vadd.f32 %v1799_v15, %v889_v2  ;;  %v1426_v8 = vpop.f32.mrb[12].mxu0  ;;  %v1474_v9 = vpop.f32.mrb[12].mxu1 }
 0x113   : > { %v975_v5 = vmax.f32 %v943_v63, 0.0  ;;  %v944_v7 = vadd.f32 %v1799_v15, %v905_v3  ;;  %856 = vst.msk [vmem:[#allocation2 + $0x28] sm:$0xff] %vm272_vm0, %v823_v0  ;;  %872 = vst.msk [vmem:[#allocation2 + $0xa8] sm:$0xff] %vm272_vm0, %v839_v1  ;;  %v1427_v10 = vpop.f32.mrb[13].mxu0  ;;  %v1475_v11 = vpop.f32.mrb[13].mxu1  ;;  %v314_v1 = vld [vmem:[#allocation2 + $0x48] sm:$0xff] }
 0x114   : > { %v1362_v12 = vpack.c.bf16 %v959_v4, %v959_v4  ;;  %v960_v14 = vmax.f32 %v928_v6, 0.0  ;;  %v1429_v19 = vpop.f32.mrb[14].mxu0  ;;  %v1477_v20 = vpop.f32.mrb[14].mxu1  ;;  %v1428_v21 = vadd.f32 %v1427_v10, %v1426_v8  ;;  %v1476_v22 = vadd.f32 %v1475_v11, %v1474_v9  ;;  %v330_v2 = vld [vmem:[#allocation2 + $0xc8] sm:$0xff] }
 0x115   : > { %v1378_v13 = vpack.c.bf16 %v975_v5, %v975_v5  ;;  %v976_v16 = vmax.f32 %v944_v7, 0.0  ;;  %v1430_v24 = vpop.f32.mrb[15].mxu0  ;;  %v1478_v26 = vpop.f32.mrb[15].mxu1 }
 0x116   : > { %1120 = vst.msk [vmem:[%s1813_s7 + $0x8] sm:$0xf] %vm1117_vm1, %v1362_v12  ;;  %v1363_v27 = vpack.c.bf16 %v960_v14, %v960_v14  ;;  %v1431_v29 = vadd.f32 %v1430_v24, %v1429_v19  ;;  %v1479_v30 = vadd.f32 %v1478_v26, %v1477_v20  ;;  %v824_v31 = vadd.f32 %v1428_v21, %v311_v17  ;;  %v315_v20 = vld [vmem:[#allocation2 + $0x50] sm:$0xff] }
 0x117   : > { %1136 = vst.msk [vmem:[%s1813_s7 + $0x48] sm:$0xf] %vm1117_vm1, %v1378_v13  ;;  %v1379_v28 = vpack.c.bf16 %v976_v16, %v976_v16  ;;  %v840_v32 = vadd.f32 %v1476_v22, %v327_v18  ;;  %v331_v22 = vld [vmem:[#allocation2 + $0xd0] sm:$0xff] }
 0x118   : > { %1121 = vst.msk [vmem:[%s1813_s7 + $0xc] sm:$0xf] %vm1117_vm1, %v1363_v27  ;;  %v825_v35 = vadd.f32 %v1431_v29, %v312_v23  ;;  %v841_v36 = vadd.f32 %v1479_v30, %v328_v25 }
 0x119   : > { %1137 = vst.msk [vmem:[%s1813_s7 + $0x4c] sm:$0xf] %vm1117_vm1, %v1379_v28  ;;  %v890_v33 = vld [vmem:[#allocation2 + $0x20] sm:$0xff] }
 0x11a   : > { %v906_v34 = vld [vmem:[#allocation2 + $0xa0] sm:$0xff]  ;;  %v929_v37 = vadd.f32 %v1799_v15, %v890_v33  ;;  %v891_v39 = vld [vmem:[#allocation2 + $0x28] sm:$0xff]  ;;  %857 = vst.msk [vmem:[#allocation2 + $0x30] sm:$0xff] %vm272_vm0, %v824_v31  ;;  %873 = vst.msk [vmem:[#allocation2 + $0xb0] sm:$0xff] %vm272_vm0, %v840_v32  ;;  %v1432_v43 = vpop.f32.mrb[16].mxu0  ;;  %v1480_v44 = vpop.f32.mrb[16].mxu1 }
 0x11b   : > { %v945_v38 = vadd.f32 %v1799_v15, %v906_v34  ;;  %v907_v40 = vld [vmem:[#allocation2 + $0xa8] sm:$0xff]  ;;  %v930_v41 = vadd.f32 %v1799_v15, %v891_v39  ;;  %858 = vst.msk [vmem:[#allocation2 + $0x38] sm:$0xff] %vm272_vm0, %v825_v35  ;;  %874 = vst.msk [vmem:[#allocation2 + $0xb8] sm:$0xff] %vm272_vm0, %v841_v36  ;;  %v1433_v48 = vpop.f32.mrb[17].mxu0  ;;  %v1481_v50 = vpop.f32.mrb[17].mxu1  ;;  %v332_v39 = vld [vmem:[#allocation2 + $0xd8] sm:$0xff] }
 0x11c   : > { %v946_v42 = vadd.f32 %v1799_v15, %v907_v40  ;;  %v961_v45 = vmax.f32 %v929_v37, 0.0  ;;  %v1434_v53 = vadd.f32 %v1433_v48, %v1432_v43  ;;  %v1482_v54 = vadd.f32 %v1481_v50, %v1480_v44  ;;  %v1435_v55 = vpop.f32.mrb[18].mxu0  ;;  %v1483_v56 = vpop.f32.mrb[18].mxu1 }
 0x11d   : > { %v977_v46 = vmax.f32 %v945_v38, 0.0  ;;  %v962_v51 = vmax.f32 %v930_v41, 0.0  ;;  %v1436_v59 = vpop.f32.mrb[19].mxu0  ;;  %v1484_v60 = vpop.f32.mrb[19].mxu1  ;;  %v316_v38 = vld [vmem:[#allocation2 + $0x58] sm:$0xff] }
 0x11e   : > { %v978_v52 = vmax.f32 %v946_v42, 0.0  ;;  %v1364_v57 = vpack.c.bf16 %v961_v45, %v961_v45  ;;  %v826_v63 = vadd.f32 %v1434_v53, %v313_v47  ;;  %v842_v0 = vadd.f32 %v1482_v54, %v329_v49 }
 0x11f   : > { %v1380_v58 = vpack.c.bf16 %v977_v46, %v977_v46  ;;  %v1365_v61 = vpack.c.bf16 %v962_v51, %v962_v51  ;;  %v1437_v3 = vadd.f32 %v1436_v59, %v1435_v55  ;;  %v1485_v4 = vadd.f32 %v1484_v60, %v1483_v56  ;;  %v317_v56 = vld [vmem:[#allocation2 + $0x60] sm:$0xff] }
 0x120   : > { %v1381_v62 = vpack.c.bf16 %v978_v52, %v978_v52  ;;  %1122 = vst.msk [vmem:[%s1813_s7 + $0x10] sm:$0xf] %vm1117_vm1, %v1364_v57 }
 0x121   : > { %1138 = vst.msk [vmem:[%s1813_s7 + $0x50] sm:$0xf] %vm1117_vm1, %v1380_v58  ;;  %1123 = vst.msk [vmem:[%s1813_s7 + $0x14] sm:$0xf] %vm1117_vm1, %v1365_v61  ;;  %v892_v5 = vld [vmem:[#allocation2 + $0x30] sm:$0xff]  ;;  %v827_v11 = vadd.f32 %v1437_v3, %v314_v1  ;;  %v843_v12 = vadd.f32 %v1485_v4, %v330_v2  ;;  %v333_v58 = vld [vmem:[#allocation2 + $0xe0] sm:$0xff] }
 0x122   : > { %1139 = vst.msk [vmem:[%s1813_s7 + $0x54] sm:$0xf] %vm1117_vm1, %v1381_v62  ;;  %v908_v6 = vld [vmem:[#allocation2 + $0xb0] sm:$0xff]  ;;  %v931_v7 = vadd.f32 %v1799_v15, %v892_v5  ;;  %v893_v9 = vld [vmem:[#allocation2 + $0x38] sm:$0xff]  ;;  %v1438_v16 = vpop.f32.mrb[20].mxu0  ;;  %v1486_v17 = vpop.f32.mrb[20].mxu1 }
 0x123   : > { %859 = vst.msk [vmem:[#allocation2 + $0x40] sm:$0xff] %vm272_vm0, %v826_v63  ;;  %875 = vst.msk [vmem:[#allocation2 + $0xc0] sm:$0xff] %vm272_vm0, %v842_v0  ;;  %v947_v8 = vadd.f32 %v1799_v15, %v908_v6  ;;  %v909_v10 = vld [vmem:[#allocation2 + $0xb8] sm:$0xff]  ;;  %v932_v13 = vadd.f32 %v1799_v15, %v893_v9  ;;  %v1439_v21 = vpop.f32.mrb[21].mxu0  ;;  %v1487_v23 = vpop.f32.mrb[21].mxu1  ;;  %v318_v4 = vld [vmem:[#allocation2 + $0x68] sm:$0xff] }
 0x124   : > { %v948_v14 = vadd.f32 %v1799_v15, %v909_v10  ;;  %v963_v18 = vmax.f32 %v931_v7, 0.0  ;;  %860 = vst.msk [vmem:[#allocation2 + $0x48] sm:$0xff] %vm272_vm0, %v827_v11  ;;  %876 = vst.msk [vmem:[#allocation2 + $0xc8] sm:$0xff] %vm272_vm0, %v843_v12  ;;  %v1440_v26 = vadd.f32 %v1439_v21, %v1438_v16  ;;  %v1488_v27 = vadd.f32 %v1487_v23, %v1486_v17  ;;  %v1441_v28 = vpop.f32.mrb[22].mxu0  ;;  %v1489_v29 = vpop.f32.mrb[22].mxu1  ;;  %v334_v6 = vld [vmem:[#allocation2 + $0xe8] sm:$0xff] }
 0x125   : > { %v979_v19 = vmax.f32 %v947_v8, 0.0  ;;  %v964_v24 = vmax.f32 %v932_v13, 0.0  ;;  %v1442_v32 = vpop.f32.mrb[23].mxu0  ;;  %v1490_v33 = vpop.f32.mrb[23].mxu1 }
 0x126   : > { %v980_v25 = vmax.f32 %v948_v14, 0.0  ;;  %v1366_v30 = vpack.c.bf16 %v963_v18, %v963_v18  ;;  %v828_v36 = vadd.f32 %v1440_v26, %v315_v20  ;;  %v844_v37 = vadd.f32 %v1488_v27, %v331_v22 }
 0x127   : > { %v1382_v31 = vpack.c.bf16 %v979_v19, %v979_v19  ;;  %v1367_v34 = vpack.c.bf16 %v964_v24, %v964_v24  ;;  %v1443_v42 = vadd.f32 %v1442_v32, %v1441_v28  ;;  %v1491_v43 = vadd.f32 %v1490_v33, %v1489_v29  ;;  %v319_v29 = vld [vmem:[#allocation2 + $0x70] sm:$0xff] }
 0x128   : > { %v1383_v35 = vpack.c.bf16 %v980_v25, %v980_v25  ;;  %1124 = vst.msk [vmem:[%s1813_s7 + $0x18] sm:$0xf] %vm1117_vm1, %v1366_v30 }
 0x129   : > { %1140 = vst.msk [vmem:[%s1813_s7 + $0x58] sm:$0xf] %vm1117_vm1, %v1382_v31  ;;  %1125 = vst.msk [vmem:[%s1813_s7 + $0x1c] sm:$0xf] %vm1117_vm1, %v1367_v34  ;;  %v829_v46 = vadd.f32 %v1443_v42, %v316_v38  ;;  %v845_v47 = vadd.f32 %v1491_v43, %v332_v39  ;;  %v335_v31 = vld [vmem:[#allocation2 + $0xf0] sm:$0xff]  ;;  %v336_v43 = vld [vmem:[#allocation2 + $0xf8] sm:$0xff] }
 0x12a   : > { %v894_v40 = vld [vmem:[#allocation2 + $0x40] sm:$0xff]  ;;  %1141 = vst.msk [vmem:[%s1813_s7 + $0x5c] sm:$0xf] %vm1117_vm1, %v1383_v35  ;;  %v1444_v52 = vpop.f32.mrb[24].mxu0  ;;  %v1492_v53 = vpop.f32.mrb[24].mxu1 }
 0x12b   : > { %v910_v41 = vld [vmem:[#allocation2 + $0xc0] sm:$0xff]  ;;  %v933_v44 = vadd.f32 %v1799_v15, %v894_v40  ;;  %861 = vst.msk [vmem:[#allocation2 + $0x50] sm:$0xff] %vm272_vm0, %v828_v36  ;;  %877 = vst.msk [vmem:[#allocation2 + $0xd0] sm:$0xff] %vm272_vm0, %v844_v37  ;;  %v895_v50 = vld [vmem:[#allocation2 + $0x48] sm:$0xff]  ;;  %v1445_v57 = vpop.f32.mrb[25].mxu0  ;;  %v1493_v59 = vpop.f32.mrb[25].mxu1 }
 0x12c   : > { %v949_v45 = vadd.f32 %v1799_v15, %v910_v41  ;;  %v911_v51 = vld [vmem:[#allocation2 + $0xc8] sm:$0xff]  ;;  %v934_v54 = vadd.f32 %v1799_v15, %v895_v50  ;;  %862 = vst.msk [vmem:[#allocation2 + $0x58] sm:$0xff] %vm272_vm0, %v829_v46  ;;  %878 = vst.msk [vmem:[#allocation2 + $0xd8] sm:$0xff] %vm272_vm0, %v845_v47  ;;  %v1446_v62 = vadd.f32 %v1445_v57, %v1444_v52  ;;  %v1447_v0 = vpop.f32.mrb[26].mxu0  ;;  %v1495_v1 = vpop.f32.mrb[26].mxu1  ;;  %v320_v41 = vld [vmem:[#allocation2 + $0x78] sm:$0xff] }
 0x12d   : > { %v965_v48 = vmax.f32 %v933_v44, 0.0  ;;  %v950_v55 = vadd.f32 %v1799_v15, %v911_v51  ;;  %v1494_v63 = vadd.f32 %v1493_v59, %v1492_v53  ;;  %v1448_v5 = vpop.f32.mrb[27].mxu0  ;;  %v1496_v7 = vpop.f32.mrb[27].mxu1 }
 0x12e   : > { %v981_v49 = vmax.f32 %v949_v45, 0.0  ;;  %v966_v2 = vmax.f32 %v934_v54, 0.0  ;;  %v830_v8 = vadd.f32 %v1446_v62, %v317_v56  ;;  %v1449_v10 = vadd.f32 %v1448_v5, %v1447_v0 }
 0x12f   : > { %v1368_v60 = vpack.c.bf16 %v965_v48, %v965_v48  ;;  %v982_v3 = vmax.f32 %v950_v55, 0.0  ;;  %v846_v9 = vadd.f32 %v1494_v63, %v333_v58  ;;  %v1497_v11 = vadd.f32 %v1496_v7, %v1495_v1 }
 0x130   : > { %v1384_v61 = vpack.c.bf16 %v981_v49, %v981_v49  ;;  %v1369_v12 = vpack.c.bf16 %v966_v2, %v966_v2  ;;  %863 = vst.msk [vmem:[#allocation2 + $0x60] sm:$0xff] %vm272_vm0, %v830_v8  ;;  %v831_v19 = vadd.f32 %v1449_v10, %v318_v4 }
 0x131   : > { %1126 = vst.msk [vmem:[%s1813_s7 + $0x20] sm:$0xf] %vm1117_vm1, %v1368_v60  ;;  %v1385_v13 = vpack.c.bf16 %v982_v3, %v982_v3  ;;  %v847_v20 = vadd.f32 %v1497_v11, %v334_v6 }
 0x132   : > { %1142 = vst.msk [vmem:[%s1813_s7 + $0x60] sm:$0xf] %vm1117_vm1, %v1384_v61  ;;  %v896_v14 = vld [vmem:[#allocation2 + $0x50] sm:$0xff]  ;;  %1127 = vst.msk [vmem:[%s1813_s7 + $0x24] sm:$0xf] %vm1117_vm1, %v1369_v12  ;;  %v1450_v25 = vpop.f32.mrb[28].mxu0 }
 0x133   : > { %v912_v16 = vld [vmem:[#allocation2 + $0xd0] sm:$0xff]  ;;  %v935_v17 = vadd.f32 %v1799_v15, %v896_v14  ;;  %879 = vst.msk [vmem:[#allocation2 + $0xe0] sm:$0xff] %vm272_vm0, %v846_v9  ;;  %v897_v23 = vld [vmem:[#allocation2 + $0x58] sm:$0xff]  ;;  %864 = vst.msk [vmem:[#allocation2 + $0x68] sm:$0xff] %vm272_vm0, %v831_v19  ;;  %v1498_v26 = vpop.f32.mrb[28].mxu1  ;;  %v1451_v30 = vpop.f32.mrb[29].mxu0 }
 0x134   : > { %v951_v18 = vadd.f32 %v1799_v15, %v912_v16  ;;  %1143 = vst.msk [vmem:[%s1813_s7 + $0x64] sm:$0xf] %vm1117_vm1, %v1385_v13  ;;  %v913_v24 = vld [vmem:[#allocation2 + $0xd8] sm:$0xff]  ;;  %v936_v27 = vadd.f32 %v1799_v15, %v897_v23  ;;  %v1499_v32 = vpop.f32.mrb[29].mxu1  ;;  %v1452_v35 = vadd.f32 %v1451_v30, %v1450_v25  ;;  %v1453_v37 = vpop.f32.mrb[30].mxu0 }
 0x135   : > { %v967_v21 = vmax.f32 %v935_v17, 0.0  ;;  %880 = vst.msk [vmem:[#allocation2 + $0xe8] sm:$0xff] %vm272_vm0, %v847_v20  ;;  %v952_v28 = vadd.f32 %v1799_v15, %v913_v24  ;;  %v1500_v36 = vadd.f32 %v1499_v32, %v1498_v26  ;;  %v1501_v38 = vpop.f32.mrb[30].mxu1  ;;  %v1454_v42 = vpop.f32.mrb[31].mxu0 }
 0x136   : > { %v983_v22 = vmax.f32 %v951_v18, 0.0  ;;  %v968_v39 = vmax.f32 %v936_v27, 0.0  ;;  %v1502_v44 = vpop.f32.mrb[31].mxu1  ;;  %v832_v45 = vadd.f32 %v1452_v35, %v319_v29  ;;  %v1455_v47 = vadd.f32 %v1454_v42, %v1453_v37 }
 0x137   : > { %v1370_v33 = vpack.c.bf16 %v967_v21, %v967_v21  ;;  %v984_v40 = vmax.f32 %v952_v28, 0.0  ;;  %v848_v46 = vadd.f32 %v1500_v36, %v335_v31  ;;  %v1503_v48 = vadd.f32 %v1502_v44, %v1501_v38  ;;  %v898_v51 = vld [vmem:[#allocation2 + $0x60] sm:$0xff] }
 0x138   : > { %v1386_v34 = vpack.c.bf16 %v983_v22, %v983_v22  ;;  %v1371_v49 = vpack.c.bf16 %v968_v39, %v968_v39  ;;  %v937_v53 = vadd.f32 %v1799_v15, %v898_v51  ;;  %865 = vst.msk [vmem:[#allocation2 + $0x70] sm:$0xff] %vm272_vm0, %v832_v45  ;;  %v833_v55 = vadd.f32 %v1455_v47, %v320_v41 }
 0x139   : > { %1128 = vst.msk [vmem:[%s1813_s7 + $0x28] sm:$0xf] %vm1117_vm1, %v1370_v33  ;;  %v1387_v50 = vpack.c.bf16 %v984_v40, %v984_v40  ;;  %v849_v56 = vadd.f32 %v1503_v48, %v336_v43 }
 0x13a   : > { %1144 = vst.msk [vmem:[%s1813_s7 + $0x68] sm:$0xf] %vm1117_vm1, %v1386_v34  ;;  %v914_v52 = vld [vmem:[#allocation2 + $0xe0] sm:$0xff]  ;;  %1129 = vst.msk [vmem:[%s1813_s7 + $0x2c] sm:$0xf] %vm1117_vm1, %v1371_v49  ;;  %v899_v57 = vld [vmem:[#allocation2 + $0x68] sm:$0xff] }
 0x13b   : > { %v953_v54 = vadd.f32 %v1799_v15, %v914_v52  ;;  %881 = vst.msk [vmem:[#allocation2 + $0xf0] sm:$0xff] %vm272_vm0, %v848_v46  ;;  %v969_v59 = vmax.f32 %v937_v53, 0.0  ;;  %v938_v61 = vadd.f32 %v1799_v15, %v899_v57  ;;  %866 = vst.msk [vmem:[#allocation2 + $0x78] sm:$0xff] %vm272_vm0, %v833_v55 }
 0x13c   : > { %1145 = vst.msk [vmem:[%s1813_s7 + $0x6c] sm:$0xf] %vm1117_vm1, %v1387_v50  ;;  %v915_v58 = vld [vmem:[#allocation2 + $0xe8] sm:$0xff] }
 0x13d   : > { %v985_v60 = vmax.f32 %v953_v54, 0.0  ;;  %v954_v62 = vadd.f32 %v1799_v15, %v915_v58  ;;  %882 = vst.msk [vmem:[#allocation2 + $0xf8] sm:$0xff] %vm272_vm0, %v849_v56  ;;  %v1372_v63 = vpack.c.bf16 %v969_v59, %v969_v59  ;;  %v970_v1 = vmax.f32 %v938_v61, 0.0 }
 0x13f   : > { %v1388_v0 = vpack.c.bf16 %v985_v60, %v985_v60  ;;  %v986_v2 = vmax.f32 %v954_v62, 0.0  ;;  %1130 = vst.msk [vmem:[%s1813_s7 + $0x30] sm:$0xf] %vm1117_vm1, %v1372_v63  ;;  %v1373_v3 = vpack.c.bf16 %v970_v1, %v970_v1  ;;  %v900_v5 = vld [vmem:[#allocation2 + $0x70] sm:$0xff] }
 0x140   : > { %v939_v7 = vadd.f32 %v1799_v15, %v900_v5 }
 0x141   : > { %1146 = vst.msk [vmem:[%s1813_s7 + $0x70] sm:$0xf] %vm1117_vm1, %v1388_v0  ;;  %v1389_v4 = vpack.c.bf16 %v986_v2, %v986_v2  ;;  %1131 = vst.msk [vmem:[%s1813_s7 + $0x34] sm:$0xf] %vm1117_vm1, %v1373_v3 }
 0x142   : > { %v916_v6 = vld [vmem:[#allocation2 + $0xf0] sm:$0xff]  ;;  %v901_v9 = vld [vmem:[#allocation2 + $0x78] sm:$0xff]  ;;  %v971_v11 = vmax.f32 %v939_v7, 0.0 }
 0x143   : > { %1147 = vst.msk [vmem:[%s1813_s7 + $0x74] sm:$0xf] %vm1117_vm1, %v1389_v4  ;;  %v955_v8 = vadd.f32 %v1799_v15, %v916_v6  ;;  %v940_v13 = vadd.f32 %v1799_v15, %v901_v9 }
 0x144   : > { %v917_v10 = vld [vmem:[#allocation2 + $0xf8] sm:$0xff]  ;;  %v1374_v16 = vpack.c.bf16 %v971_v11, %v971_v11 }
 0x145   : > { %v987_v12 = vmax.f32 %v955_v8, 0.0  ;;  %v956_v14 = vadd.f32 %v1799_v15, %v917_v10  ;;  %v972_v18 = vmax.f32 %v940_v13, 0.0 }
 0x146   : > { %1132 = vst.msk [vmem:[%s1813_s7 + $0x38] sm:$0xf] %vm1117_vm1, %v1374_v16 }
 0x147   : > { %v1390_v17 = vpack.c.bf16 %v987_v12, %v987_v12  ;;  %v988_v19 = vmax.f32 %v956_v14, 0.0  ;;  %v1375_v20 = vpack.c.bf16 %v972_v18, %v972_v18 }
 0x149   : > { %1148 = vst.msk [vmem:[%s1813_s7 + $0x78] sm:$0xf] %vm1117_vm1, %v1390_v17  ;;  %v1391_v21 = vpack.c.bf16 %v988_v19, %v988_v19  ;;  %1133 = vst.msk [vmem:[%s1813_s7 + $0x3c] sm:$0xf] %vm1117_vm1, %v1375_v20 }
 0x14b   : > { %1149 = vst.msk [vmem:[%s1813_s7 + $0x7c] sm:$0xf] %vm1117_vm1, %v1391_v21 }
 0x14c PF: > { %s13_s14 = sadd.s32 1, %s1631_s14   ;;  %s1944_s12 = smov %s1627_s13 }
 0x14d   : > { %p10_p5 = scmp.ge.s32.totalorder %s13_s14, 10   ;;  %s1945_s13 = smov %s1947_s15 }
 0x14f   :  { %12 = sbr.rel (!%p10_p5) target bundleno = 2 (0x2), region = 76 }

// kernel: _stem.3
= control target key start
LH: loop header
LB: loop body
LE: loop exit
PB: predicated region body
PF: predicated region fallthrough
CT: control target
= control target key end

     0   :  { %vm1105_vm0 = vcmask 519168   ;;  %s3542_s0 = inlined_call_operand.vmem [shape: bf16[9,512,64], index: 0, kind: input, shape index: {}]   ;;  %s3543_s1 = inlined_call_operand.hbm [shape: bf16[512,64], index: 1, kind: output, shape index: {}]  }
   0x1   :  { %v9_v0 = vld [vmem:[%s3542_s0] sm:$0xf]  ;;  %v10_v6 = vld [vmem:[%s3542_s0 + $0x4] sm:$0xf]  ;;  %v11_v15 = vld [vmem:[%s3542_s0 + $0x8] sm:$0xf] }
   0x2   :  { %v1186_v1 = vld [vmem:[%s3542_s0 + $0x100] sm:$0xf]  ;;  %v1187_v7 = vld [vmem:[%s3542_s0 + $0x104] sm:$0xf]  ;;  %v1188_v16 = vld [vmem:[%s3542_s0 + $0x108] sm:$0xf] }
   0x3   :  { %v1250_v2 = vld [vmem:[%s3542_s0 + $0x200] sm:$0xf]  ;;  %v138_v3 = vmax.bf16 %v1186_v1, %v9_v0  ;;  %v139_v9 = vmax.bf16 %v1187_v7, %v10_v6  ;;  %v1251_v10 = vld [vmem:[%s3542_s0 + $0x204] sm:$0xf]  ;;  %v140_v19 = vmax.bf16 %v1188_v16, %v11_v15  ;;  %v1252_v20 = vld [vmem:[%s3542_s0 + $0x208] sm:$0xf] }
   0x4   :  { %v1314_v4 = vld [vmem:[%s3542_s0 + $0x300] sm:$0xf]  ;;  %v1315_v12 = vld [vmem:[%s3542_s0 + $0x304] sm:$0xf]  ;;  %v1316_v24 = vld [vmem:[%s3542_s0 + $0x308] sm:$0xf] }
   0x5   :  { %v267_v5 = vmax.bf16 %v1250_v2, %v138_v3  ;;  %v1378_v8 = vld [vmem:[%s3542_s0 + $0x400] sm:$0xf]  ;;  %v268_v14 = vmax.bf16 %v1251_v10, %v139_v9  ;;  %v1379_v18 = vld [vmem:[%s3542_s0 + $0x404] sm:$0xf]  ;;  %v269_v27 = vmax.bf16 %v1252_v20, %v140_v19  ;;  %v12_v28 = vld [vmem:[%s3542_s0 + $0xc] sm:$0xf] }
   0x6   :  { %v1442_v13 = vld [vmem:[%s3542_s0 + $0x500] sm:$0xf]  ;;  %v1443_v26 = vld [vmem:[%s3542_s0 + $0x504] sm:$0xf]  ;;  %v1189_v29 = vld [vmem:[%s3542_s0 + $0x10c] sm:$0xf] }
   0x7   :  { %v396_v11 = vmax.bf16 %v1314_v4, %v267_v5  ;;  %v1506_v21 = vld [vmem:[%s3542_s0 + $0x600] sm:$0xf]  ;;  %v397_v23 = vmax.bf16 %v1315_v12, %v268_v14  ;;  %v1380_v32 = vld [vmem:[%s3542_s0 + $0x408] sm:$0xf]  ;;  %v141_v33 = vmax.bf16 %v1189_v29, %v12_v28  ;;  %v1253_v34 = vld [vmem:[%s3542_s0 + $0x20c] sm:$0xf]  ;;  %v398_v37 = vmax.bf16 %v1316_v24, %v269_v27 }
   0x8   :  { %v1570_v22 = vld [vmem:[%s3542_s0 + $0x700] sm:$0xf]  ;;  %v1507_v36 = vld [vmem:[%s3542_s0 + $0x604] sm:$0xf]  ;;  %v1317_v38 = vld [vmem:[%s3542_s0 + $0x30c] sm:$0xf] }
   0x9   :  { %v525_v17 = vmax.bf16 %v1378_v8, %v396_v11  ;;  %v1634_v30 = vld [vmem:[%s3542_s0 + $0x800] sm:$0xf]  ;;  %v526_v31 = vmax.bf16 %v1379_v18, %v397_v23  ;;  %v1444_v40 = vld [vmem:[%s3542_s0 + $0x508] sm:$0xf]  ;;  %v270_v41 = vmax.bf16 %v1253_v34, %v141_v33  ;;  %v13_v42 = vld [vmem:[%s3542_s0 + $0x10] sm:$0xf]  ;;  %v527_v46 = vmax.bf16 %v1380_v32, %v398_v37 }
   0xa   :  { %v1190_v43 = vld [vmem:[%s3542_s0 + $0x110] sm:$0xf]  ;;  %v1571_v45 = vld [vmem:[%s3542_s0 + $0x704] sm:$0xf]  ;;  %v1381_v47 = vld [vmem:[%s3542_s0 + $0x40c] sm:$0xf] }
   0xb   :  { %v654_v25 = vmax.bf16 %v1442_v13, %v525_v17  ;;  %v655_v39 = vmax.bf16 %v1443_v26, %v526_v31  ;;  %v142_v48 = vmax.bf16 %v1190_v43, %v13_v42  ;;  %v1254_v49 = vld [vmem:[%s3542_s0 + $0x210] sm:$0xf]  ;;  %v1635_v51 = vld [vmem:[%s3542_s0 + $0x804] sm:$0xf]  ;;  %v1508_v52 = vld [vmem:[%s3542_s0 + $0x608] sm:$0xf]  ;;  %v399_v53 = vmax.bf16 %v1317_v38, %v270_v41 }
   0xc   :  { %v1318_v54 = vld [vmem:[%s3542_s0 + $0x310] sm:$0xf]  ;;  %v656_v56 = vmax.bf16 %v1444_v40, %v527_v46  ;;  %v1445_v57 = vld [vmem:[%s3542_s0 + $0x50c] sm:$0xf]  ;;  %v14_v59 = vld [vmem:[%s3542_s0 + $0x14] sm:$0xf] }
   0xd   :  { %v783_v35 = vmax.bf16 %v1506_v21, %v654_v25  ;;  %v784_v50 = vmax.bf16 %v1507_v36, %v655_v39  ;;  %v271_v58 = vmax.bf16 %v1254_v49, %v142_v48  ;;  %v1191_v60 = vld [vmem:[%s3542_s0 + $0x114] sm:$0xf]  ;;  %v1572_v62 = vld [vmem:[%s3542_s0 + $0x708] sm:$0xf]  ;;  %v528_v63 = vmax.bf16 %v1381_v47, %v399_v53  ;;  %v1382_v0 = vld [vmem:[%s3542_s0 + $0x410] sm:$0xf] }
   0xe   :  { %v143_v1 = vmax.bf16 %v1191_v60, %v14_v59  ;;  %v1255_v2 = vld [vmem:[%s3542_s0 + $0x214] sm:$0xf]  ;;  %v785_v3 = vmax.bf16 %v1508_v52, %v656_v56  ;;  %v1636_v4 = vld [vmem:[%s3542_s0 + $0x808] sm:$0xf]  ;;  %v1509_v5 = vld [vmem:[%s3542_s0 + $0x60c] sm:$0xf] }
   0xf   :  { %v912_v44 = vmax.bf16 %v1570_v22, %v783_v35  ;;  %v913_v61 = vmax.bf16 %v1571_v45, %v784_v50  ;;  %v400_v6 = vmax.bf16 %v1318_v54, %v271_v58  ;;  %v1319_v7 = vld [vmem:[%s3542_s0 + $0x314] sm:$0xf]  ;;  %v657_v9 = vmax.bf16 %v1445_v57, %v528_v63  ;;  %v1446_v10 = vld [vmem:[%s3542_s0 + $0x510] sm:$0xf]  ;;  %v15_v12 = vld [vmem:[%s3542_s0 + $0x18] sm:$0xf] }
  0x10   :  { %v272_v11 = vmax.bf16 %v1255_v2, %v143_v1  ;;  %v1192_v13 = vld [vmem:[%s3542_s0 + $0x118] sm:$0xf]  ;;  %v914_v14 = vmax.bf16 %v1572_v62, %v785_v3  ;;  %v1573_v15 = vld [vmem:[%s3542_s0 + $0x70c] sm:$0xf]  ;;  %v1383_v17 = vld [vmem:[%s3542_s0 + $0x414] sm:$0xf] }
  0x11   :  { %v1041_v55 = vmax.bf16 %v1634_v30, %v912_v44  ;;  %v1042_v8 = vmax.bf16 %v1635_v51, %v913_v61  ;;  %v529_v16 = vmax.bf16 %v1382_v0, %v400_v6  ;;  %v144_v18 = vmax.bf16 %v1192_v13, %v15_v12  ;;  %v1256_v19 = vld [vmem:[%s3542_s0 + $0x218] sm:$0xf]  ;;  %v1637_v21 = vld [vmem:[%s3542_s0 + $0x80c] sm:$0xf]  ;;  %v1510_v22 = vld [vmem:[%s3542_s0 + $0x610] sm:$0xf] }
  0x12   :  { %v786_v20 = vmax.bf16 %v1509_v5, %v657_v9  ;;  %v401_v23 = vmax.bf16 %v1319_v7, %v272_v11  ;;  %v1320_v24 = vld [vmem:[%s3542_s0 + $0x318] sm:$0xf]  ;;  %v1043_v25 = vmax.bf16 %v1636_v4, %v914_v14  ;;  %v1447_v27 = vld [vmem:[%s3542_s0 + $0x514] sm:$0xf]  ;;  %v16_v29 = vld [vmem:[%s3542_s0 + $0x1c] sm:$0xf] }
  0x13   :  { %1106 = vst.msk [vmem:[#allocation2] sm:$0xf] %vm1105_vm0, %v1041_v55  ;;  %1107 = vst.msk [vmem:[#allocation2 + $0x4] sm:$0xf] %vm1105_vm0, %v1042_v8  ;;  %v658_v26 = vmax.bf16 %v1446_v10, %v529_v16  ;;  %v273_v28 = vmax.bf16 %v1256_v19, %v144_v18  ;;  %v1193_v30 = vld [vmem:[%s3542_s0 + $0x11c] sm:$0xf] }
  0x14   :  { %v915_v31 = vmax.bf16 %v1573_v15, %v786_v20  ;;  %v1574_v32 = vld [vmem:[%s3542_s0 + $0x710] sm:$0xf]  ;;  %v530_v33 = vmax.bf16 %v1383_v17, %v401_v23  ;;  %v1384_v34 = vld [vmem:[%s3542_s0 + $0x418] sm:$0xf]  ;;  %v145_v35 = vmax.bf16 %v1193_v30, %v16_v29  ;;  %v1257_v36 = vld [vmem:[%s3542_s0 + $0x21c] sm:$0xf] }
  0x15   :  { %1108 = vst.msk [vmem:[#allocation2 + $0x8] sm:$0xf] %vm1105_vm0, %v1043_v25  ;;  %v787_v37 = vmax.bf16 %v1510_v22, %v658_v26  ;;  %v1638_v38 = vld [vmem:[%s3542_s0 + $0x810] sm:$0xf]  ;;  %v1511_v39 = vld [vmem:[%s3542_s0 + $0x614] sm:$0xf]  ;;  %v402_v40 = vmax.bf16 %v1320_v24, %v273_v28 }
  0x16   :  { %v1321_v41 = vld [vmem:[%s3542_s0 + $0x31c] sm:$0xf]  ;;  %v1044_v42 = vmax.bf16 %v1637_v21, %v915_v31  ;;  %v659_v43 = vmax.bf16 %v1447_v27, %v530_v33  ;;  %v1448_v44 = vld [vmem:[%s3542_s0 + $0x518] sm:$0xf]  ;;  %v274_v45 = vmax.bf16 %v1257_v36, %v145_v35  ;;  %v17_v46 = vld [vmem:[%s3542_s0 + $0x20] sm:$0xf] }
  0x17   :  { %v1194_v47 = vld [vmem:[%s3542_s0 + $0x120] sm:$0xf]  ;;  %v916_v48 = vmax.bf16 %v1574_v32, %v787_v37  ;;  %v1575_v49 = vld [vmem:[%s3542_s0 + $0x714] sm:$0xf]  ;;  %v531_v50 = vmax.bf16 %v1384_v34, %v402_v40  ;;  %v1385_v51 = vld [vmem:[%s3542_s0 + $0x41c] sm:$0xf] }
  0x18   :  { %v146_v52 = vmax.bf16 %v1194_v47, %v17_v46  ;;  %v1258_v53 = vld [vmem:[%s3542_s0 + $0x220] sm:$0xf]  ;;  %1109 = vst.msk [vmem:[#allocation2 + $0xc] sm:$0xf] %vm1105_vm0, %v1044_v42  ;;  %v788_v54 = vmax.bf16 %v1511_v39, %v659_v43  ;;  %v1639_v55 = vld [vmem:[%s3542_s0 + $0x814] sm:$0xf]  ;;  %v403_v57 = vmax.bf16 %v1321_v41, %v274_v45 }
  0x19   :  { %v1512_v56 = vld [vmem:[%s3542_s0 + $0x618] sm:$0xf]  ;;  %v1322_v58 = vld [vmem:[%s3542_s0 + $0x320] sm:$0xf]  ;;  %v1045_v59 = vmax.bf16 %v1638_v38, %v916_v48  ;;  %v660_v60 = vmax.bf16 %v1448_v44, %v531_v50  ;;  %v1449_v61 = vld [vmem:[%s3542_s0 + $0x51c] sm:$0xf] }
  0x1a   :  { %v275_v62 = vmax.bf16 %v1258_v53, %v146_v52  ;;  %v18_v63 = vld [vmem:[%s3542_s0 + $0x24] sm:$0xf]  ;;  %v917_v1 = vmax.bf16 %v1575_v49, %v788_v54  ;;  %v1576_v2 = vld [vmem:[%s3542_s0 + $0x718] sm:$0xf]  ;;  %v532_v3 = vmax.bf16 %v1385_v51, %v403_v57  ;;  %v1386_v4 = vld [vmem:[%s3542_s0 + $0x420] sm:$0xf] }
  0x1b   :  { %v1195_v0 = vld [vmem:[%s3542_s0 + $0x124] sm:$0xf]  ;;  %1110 = vst.msk [vmem:[#allocation2 + $0x10] sm:$0xf] %vm1105_vm0, %v1045_v59  ;;  %v789_v7 = vmax.bf16 %v1512_v56, %v660_v60  ;;  %v1640_v8 = vld [vmem:[%s3542_s0 + $0x818] sm:$0xf] }
  0x1c   :  { %v147_v5 = vmax.bf16 %v1195_v0, %v18_v63  ;;  %v1259_v6 = vld [vmem:[%s3542_s0 + $0x224] sm:$0xf]  ;;  %v1513_v9 = vld [vmem:[%s3542_s0 + $0x61c] sm:$0xf]  ;;  %v404_v10 = vmax.bf16 %v1322_v58, %v275_v62  ;;  %v1046_v12 = vmax.bf16 %v1639_v55, %v917_v1  ;;  %v661_v13 = vmax.bf16 %v1449_v61, %v532_v3  ;;  %v1450_v14 = vld [vmem:[%s3542_s0 + $0x520] sm:$0xf] }
  0x1d   :  { %v1323_v11 = vld [vmem:[%s3542_s0 + $0x324] sm:$0xf]  ;;  %v19_v16 = vld [vmem:[%s3542_s0 + $0x28] sm:$0xf]  ;;  %v918_v18 = vmax.bf16 %v1576_v2, %v789_v7  ;;  %v1577_v19 = vld [vmem:[%s3542_s0 + $0x71c] sm:$0xf] }
  0x1e   :  { %v276_v15 = vmax.bf16 %v1259_v6, %v147_v5  ;;  %v1196_v17 = vld [vmem:[%s3542_s0 + $0x128] sm:$0xf]  ;;  %v533_v20 = vmax.bf16 %v1386_v4, %v404_v10  ;;  %v1387_v21 = vld [vmem:[%s3542_s0 + $0x424] sm:$0xf]  ;;  %1111 = vst.msk [vmem:[#allocation2 + $0x14] sm:$0xf] %vm1105_vm0, %v1046_v12  ;;  %v790_v24 = vmax.bf16 %v1513_v9, %v661_v13 }
  0x1f   :  { %v148_v22 = vmax.bf16 %v1196_v17, %v19_v16  ;;  %v1260_v23 = vld [vmem:[%s3542_s0 + $0x228] sm:$0xf]  ;;  %v1641_v25 = vld [vmem:[%s3542_s0 + $0x81c] sm:$0xf]  ;;  %v1514_v26 = vld [vmem:[%s3542_s0 + $0x620] sm:$0xf]  ;;  %v1047_v29 = vmax.bf16 %v1640_v8, %v918_v18 }
  0x20   :  { %v405_v27 = vmax.bf16 %v1323_v11, %v276_v15  ;;  %v1324_v28 = vld [vmem:[%s3542_s0 + $0x328] sm:$0xf]  ;;  %v662_v30 = vmax.bf16 %v1450_v14, %v533_v20  ;;  %v1451_v31 = vld [vmem:[%s3542_s0 + $0x524] sm:$0xf]  ;;  %v20_v33 = vld [vmem:[%s3542_s0 + $0x2c] sm:$0xf]  ;;  %v919_v35 = vmax.bf16 %v1577_v19, %v790_v24 }
  0x21   :  { %v277_v32 = vmax.bf16 %v1260_v23, %v148_v22  ;;  %v1197_v34 = vld [vmem:[%s3542_s0 + $0x12c] sm:$0xf]  ;;  %v1578_v36 = vld [vmem:[%s3542_s0 + $0x720] sm:$0xf]  ;;  %v1388_v38 = vld [vmem:[%s3542_s0 + $0x428] sm:$0xf] }
  0x22   :  { %v534_v37 = vmax.bf16 %v1387_v21, %v405_v27  ;;  %v149_v39 = vmax.bf16 %v1197_v34, %v20_v33  ;;  %v1261_v40 = vld [vmem:[%s3542_s0 + $0x22c] sm:$0xf]  ;;  %1112 = vst.msk [vmem:[#allocation2 + $0x18] sm:$0xf] %vm1105_vm0, %v1047_v29  ;;  %v791_v41 = vmax.bf16 %v1514_v26, %v662_v30  ;;  %v1642_v42 = vld [vmem:[%s3542_s0 + $0x820] sm:$0xf]  ;;  %v1048_v46 = vmax.bf16 %v1641_v25, %v919_v35 }
  0x23   :  { %v1515_v43 = vld [vmem:[%s3542_s0 + $0x624] sm:$0xf]  ;;  %v406_v44 = vmax.bf16 %v1324_v28, %v277_v32  ;;  %v1325_v45 = vld [vmem:[%s3542_s0 + $0x32c] sm:$0xf]  ;;  %v1452_v48 = vld [vmem:[%s3542_s0 + $0x528] sm:$0xf] }
  0x24   :  { %v663_v47 = vmax.bf16 %v1451_v31, %v534_v37  ;;  %v278_v49 = vmax.bf16 %v1261_v40, %v149_v39  ;;  %v21_v50 = vld [vmem:[%s3542_s0 + $0x30] sm:$0xf]  ;;  %v920_v52 = vmax.bf16 %v1578_v36, %v791_v41  ;;  %v1579_v53 = vld [vmem:[%s3542_s0 + $0x724] sm:$0xf]  ;;  %v1389_v55 = vld [vmem:[%s3542_s0 + $0x42c] sm:$0xf] }
  0x25   :  { %v1198_v51 = vld [vmem:[%s3542_s0 + $0x130] sm:$0xf]  ;;  %v535_v54 = vmax.bf16 %v1388_v38, %v406_v44  ;;  %1113 = vst.msk [vmem:[#allocation2 + $0x1c] sm:$0xf] %vm1105_vm0, %v1048_v46  ;;  %v1643_v59 = vld [vmem:[%s3542_s0 + $0x824] sm:$0xf] }
  0x26   :  { %v150_v56 = vmax.bf16 %v1198_v51, %v21_v50  ;;  %v1262_v57 = vld [vmem:[%s3542_s0 + $0x230] sm:$0xf]  ;;  %v792_v58 = vmax.bf16 %v1515_v43, %v663_v47  ;;  %v1516_v60 = vld [vmem:[%s3542_s0 + $0x628] sm:$0xf]  ;;  %v407_v61 = vmax.bf16 %v1325_v45, %v278_v49  ;;  %v1049_v63 = vmax.bf16 %v1642_v42, %v920_v52  ;;  %v1453_v1 = vld [vmem:[%s3542_s0 + $0x52c] sm:$0xf] }
  0x27   :  { %v1326_v62 = vld [vmem:[%s3542_s0 + $0x330] sm:$0xf]  ;;  %v664_v0 = vmax.bf16 %v1452_v48, %v535_v54  ;;  %v22_v3 = vld [vmem:[%s3542_s0 + $0x34] sm:$0xf]  ;;  %v1580_v6 = vld [vmem:[%s3542_s0 + $0x728] sm:$0xf] }
  0x28   :  { %v279_v2 = vmax.bf16 %v1262_v57, %v150_v56  ;;  %v1199_v4 = vld [vmem:[%s3542_s0 + $0x134] sm:$0xf]  ;;  %v921_v5 = vmax.bf16 %v1579_v53, %v792_v58  ;;  %v536_v7 = vmax.bf16 %v1389_v55, %v407_v61  ;;  %v1390_v8 = vld [vmem:[%s3542_s0 + $0x430] sm:$0xf]  ;;  %1114 = vst.msk [vmem:[#allocation2 + $0x20] sm:$0xf] %vm1105_vm0, %v1049_v63 }
  0x29   :  { %v151_v9 = vmax.bf16 %v1199_v4, %v22_v3  ;;  %v1263_v10 = vld [vmem:[%s3542_s0 + $0x234] sm:$0xf]  ;;  %v793_v11 = vmax.bf16 %v1516_v60, %v664_v0  ;;  %v1644_v12 = vld [vmem:[%s3542_s0 + $0x828] sm:$0xf]  ;;  %v1517_v13 = vld [vmem:[%s3542_s0 + $0x62c] sm:$0xf] }
  0x2a   :  { %v408_v14 = vmax.bf16 %v1326_v62, %v279_v2  ;;  %v1327_v15 = vld [vmem:[%s3542_s0 + $0x334] sm:$0xf]  ;;  %v1050_v16 = vmax.bf16 %v1643_v59, %v921_v5  ;;  %v665_v17 = vmax.bf16 %v1453_v1, %v536_v7  ;;  %v1454_v18 = vld [vmem:[%s3542_s0 + $0x530] sm:$0xf]  ;;  %v23_v20 = vld [vmem:[%s3542_s0 + $0x38] sm:$0xf] }
  0x2b   :  { %v280_v19 = vmax.bf16 %v1263_v10, %v151_v9  ;;  %v1200_v21 = vld [vmem:[%s3542_s0 + $0x138] sm:$0xf]  ;;  %v922_v22 = vmax.bf16 %v1580_v6, %v793_v11  ;;  %v1581_v23 = vld [vmem:[%s3542_s0 + $0x72c] sm:$0xf]  ;;  %v1391_v25 = vld [vmem:[%s3542_s0 + $0x434] sm:$0xf] }
  0x2c   :  { %v537_v24 = vmax.bf16 %v1390_v8, %v408_v14  ;;  %v152_v26 = vmax.bf16 %v1200_v21, %v23_v20  ;;  %v1264_v27 = vld [vmem:[%s3542_s0 + $0x238] sm:$0xf]  ;;  %1115 = vst.msk [vmem:[#allocation2 + $0x24] sm:$0xf] %vm1105_vm0, %v1050_v16  ;;  %v794_v28 = vmax.bf16 %v1517_v13, %v665_v17  ;;  %v1645_v29 = vld [vmem:[%s3542_s0 + $0x82c] sm:$0xf] }
  0x2d   :  { %v1518_v30 = vld [vmem:[%s3542_s0 + $0x630] sm:$0xf]  ;;  %v409_v31 = vmax.bf16 %v1327_v15, %v280_v19  ;;  %v1328_v32 = vld [vmem:[%s3542_s0 + $0x338] sm:$0xf]  ;;  %v1051_v33 = vmax.bf16 %v1644_v12, %v922_v22  ;;  %v1455_v35 = vld [vmem:[%s3542_s0 + $0x534] sm:$0xf] }
  0x2e   :  { %v666_v34 = vmax.bf16 %v1454_v18, %v537_v24  ;;  %v281_v36 = vmax.bf16 %v1264_v27, %v152_v26  ;;  %v24_v37 = vld [vmem:[%s3542_s0 + $0x3c] sm:$0xf]  ;;  %v923_v39 = vmax.bf16 %v1581_v23, %v794_v28  ;;  %v1582_v40 = vld [vmem:[%s3542_s0 + $0x730] sm:$0xf]  ;;  %v1392_v42 = vld [vmem:[%s3542_s0 + $0x438] sm:$0xf] }
  0x2f   :  { %v1201_v38 = vld [vmem:[%s3542_s0 + $0x13c] sm:$0xf]  ;;  %v538_v41 = vmax.bf16 %v1391_v25, %v409_v31  ;;  %1116 = vst.msk [vmem:[#allocation2 + $0x28] sm:$0xf] %vm1105_vm0, %v1051_v33  ;;  %v1646_v46 = vld [vmem:[%s3542_s0 + $0x830] sm:$0xf] }
  0x30   :  { %v153_v43 = vmax.bf16 %v1201_v38, %v24_v37  ;;  %v1265_v44 = vld [vmem:[%s3542_s0 + $0x23c] sm:$0xf]  ;;  %v795_v45 = vmax.bf16 %v1518_v30, %v666_v34  ;;  %v1519_v47 = vld [vmem:[%s3542_s0 + $0x634] sm:$0xf]  ;;  %v410_v48 = vmax.bf16 %v1328_v32, %v281_v36  ;;  %v1052_v50 = vmax.bf16 %v1645_v29, %v923_v39  ;;  %v1456_v52 = vld [vmem:[%s3542_s0 + $0x538] sm:$0xf] }
  0x31   :  { %v1329_v49 = vld [vmem:[%s3542_s0 + $0x33c] sm:$0xf]  ;;  %v667_v51 = vmax.bf16 %v1455_v35, %v538_v41  ;;  %v25_v54 = vld [vmem:[%s3542_s0 + $0x40] sm:$0xf]  ;;  %v1583_v57 = vld [vmem:[%s3542_s0 + $0x734] sm:$0xf] }
  0x32   :  { %v282_v53 = vmax.bf16 %v1265_v44, %v153_v43  ;;  %v1202_v55 = vld [vmem:[%s3542_s0 + $0x140] sm:$0xf]  ;;  %v924_v56 = vmax.bf16 %v1582_v40, %v795_v45  ;;  %v539_v58 = vmax.bf16 %v1392_v42, %v410_v48  ;;  %v1393_v59 = vld [vmem:[%s3542_s0 + $0x43c] sm:$0xf]  ;;  %1117 = vst.msk [vmem:[#allocation2 + $0x2c] sm:$0xf] %vm1105_vm0, %v1052_v50 }
  0x33   :  { %v154_v60 = vmax.bf16 %v1202_v55, %v25_v54  ;;  %v1266_v61 = vld [vmem:[%s3542_s0 + $0x240] sm:$0xf]  ;;  %v796_v62 = vmax.bf16 %v1519_v47, %v667_v51  ;;  %v1647_v63 = vld [vmem:[%s3542_s0 + $0x834] sm:$0xf]  ;;  %v1520_v0 = vld [vmem:[%s3542_s0 + $0x638] sm:$0xf] }
  0x34   :  { %v411_v1 = vmax.bf16 %v1329_v49, %v282_v53  ;;  %v1330_v2 = vld [vmem:[%s3542_s0 + $0x340] sm:$0xf]  ;;  %v1053_v3 = vmax.bf16 %v1646_v46, %v924_v56  ;;  %v668_v4 = vmax.bf16 %v1456_v52, %v539_v58  ;;  %v1457_v5 = vld [vmem:[%s3542_s0 + $0x53c] sm:$0xf]  ;;  %v26_v7 = vld [vmem:[%s3542_s0 + $0x44] sm:$0xf] }
  0x35   :  { %v283_v6 = vmax.bf16 %v1266_v61, %v154_v60  ;;  %v1203_v8 = vld [vmem:[%s3542_s0 + $0x144] sm:$0xf]  ;;  %v925_v9 = vmax.bf16 %v1583_v57, %v796_v62  ;;  %v1584_v10 = vld [vmem:[%s3542_s0 + $0x738] sm:$0xf]  ;;  %v1394_v12 = vld [vmem:[%s3542_s0 + $0x440] sm:$0xf] }
  0x36   :  { %v540_v11 = vmax.bf16 %v1393_v59, %v411_v1  ;;  %v155_v13 = vmax.bf16 %v1203_v8, %v26_v7  ;;  %v1267_v14 = vld [vmem:[%s3542_s0 + $0x244] sm:$0xf]  ;;  %1118 = vst.msk [vmem:[#allocation2 + $0x30] sm:$0xf] %vm1105_vm0, %v1053_v3  ;;  %v797_v15 = vmax.bf16 %v1520_v0, %v668_v4  ;;  %v1648_v16 = vld [vmem:[%s3542_s0 + $0x838] sm:$0xf] }
  0x37   :  { %v1521_v17 = vld [vmem:[%s3542_s0 + $0x63c] sm:$0xf]  ;;  %v412_v18 = vmax.bf16 %v1330_v2, %v283_v6  ;;  %v1331_v19 = vld [vmem:[%s3542_s0 + $0x344] sm:$0xf]  ;;  %v1054_v20 = vmax.bf16 %v1647_v63, %v925_v9  ;;  %v1458_v22 = vld [vmem:[%s3542_s0 + $0x540] sm:$0xf] }
  0x38   :  { %v669_v21 = vmax.bf16 %v1457_v5, %v540_v11  ;;  %v284_v23 = vmax.bf16 %v1267_v14, %v155_v13  ;;  %v27_v24 = vld [vmem:[%s3542_s0 + $0x48] sm:$0xf]  ;;  %v926_v26 = vmax.bf16 %v1584_v10, %v797_v15  ;;  %v1585_v27 = vld [vmem:[%s3542_s0 + $0x73c] sm:$0xf]  ;;  %v1395_v29 = vld [vmem:[%s3542_s0 + $0x444] sm:$0xf] }
  0x39   :  { %v1204_v25 = vld [vmem:[%s3542_s0 + $0x148] sm:$0xf]  ;;  %v541_v28 = vmax.bf16 %v1394_v12, %v412_v18  ;;  %1119 = vst.msk [vmem:[#allocation2 + $0x34] sm:$0xf] %vm1105_vm0, %v1054_v20  ;;  %v1649_v33 = vld [vmem:[%s3542_s0 + $0x83c] sm:$0xf] }
  0x3a   :  { %v156_v30 = vmax.bf16 %v1204_v25, %v27_v24  ;;  %v1268_v31 = vld [vmem:[%s3542_s0 + $0x248] sm:$0xf]  ;;  %v798_v32 = vmax.bf16 %v1521_v17, %v669_v21  ;;  %v1522_v34 = vld [vmem:[%s3542_s0 + $0x640] sm:$0xf]  ;;  %v413_v35 = vmax.bf16 %v1331_v19, %v284_v23  ;;  %v1055_v37 = vmax.bf16 %v1648_v16, %v926_v26  ;;  %v1459_v39 = vld [vmem:[%s3542_s0 + $0x544] sm:$0xf] }
  0x3b   :  { %v1332_v36 = vld [vmem:[%s3542_s0 + $0x348] sm:$0xf]  ;;  %v670_v38 = vmax.bf16 %v1458_v22, %v541_v28  ;;  %v28_v41 = vld [vmem:[%s3542_s0 + $0x4c] sm:$0xf]  ;;  %v1586_v44 = vld [vmem:[%s3542_s0 + $0x740] sm:$0xf] }
  0x3c   :  { %v285_v40 = vmax.bf16 %v1268_v31, %v156_v30  ;;  %v1205_v42 = vld [vmem:[%s3542_s0 + $0x14c] sm:$0xf]  ;;  %v927_v43 = vmax.bf16 %v1585_v27, %v798_v32  ;;  %v542_v45 = vmax.bf16 %v1395_v29, %v413_v35  ;;  %v1396_v46 = vld [vmem:[%s3542_s0 + $0x448] sm:$0xf]  ;;  %1120 = vst.msk [vmem:[#allocation2 + $0x38] sm:$0xf] %vm1105_vm0, %v1055_v37 }
  0x3d   :  { %v157_v47 = vmax.bf16 %v1205_v42, %v28_v41  ;;  %v1269_v48 = vld [vmem:[%s3542_s0 + $0x24c] sm:$0xf]  ;;  %v799_v49 = vmax.bf16 %v1522_v34, %v670_v38  ;;  %v1650_v50 = vld [vmem:[%s3542_s0 + $0x840] sm:$0xf]  ;;  %v1523_v51 = vld [vmem:[%s3542_s0 + $0x644] sm:$0xf] }
  0x3e   :  { %v414_v52 = vmax.bf16 %v1332_v36, %v285_v40  ;;  %v1333_v53 = vld [vmem:[%s3542_s0 + $0x34c] sm:$0xf]  ;;  %v1056_v54 = vmax.bf16 %v1649_v33, %v927_v43  ;;  %v671_v55 = vmax.bf16 %v1459_v39, %v542_v45  ;;  %v1460_v56 = vld [vmem:[%s3542_s0 + $0x548] sm:$0xf]  ;;  %v29_v58 = vld [vmem:[%s3542_s0 + $0x50] sm:$0xf] }
  0x3f   :  { %v286_v57 = vmax.bf16 %v1269_v48, %v157_v47  ;;  %v1206_v59 = vld [vmem:[%s3542_s0 + $0x150] sm:$0xf]  ;;  %v928_v60 = vmax.bf16 %v1586_v44, %v799_v49  ;;  %v1587_v61 = vld [vmem:[%s3542_s0 + $0x744] sm:$0xf]  ;;  %v1397_v63 = vld [vmem:[%s3542_s0 + $0x44c] sm:$0xf] }
  0x40   :  { %v543_v62 = vmax.bf16 %v1396_v46, %v414_v52  ;;  %v158_v0 = vmax.bf16 %v1206_v59, %v29_v58  ;;  %v1270_v1 = vld [vmem:[%s3542_s0 + $0x250] sm:$0xf]  ;;  %1121 = vst.msk [vmem:[#allocation2 + $0x3c] sm:$0xf] %vm1105_vm0, %v1056_v54  ;;  %v800_v2 = vmax.bf16 %v1523_v51, %v671_v55  ;;  %v1651_v3 = vld [vmem:[%s3542_s0 + $0x844] sm:$0xf] }
  0x41   :  { %v1524_v4 = vld [vmem:[%s3542_s0 + $0x648] sm:$0xf]  ;;  %v415_v5 = vmax.bf16 %v1333_v53, %v286_v57  ;;  %v1334_v6 = vld [vmem:[%s3542_s0 + $0x350] sm:$0xf]  ;;  %v1057_v7 = vmax.bf16 %v1650_v50, %v928_v60  ;;  %v1461_v9 = vld [vmem:[%s3542_s0 + $0x54c] sm:$0xf] }
  0x42   :  { %v672_v8 = vmax.bf16 %v1460_v56, %v543_v62  ;;  %v287_v10 = vmax.bf16 %v1270_v1, %v158_v0  ;;  %v30_v11 = vld [vmem:[%s3542_s0 + $0x54] sm:$0xf]  ;;  %v929_v13 = vmax.bf16 %v1587_v61, %v800_v2  ;;  %v1588_v14 = vld [vmem:[%s3542_s0 + $0x748] sm:$0xf]  ;;  %v1398_v16 = vld [vmem:[%s3542_s0 + $0x450] sm:$0xf] }
  0x43   :  { %v1207_v12 = vld [vmem:[%s3542_s0 + $0x154] sm:$0xf]  ;;  %v544_v15 = vmax.bf16 %v1397_v63, %v415_v5  ;;  %1122 = vst.msk [vmem:[#allocation2 + $0x40] sm:$0xf] %vm1105_vm0, %v1057_v7  ;;  %v1652_v20 = vld [vmem:[%s3542_s0 + $0x848] sm:$0xf] }
  0x44   :  { %v159_v17 = vmax.bf16 %v1207_v12, %v30_v11  ;;  %v1271_v18 = vld [vmem:[%s3542_s0 + $0x254] sm:$0xf]  ;;  %v801_v19 = vmax.bf16 %v1524_v4, %v672_v8  ;;  %v1525_v21 = vld [vmem:[%s3542_s0 + $0x64c] sm:$0xf]  ;;  %v416_v22 = vmax.bf16 %v1334_v6, %v287_v10  ;;  %v1058_v24 = vmax.bf16 %v1651_v3, %v929_v13  ;;  %v1462_v26 = vld [vmem:[%s3542_s0 + $0x550] sm:$0xf] }
  0x45   :  { %v1335_v23 = vld [vmem:[%s3542_s0 + $0x354] sm:$0xf]  ;;  %v673_v25 = vmax.bf16 %v1461_v9, %v544_v15  ;;  %v31_v28 = vld [vmem:[%s3542_s0 + $0x58] sm:$0xf]  ;;  %v1589_v31 = vld [vmem:[%s3542_s0 + $0x74c] sm:$0xf] }
  0x46   :  { %v288_v27 = vmax.bf16 %v1271_v18, %v159_v17  ;;  %v1208_v29 = vld [vmem:[%s3542_s0 + $0x158] sm:$0xf]  ;;  %v930_v30 = vmax.bf16 %v1588_v14, %v801_v19  ;;  %v545_v32 = vmax.bf16 %v1398_v16, %v416_v22  ;;  %v1399_v33 = vld [vmem:[%s3542_s0 + $0x454] sm:$0xf]  ;;  %1123 = vst.msk [vmem:[#allocation2 + $0x44] sm:$0xf] %vm1105_vm0, %v1058_v24 }
  0x47   :  { %v160_v34 = vmax.bf16 %v1208_v29, %v31_v28  ;;  %v1272_v35 = vld [vmem:[%s3542_s0 + $0x258] sm:$0xf]  ;;  %v802_v36 = vmax.bf16 %v1525_v21, %v673_v25  ;;  %v1653_v37 = vld [vmem:[%s3542_s0 + $0x84c] sm:$0xf]  ;;  %v1526_v38 = vld [vmem:[%s3542_s0 + $0x650] sm:$0xf] }
  0x48   :  { %v417_v39 = vmax.bf16 %v1335_v23, %v288_v27  ;;  %v1336_v40 = vld [vmem:[%s3542_s0 + $0x358] sm:$0xf]  ;;  %v1059_v41 = vmax.bf16 %v1652_v20, %v930_v30  ;;  %v674_v42 = vmax.bf16 %v1462_v26, %v545_v32  ;;  %v1463_v43 = vld [vmem:[%s3542_s0 + $0x554] sm:$0xf]  ;;  %v32_v45 = vld [vmem:[%s3542_s0 + $0x5c] sm:$0xf] }
  0x49   :  { %v289_v44 = vmax.bf16 %v1272_v35, %v160_v34  ;;  %v1209_v46 = vld [vmem:[%s3542_s0 + $0x15c] sm:$0xf]  ;;  %v931_v47 = vmax.bf16 %v1589_v31, %v802_v36  ;;  %v1590_v48 = vld [vmem:[%s3542_s0 + $0x750] sm:$0xf]  ;;  %v1400_v50 = vld [vmem:[%s3542_s0 + $0x458] sm:$0xf] }
  0x4a   :  { %v546_v49 = vmax.bf16 %v1399_v33, %v417_v39  ;;  %v161_v51 = vmax.bf16 %v1209_v46, %v32_v45  ;;  %v1273_v52 = vld [vmem:[%s3542_s0 + $0x25c] sm:$0xf]  ;;  %1124 = vst.msk [vmem:[#allocation2 + $0x48] sm:$0xf] %vm1105_vm0, %v1059_v41  ;;  %v803_v53 = vmax.bf16 %v1526_v38, %v674_v42  ;;  %v1654_v54 = vld [vmem:[%s3542_s0 + $0x850] sm:$0xf] }
  0x4b   :  { %v1527_v55 = vld [vmem:[%s3542_s0 + $0x654] sm:$0xf]  ;;  %v418_v56 = vmax.bf16 %v1336_v40, %v289_v44  ;;  %v1337_v57 = vld [vmem:[%s3542_s0 + $0x35c] sm:$0xf]  ;;  %v1060_v58 = vmax.bf16 %v1653_v37, %v931_v47  ;;  %v1464_v60 = vld [vmem:[%s3542_s0 + $0x558] sm:$0xf] }
  0x4c   :  { %v675_v59 = vmax.bf16 %v1463_v43, %v546_v49  ;;  %v290_v61 = vmax.bf16 %v1273_v52, %v161_v51  ;;  %v33_v62 = vld [vmem:[%s3542_s0 + $0x60] sm:$0xf]  ;;  %v932_v0 = vmax.bf16 %v1590_v48, %v803_v53  ;;  %v1591_v1 = vld [vmem:[%s3542_s0 + $0x754] sm:$0xf]  ;;  %v1401_v3 = vld [vmem:[%s3542_s0 + $0x45c] sm:$0xf] }
  0x4d   :  { %v1210_v63 = vld [vmem:[%s3542_s0 + $0x160] sm:$0xf]  ;;  %v547_v2 = vmax.bf16 %v1400_v50, %v418_v56  ;;  %1125 = vst.msk [vmem:[#allocation2 + $0x4c] sm:$0xf] %vm1105_vm0, %v1060_v58  ;;  %v1655_v7 = vld [vmem:[%s3542_s0 + $0x854] sm:$0xf] }
  0x4e   :  { %v162_v4 = vmax.bf16 %v1210_v63, %v33_v62  ;;  %v1274_v5 = vld [vmem:[%s3542_s0 + $0x260] sm:$0xf]  ;;  %v804_v6 = vmax.bf16 %v1527_v55, %v675_v59  ;;  %v1528_v8 = vld [vmem:[%s3542_s0 + $0x658] sm:$0xf]  ;;  %v419_v9 = vmax.bf16 %v1337_v57, %v290_v61  ;;  %v1061_v11 = vmax.bf16 %v1654_v54, %v932_v0  ;;  %v1465_v13 = vld [vmem:[%s3542_s0 + $0x55c] sm:$0xf] }
  0x4f   :  { %v1338_v10 = vld [vmem:[%s3542_s0 + $0x360] sm:$0xf]  ;;  %v676_v12 = vmax.bf16 %v1464_v60, %v547_v2  ;;  %v34_v15 = vld [vmem:[%s3542_s0 + $0x64] sm:$0xf]  ;;  %v1592_v18 = vld [vmem:[%s3542_s0 + $0x758] sm:$0xf] }
  0x50   :  { %v291_v14 = vmax.bf16 %v1274_v5, %v162_v4  ;;  %v1211_v16 = vld [vmem:[%s3542_s0 + $0x164] sm:$0xf]  ;;  %v933_v17 = vmax.bf16 %v1591_v1, %v804_v6  ;;  %v548_v19 = vmax.bf16 %v1401_v3, %v419_v9  ;;  %v1402_v20 = vld [vmem:[%s3542_s0 + $0x460] sm:$0xf]  ;;  %1126 = vst.msk [vmem:[#allocation2 + $0x50] sm:$0xf] %vm1105_vm0, %v1061_v11 }
  0x51   :  { %v163_v21 = vmax.bf16 %v1211_v16, %v34_v15  ;;  %v1275_v22 = vld [vmem:[%s3542_s0 + $0x264] sm:$0xf]  ;;  %v805_v23 = vmax.bf16 %v1528_v8, %v676_v12  ;;  %v1656_v24 = vld [vmem:[%s3542_s0 + $0x858] sm:$0xf]  ;;  %v1529_v25 = vld [vmem:[%s3542_s0 + $0x65c] sm:$0xf] }
  0x52   :  { %v420_v26 = vmax.bf16 %v1338_v10, %v291_v14  ;;  %v1339_v27 = vld [vmem:[%s3542_s0 + $0x364] sm:$0xf]  ;;  %v1062_v28 = vmax.bf16 %v1655_v7, %v933_v17  ;;  %v677_v29 = vmax.bf16 %v1465_v13, %v548_v19  ;;  %v1466_v30 = vld [vmem:[%s3542_s0 + $0x560] sm:$0xf]  ;;  %v35_v32 = vld [vmem:[%s3542_s0 + $0x68] sm:$0xf] }
  0x53   :  { %v292_v31 = vmax.bf16 %v1275_v22, %v163_v21  ;;  %v1212_v33 = vld [vmem:[%s3542_s0 + $0x168] sm:$0xf]  ;;  %v934_v34 = vmax.bf16 %v1592_v18, %v805_v23  ;;  %v1593_v35 = vld [vmem:[%s3542_s0 + $0x75c] sm:$0xf]  ;;  %v1403_v37 = vld [vmem:[%s3542_s0 + $0x464] sm:$0xf] }
  0x54   :  { %v549_v36 = vmax.bf16 %v1402_v20, %v420_v26  ;;  %v164_v38 = vmax.bf16 %v1212_v33, %v35_v32  ;;  %v1276_v39 = vld [vmem:[%s3542_s0 + $0x268] sm:$0xf]  ;;  %1127 = vst.msk [vmem:[#allocation2 + $0x54] sm:$0xf] %vm1105_vm0, %v1062_v28  ;;  %v806_v40 = vmax.bf16 %v1529_v25, %v677_v29  ;;  %v1657_v41 = vld [vmem:[%s3542_s0 + $0x85c] sm:$0xf] }
  0x55   :  { %v1530_v42 = vld [vmem:[%s3542_s0 + $0x660] sm:$0xf]  ;;  %v421_v43 = vmax.bf16 %v1339_v27, %v292_v31  ;;  %v1340_v44 = vld [vmem:[%s3542_s0 + $0x368] sm:$0xf]  ;;  %v1063_v45 = vmax.bf16 %v1656_v24, %v934_v34  ;;  %v1467_v47 = vld [vmem:[%s3542_s0 + $0x564] sm:$0xf] }
  0x56   :  { %v678_v46 = vmax.bf16 %v1466_v30, %v549_v36  ;;  %v293_v48 = vmax.bf16 %v1276_v39, %v164_v38  ;;  %v36_v49 = vld [vmem:[%s3542_s0 + $0x6c] sm:$0xf]  ;;  %v935_v51 = vmax.bf16 %v1593_v35, %v806_v40  ;;  %v1594_v52 = vld [vmem:[%s3542_s0 + $0x760] sm:$0xf]  ;;  %v1404_v54 = vld [vmem:[%s3542_s0 + $0x468] sm:$0xf] }
  0x57   :  { %v1213_v50 = vld [vmem:[%s3542_s0 + $0x16c] sm:$0xf]  ;;  %v550_v53 = vmax.bf16 %v1403_v37, %v421_v43  ;;  %1128 = vst.msk [vmem:[#allocation2 + $0x58] sm:$0xf] %vm1105_vm0, %v1063_v45  ;;  %v1658_v58 = vld [vmem:[%s3542_s0 + $0x860] sm:$0xf] }
  0x58   :  { %v165_v55 = vmax.bf16 %v1213_v50, %v36_v49  ;;  %v1277_v56 = vld [vmem:[%s3542_s0 + $0x26c] sm:$0xf]  ;;  %v807_v57 = vmax.bf16 %v1530_v42, %v678_v46  ;;  %v1531_v59 = vld [vmem:[%s3542_s0 + $0x664] sm:$0xf]  ;;  %v422_v60 = vmax.bf16 %v1340_v44, %v293_v48  ;;  %v1064_v62 = vmax.bf16 %v1657_v41, %v935_v51  ;;  %v1468_v0 = vld [vmem:[%s3542_s0 + $0x568] sm:$0xf] }
  0x59   :  { %v1341_v61 = vld [vmem:[%s3542_s0 + $0x36c] sm:$0xf]  ;;  %v679_v63 = vmax.bf16 %v1467_v47, %v550_v53  ;;  %v37_v2 = vld [vmem:[%s3542_s0 + $0x70] sm:$0xf]  ;;  %v1595_v5 = vld [vmem:[%s3542_s0 + $0x764] sm:$0xf] }
  0x5a   :  { %v294_v1 = vmax.bf16 %v1277_v56, %v165_v55  ;;  %v1214_v3 = vld [vmem:[%s3542_s0 + $0x170] sm:$0xf]  ;;  %v936_v4 = vmax.bf16 %v1594_v52, %v807_v57  ;;  %v551_v6 = vmax.bf16 %v1404_v54, %v422_v60  ;;  %v1405_v7 = vld [vmem:[%s3542_s0 + $0x46c] sm:$0xf]  ;;  %1129 = vst.msk [vmem:[#allocation2 + $0x5c] sm:$0xf] %vm1105_vm0, %v1064_v62 }
  0x5b   :  { %v166_v8 = vmax.bf16 %v1214_v3, %v37_v2  ;;  %v1278_v9 = vld [vmem:[%s3542_s0 + $0x270] sm:$0xf]  ;;  %v808_v10 = vmax.bf16 %v1531_v59, %v679_v63  ;;  %v1659_v11 = vld [vmem:[%s3542_s0 + $0x864] sm:$0xf]  ;;  %v1532_v12 = vld [vmem:[%s3542_s0 + $0x668] sm:$0xf] }
  0x5c   :  { %v423_v13 = vmax.bf16 %v1341_v61, %v294_v1  ;;  %v1342_v14 = vld [vmem:[%s3542_s0 + $0x370] sm:$0xf]  ;;  %v1065_v15 = vmax.bf16 %v1658_v58, %v936_v4  ;;  %v680_v16 = vmax.bf16 %v1468_v0, %v551_v6  ;;  %v1469_v17 = vld [vmem:[%s3542_s0 + $0x56c] sm:$0xf]  ;;  %v38_v19 = vld [vmem:[%s3542_s0 + $0x74] sm:$0xf] }
  0x5d   :  { %v295_v18 = vmax.bf16 %v1278_v9, %v166_v8  ;;  %v1215_v20 = vld [vmem:[%s3542_s0 + $0x174] sm:$0xf]  ;;  %v937_v21 = vmax.bf16 %v1595_v5, %v808_v10  ;;  %v1596_v22 = vld [vmem:[%s3542_s0 + $0x768] sm:$0xf]  ;;  %v1406_v24 = vld [vmem:[%s3542_s0 + $0x470] sm:$0xf] }
  0x5e   :  { %v552_v23 = vmax.bf16 %v1405_v7, %v423_v13  ;;  %v167_v25 = vmax.bf16 %v1215_v20, %v38_v19  ;;  %v1279_v26 = vld [vmem:[%s3542_s0 + $0x274] sm:$0xf]  ;;  %1130 = vst.msk [vmem:[#allocation2 + $0x60] sm:$0xf] %vm1105_vm0, %v1065_v15  ;;  %v809_v27 = vmax.bf16 %v1532_v12, %v680_v16  ;;  %v1660_v28 = vld [vmem:[%s3542_s0 + $0x868] sm:$0xf] }
  0x5f   :  { %v1533_v29 = vld [vmem:[%s3542_s0 + $0x66c] sm:$0xf]  ;;  %v424_v30 = vmax.bf16 %v1342_v14, %v295_v18  ;;  %v1343_v31 = vld [vmem:[%s3542_s0 + $0x374] sm:$0xf]  ;;  %v1066_v32 = vmax.bf16 %v1659_v11, %v937_v21  ;;  %v1470_v34 = vld [vmem:[%s3542_s0 + $0x570] sm:$0xf] }
  0x60   :  { %v681_v33 = vmax.bf16 %v1469_v17, %v552_v23  ;;  %v296_v35 = vmax.bf16 %v1279_v26, %v167_v25  ;;  %v39_v36 = vld [vmem:[%s3542_s0 + $0x78] sm:$0xf]  ;;  %v938_v38 = vmax.bf16 %v1596_v22, %v809_v27  ;;  %v1597_v39 = vld [vmem:[%s3542_s0 + $0x76c] sm:$0xf]  ;;  %v1407_v41 = vld [vmem:[%s3542_s0 + $0x474] sm:$0xf] }
  0x61   :  { %v1216_v37 = vld [vmem:[%s3542_s0 + $0x178] sm:$0xf]  ;;  %v553_v40 = vmax.bf16 %v1406_v24, %v424_v30  ;;  %1131 = vst.msk [vmem:[#allocation2 + $0x64] sm:$0xf] %vm1105_vm0, %v1066_v32  ;;  %v1661_v45 = vld [vmem:[%s3542_s0 + $0x86c] sm:$0xf] }
  0x62   :  { %v168_v42 = vmax.bf16 %v1216_v37, %v39_v36  ;;  %v1280_v43 = vld [vmem:[%s3542_s0 + $0x278] sm:$0xf]  ;;  %v810_v44 = vmax.bf16 %v1533_v29, %v681_v33  ;;  %v1534_v46 = vld [vmem:[%s3542_s0 + $0x670] sm:$0xf]  ;;  %v425_v47 = vmax.bf16 %v1343_v31, %v296_v35  ;;  %v1067_v49 = vmax.bf16 %v1660_v28, %v938_v38  ;;  %v1471_v51 = vld [vmem:[%s3542_s0 + $0x574] sm:$0xf] }
  0x63   :  { %v1344_v48 = vld [vmem:[%s3542_s0 + $0x378] sm:$0xf]  ;;  %v682_v50 = vmax.bf16 %v1470_v34, %v553_v40  ;;  %v40_v53 = vld [vmem:[%s3542_s0 + $0x7c] sm:$0xf]  ;;  %v1598_v56 = vld [vmem:[%s3542_s0 + $0x770] sm:$0xf] }
  0x64   :  { %v297_v52 = vmax.bf16 %v1280_v43, %v168_v42  ;;  %v1217_v54 = vld [vmem:[%s3542_s0 + $0x17c] sm:$0xf]  ;;  %v939_v55 = vmax.bf16 %v1597_v39, %v810_v44  ;;  %v554_v57 = vmax.bf16 %v1407_v41, %v425_v47  ;;  %v1408_v58 = vld [vmem:[%s3542_s0 + $0x478] sm:$0xf]  ;;  %1132 = vst.msk [vmem:[#allocation2 + $0x68] sm:$0xf] %vm1105_vm0, %v1067_v49 }
  0x65   :  { %v169_v59 = vmax.bf16 %v1217_v54, %v40_v53  ;;  %v1281_v60 = vld [vmem:[%s3542_s0 + $0x27c] sm:$0xf]  ;;  %v811_v61 = vmax.bf16 %v1534_v46, %v682_v50  ;;  %v1662_v62 = vld [vmem:[%s3542_s0 + $0x870] sm:$0xf]  ;;  %v1535_v63 = vld [vmem:[%s3542_s0 + $0x674] sm:$0xf] }
  0x66   :  { %v426_v0 = vmax.bf16 %v1344_v48, %v297_v52  ;;  %v1345_v1 = vld [vmem:[%s3542_s0 + $0x37c] sm:$0xf]  ;;  %v1068_v2 = vmax.bf16 %v1661_v45, %v939_v55  ;;  %v683_v3 = vmax.bf16 %v1471_v51, %v554_v57  ;;  %v1472_v4 = vld [vmem:[%s3542_s0 + $0x578] sm:$0xf]  ;;  %v41_v6 = vld [vmem:[%s3542_s0 + $0x80] sm:$0xf] }
  0x67   :  { %v298_v5 = vmax.bf16 %v1281_v60, %v169_v59  ;;  %v1218_v7 = vld [vmem:[%s3542_s0 + $0x180] sm:$0xf]  ;;  %v940_v8 = vmax.bf16 %v1598_v56, %v811_v61  ;;  %v1599_v9 = vld [vmem:[%s3542_s0 + $0x774] sm:$0xf]  ;;  %v1409_v11 = vld [vmem:[%s3542_s0 + $0x47c] sm:$0xf] }
  0x68   :  { %v555_v10 = vmax.bf16 %v1408_v58, %v426_v0  ;;  %v170_v12 = vmax.bf16 %v1218_v7, %v41_v6  ;;  %v1282_v13 = vld [vmem:[%s3542_s0 + $0x280] sm:$0xf]  ;;  %1133 = vst.msk [vmem:[#allocation2 + $0x6c] sm:$0xf] %vm1105_vm0, %v1068_v2  ;;  %v812_v14 = vmax.bf16 %v1535_v63, %v683_v3  ;;  %v1663_v15 = vld [vmem:[%s3542_s0 + $0x874] sm:$0xf] }
  0x69   :  { %v1536_v16 = vld [vmem:[%s3542_s0 + $0x678] sm:$0xf]  ;;  %v427_v17 = vmax.bf16 %v1345_v1, %v298_v5  ;;  %v1346_v18 = vld [vmem:[%s3542_s0 + $0x380] sm:$0xf]  ;;  %v1069_v19 = vmax.bf16 %v1662_v62, %v940_v8  ;;  %v1473_v21 = vld [vmem:[%s3542_s0 + $0x57c] sm:$0xf] }
  0x6a   :  { %v684_v20 = vmax.bf16 %v1472_v4, %v555_v10  ;;  %v299_v22 = vmax.bf16 %v1282_v13, %v170_v12  ;;  %v42_v23 = vld [vmem:[%s3542_s0 + $0x84] sm:$0xf]  ;;  %v941_v25 = vmax.bf16 %v1599_v9, %v812_v14  ;;  %v1600_v26 = vld [vmem:[%s3542_s0 + $0x778] sm:$0xf]  ;;  %v1410_v28 = vld [vmem:[%s3542_s0 + $0x480] sm:$0xf] }
  0x6b   :  { %v1219_v24 = vld [vmem:[%s3542_s0 + $0x184] sm:$0xf]  ;;  %v556_v27 = vmax.bf16 %v1409_v11, %v427_v17  ;;  %1134 = vst.msk [vmem:[#allocation2 + $0x70] sm:$0xf] %vm1105_vm0, %v1069_v19  ;;  %v1664_v32 = vld [vmem:[%s3542_s0 + $0x878] sm:$0xf] }
  0x6c   :  { %v171_v29 = vmax.bf16 %v1219_v24, %v42_v23  ;;  %v1283_v30 = vld [vmem:[%s3542_s0 + $0x284] sm:$0xf]  ;;  %v813_v31 = vmax.bf16 %v1536_v16, %v684_v20  ;;  %v1537_v33 = vld [vmem:[%s3542_s0 + $0x67c] sm:$0xf]  ;;  %v428_v34 = vmax.bf16 %v1346_v18, %v299_v22  ;;  %v1070_v36 = vmax.bf16 %v1663_v15, %v941_v25  ;;  %v1474_v38 = vld [vmem:[%s3542_s0 + $0x580] sm:$0xf] }
  0x6d   :  { %v1347_v35 = vld [vmem:[%s3542_s0 + $0x384] sm:$0xf]  ;;  %v685_v37 = vmax.bf16 %v1473_v21, %v556_v27  ;;  %v43_v40 = vld [vmem:[%s3542_s0 + $0x88] sm:$0xf]  ;;  %v1601_v43 = vld [vmem:[%s3542_s0 + $0x77c] sm:$0xf] }
  0x6e   :  { %v300_v39 = vmax.bf16 %v1283_v30, %v171_v29  ;;  %v1220_v41 = vld [vmem:[%s3542_s0 + $0x188] sm:$0xf]  ;;  %v942_v42 = vmax.bf16 %v1600_v26, %v813_v31  ;;  %v557_v44 = vmax.bf16 %v1410_v28, %v428_v34  ;;  %v1411_v45 = vld [vmem:[%s3542_s0 + $0x484] sm:$0xf]  ;;  %1135 = vst.msk [vmem:[#allocation2 + $0x74] sm:$0xf] %vm1105_vm0, %v1070_v36 }
  0x6f   :  { %v172_v46 = vmax.bf16 %v1220_v41, %v43_v40  ;;  %v1284_v47 = vld [vmem:[%s3542_s0 + $0x288] sm:$0xf]  ;;  %v814_v48 = vmax.bf16 %v1537_v33, %v685_v37  ;;  %v1665_v49 = vld [vmem:[%s3542_s0 + $0x87c] sm:$0xf]  ;;  %v1538_v50 = vld [vmem:[%s3542_s0 + $0x680] sm:$0xf] }
  0x70   :  { %v429_v51 = vmax.bf16 %v1347_v35, %v300_v39  ;;  %v1348_v52 = vld [vmem:[%s3542_s0 + $0x388] sm:$0xf]  ;;  %v1071_v53 = vmax.bf16 %v1664_v32, %v942_v42  ;;  %v686_v54 = vmax.bf16 %v1474_v38, %v557_v44  ;;  %v1475_v55 = vld [vmem:[%s3542_s0 + $0x584] sm:$0xf]  ;;  %v44_v57 = vld [vmem:[%s3542_s0 + $0x8c] sm:$0xf] }
  0x71   :  { %v301_v56 = vmax.bf16 %v1284_v47, %v172_v46  ;;  %v1221_v58 = vld [vmem:[%s3542_s0 + $0x18c] sm:$0xf]  ;;  %v943_v59 = vmax.bf16 %v1601_v43, %v814_v48  ;;  %v1602_v60 = vld [vmem:[%s3542_s0 + $0x780] sm:$0xf]  ;;  %v1412_v62 = vld [vmem:[%s3542_s0 + $0x488] sm:$0xf] }
  0x72   :  { %v558_v61 = vmax.bf16 %v1411_v45, %v429_v51  ;;  %v173_v63 = vmax.bf16 %v1221_v58, %v44_v57  ;;  %v1285_v0 = vld [vmem:[%s3542_s0 + $0x28c] sm:$0xf]  ;;  %1136 = vst.msk [vmem:[#allocation2 + $0x78] sm:$0xf] %vm1105_vm0, %v1071_v53  ;;  %v815_v1 = vmax.bf16 %v1538_v50, %v686_v54  ;;  %v1666_v2 = vld [vmem:[%s3542_s0 + $0x880] sm:$0xf] }
  0x73   :  { %v1539_v3 = vld [vmem:[%s3542_s0 + $0x684] sm:$0xf]  ;;  %v430_v4 = vmax.bf16 %v1348_v52, %v301_v56  ;;  %v1349_v5 = vld [vmem:[%s3542_s0 + $0x38c] sm:$0xf]  ;;  %v1072_v6 = vmax.bf16 %v1665_v49, %v943_v59  ;;  %v1476_v8 = vld [vmem:[%s3542_s0 + $0x588] sm:$0xf] }
  0x74   :  { %v687_v7 = vmax.bf16 %v1475_v55, %v558_v61  ;;  %v302_v9 = vmax.bf16 %v1285_v0, %v173_v63  ;;  %v45_v10 = vld [vmem:[%s3542_s0 + $0x90] sm:$0xf]  ;;  %v944_v12 = vmax.bf16 %v1602_v60, %v815_v1  ;;  %v1603_v13 = vld [vmem:[%s3542_s0 + $0x784] sm:$0xf]  ;;  %v1413_v15 = vld [vmem:[%s3542_s0 + $0x48c] sm:$0xf] }
  0x75   :  { %v1222_v11 = vld [vmem:[%s3542_s0 + $0x190] sm:$0xf]  ;;  %v559_v14 = vmax.bf16 %v1412_v62, %v430_v4  ;;  %1137 = vst.msk [vmem:[#allocation2 + $0x7c] sm:$0xf] %vm1105_vm0, %v1072_v6  ;;  %v1667_v19 = vld [vmem:[%s3542_s0 + $0x884] sm:$0xf] }
  0x76   :  { %v174_v16 = vmax.bf16 %v1222_v11, %v45_v10  ;;  %v1286_v17 = vld [vmem:[%s3542_s0 + $0x290] sm:$0xf]  ;;  %v816_v18 = vmax.bf16 %v1539_v3, %v687_v7  ;;  %v1540_v20 = vld [vmem:[%s3542_s0 + $0x688] sm:$0xf]  ;;  %v431_v21 = vmax.bf16 %v1349_v5, %v302_v9  ;;  %v1073_v23 = vmax.bf16 %v1666_v2, %v944_v12  ;;  %v1477_v25 = vld [vmem:[%s3542_s0 + $0x58c] sm:$0xf] }
  0x77   :  { %v1350_v22 = vld [vmem:[%s3542_s0 + $0x390] sm:$0xf]  ;;  %v688_v24 = vmax.bf16 %v1476_v8, %v559_v14  ;;  %v46_v27 = vld [vmem:[%s3542_s0 + $0x94] sm:$0xf]  ;;  %v1604_v30 = vld [vmem:[%s3542_s0 + $0x788] sm:$0xf] }
  0x78   :  { %v303_v26 = vmax.bf16 %v1286_v17, %v174_v16  ;;  %v1223_v28 = vld [vmem:[%s3542_s0 + $0x194] sm:$0xf]  ;;  %v945_v29 = vmax.bf16 %v1603_v13, %v816_v18  ;;  %v560_v31 = vmax.bf16 %v1413_v15, %v431_v21  ;;  %v1414_v32 = vld [vmem:[%s3542_s0 + $0x490] sm:$0xf]  ;;  %1138 = vst.msk [vmem:[#allocation2 + $0x80] sm:$0xf] %vm1105_vm0, %v1073_v23 }
  0x79   :  { %v175_v33 = vmax.bf16 %v1223_v28, %v46_v27  ;;  %v1287_v34 = vld [vmem:[%s3542_s0 + $0x294] sm:$0xf]  ;;  %v817_v35 = vmax.bf16 %v1540_v20, %v688_v24  ;;  %v1668_v36 = vld [vmem:[%s3542_s0 + $0x888] sm:$0xf]  ;;  %v1541_v37 = vld [vmem:[%s3542_s0 + $0x68c] sm:$0xf] }
  0x7a   :  { %v432_v38 = vmax.bf16 %v1350_v22, %v303_v26  ;;  %v1351_v39 = vld [vmem:[%s3542_s0 + $0x394] sm:$0xf]  ;;  %v1074_v40 = vmax.bf16 %v1667_v19, %v945_v29  ;;  %v689_v41 = vmax.bf16 %v1477_v25, %v560_v31  ;;  %v1478_v42 = vld [vmem:[%s3542_s0 + $0x590] sm:$0xf]  ;;  %v47_v44 = vld [vmem:[%s3542_s0 + $0x98] sm:$0xf] }
  0x7b   :  { %v304_v43 = vmax.bf16 %v1287_v34, %v175_v33  ;;  %v1224_v45 = vld [vmem:[%s3542_s0 + $0x198] sm:$0xf]  ;;  %v946_v46 = vmax.bf16 %v1604_v30, %v817_v35  ;;  %v1605_v47 = vld [vmem:[%s3542_s0 + $0x78c] sm:$0xf]  ;;  %v1415_v49 = vld [vmem:[%s3542_s0 + $0x494] sm:$0xf] }
  0x7c   :  { %v561_v48 = vmax.bf16 %v1414_v32, %v432_v38  ;;  %v176_v50 = vmax.bf16 %v1224_v45, %v47_v44  ;;  %v1288_v51 = vld [vmem:[%s3542_s0 + $0x298] sm:$0xf]  ;;  %1139 = vst.msk [vmem:[#allocation2 + $0x84] sm:$0xf] %vm1105_vm0, %v1074_v40  ;;  %v818_v52 = vmax.bf16 %v1541_v37, %v689_v41  ;;  %v1669_v53 = vld [vmem:[%s3542_s0 + $0x88c] sm:$0xf] }
  0x7d   :  { %v1542_v54 = vld [vmem:[%s3542_s0 + $0x690] sm:$0xf]  ;;  %v433_v55 = vmax.bf16 %v1351_v39, %v304_v43  ;;  %v1352_v56 = vld [vmem:[%s3542_s0 + $0x398] sm:$0xf]  ;;  %v1075_v57 = vmax.bf16 %v1668_v36, %v946_v46  ;;  %v1479_v59 = vld [vmem:[%s3542_s0 + $0x594] sm:$0xf] }
  0x7e   :  { %v690_v58 = vmax.bf16 %v1478_v42, %v561_v48  ;;  %v305_v60 = vmax.bf16 %v1288_v51, %v176_v50  ;;  %v48_v61 = vld [vmem:[%s3542_s0 + $0x9c] sm:$0xf]  ;;  %v947_v63 = vmax.bf16 %v1605_v47, %v818_v52  ;;  %v1606_v0 = vld [vmem:[%s3542_s0 + $0x790] sm:$0xf]  ;;  %v1416_v2 = vld [vmem:[%s3542_s0 + $0x498] sm:$0xf] }
  0x7f   :  { %v1225_v62 = vld [vmem:[%s3542_s0 + $0x19c] sm:$0xf]  ;;  %v562_v1 = vmax.bf16 %v1415_v49, %v433_v55  ;;  %1140 = vst.msk [vmem:[#allocation2 + $0x88] sm:$0xf] %vm1105_vm0, %v1075_v57  ;;  %v1670_v6 = vld [vmem:[%s3542_s0 + $0x890] sm:$0xf] }
  0x80   :  { %v177_v3 = vmax.bf16 %v1225_v62, %v48_v61  ;;  %v1289_v4 = vld [vmem:[%s3542_s0 + $0x29c] sm:$0xf]  ;;  %v819_v5 = vmax.bf16 %v1542_v54, %v690_v58  ;;  %v1543_v7 = vld [vmem:[%s3542_s0 + $0x694] sm:$0xf]  ;;  %v434_v8 = vmax.bf16 %v1352_v56, %v305_v60  ;;  %v1076_v10 = vmax.bf16 %v1669_v53, %v947_v63  ;;  %v1480_v12 = vld [vmem:[%s3542_s0 + $0x598] sm:$0xf] }
  0x81   :  { %v1353_v9 = vld [vmem:[%s3542_s0 + $0x39c] sm:$0xf]  ;;  %v691_v11 = vmax.bf16 %v1479_v59, %v562_v1  ;;  %v49_v14 = vld [vmem:[%s3542_s0 + $0xa0] sm:$0xf]  ;;  %v1607_v17 = vld [vmem:[%s3542_s0 + $0x794] sm:$0xf] }
  0x82   :  { %v306_v13 = vmax.bf16 %v1289_v4, %v177_v3  ;;  %v1226_v15 = vld [vmem:[%s3542_s0 + $0x1a0] sm:$0xf]  ;;  %v948_v16 = vmax.bf16 %v1606_v0, %v819_v5  ;;  %v563_v18 = vmax.bf16 %v1416_v2, %v434_v8  ;;  %v1417_v19 = vld [vmem:[%s3542_s0 + $0x49c] sm:$0xf]  ;;  %1141 = vst.msk [vmem:[#allocation2 + $0x8c] sm:$0xf] %vm1105_vm0, %v1076_v10 }
  0x83   :  { %v178_v20 = vmax.bf16 %v1226_v15, %v49_v14  ;;  %v1290_v21 = vld [vmem:[%s3542_s0 + $0x2a0] sm:$0xf]  ;;  %v820_v22 = vmax.bf16 %v1543_v7, %v691_v11  ;;  %v1671_v23 = vld [vmem:[%s3542_s0 + $0x894] sm:$0xf]  ;;  %v1544_v24 = vld [vmem:[%s3542_s0 + $0x698] sm:$0xf] }
  0x84   :  { %v435_v25 = vmax.bf16 %v1353_v9, %v306_v13  ;;  %v1354_v26 = vld [vmem:[%s3542_s0 + $0x3a0] sm:$0xf]  ;;  %v1077_v27 = vmax.bf16 %v1670_v6, %v948_v16  ;;  %v692_v28 = vmax.bf16 %v1480_v12, %v563_v18  ;;  %v1481_v29 = vld [vmem:[%s3542_s0 + $0x59c] sm:$0xf]  ;;  %v50_v31 = vld [vmem:[%s3542_s0 + $0xa4] sm:$0xf] }
  0x85   :  { %v307_v30 = vmax.bf16 %v1290_v21, %v178_v20  ;;  %v1227_v32 = vld [vmem:[%s3542_s0 + $0x1a4] sm:$0xf]  ;;  %v949_v33 = vmax.bf16 %v1607_v17, %v820_v22  ;;  %v1608_v34 = vld [vmem:[%s3542_s0 + $0x798] sm:$0xf]  ;;  %v1418_v36 = vld [vmem:[%s3542_s0 + $0x4a0] sm:$0xf] }
  0x86   :  { %v564_v35 = vmax.bf16 %v1417_v19, %v435_v25  ;;  %v179_v37 = vmax.bf16 %v1227_v32, %v50_v31  ;;  %v1291_v38 = vld [vmem:[%s3542_s0 + $0x2a4] sm:$0xf]  ;;  %1142 = vst.msk [vmem:[#allocation2 + $0x90] sm:$0xf] %vm1105_vm0, %v1077_v27  ;;  %v821_v39 = vmax.bf16 %v1544_v24, %v692_v28  ;;  %v1672_v40 = vld [vmem:[%s3542_s0 + $0x898] sm:$0xf] }
  0x87   :  { %v1545_v41 = vld [vmem:[%s3542_s0 + $0x69c] sm:$0xf]  ;;  %v436_v42 = vmax.bf16 %v1354_v26, %v307_v30  ;;  %v1355_v43 = vld [vmem:[%s3542_s0 + $0x3a4] sm:$0xf]  ;;  %v1078_v44 = vmax.bf16 %v1671_v23, %v949_v33  ;;  %v1482_v46 = vld [vmem:[%s3542_s0 + $0x5a0] sm:$0xf] }
  0x88   :  { %v693_v45 = vmax.bf16 %v1481_v29, %v564_v35  ;;  %v308_v47 = vmax.bf16 %v1291_v38, %v179_v37  ;;  %v51_v48 = vld [vmem:[%s3542_s0 + $0xa8] sm:$0xf]  ;;  %v950_v50 = vmax.bf16 %v1608_v34, %v821_v39  ;;  %v1609_v51 = vld [vmem:[%s3542_s0 + $0x79c] sm:$0xf]  ;;  %v1419_v53 = vld [vmem:[%s3542_s0 + $0x4a4] sm:$0xf] }
  0x89   :  { %v1228_v49 = vld [vmem:[%s3542_s0 + $0x1a8] sm:$0xf]  ;;  %v565_v52 = vmax.bf16 %v1418_v36, %v436_v42  ;;  %1143 = vst.msk [vmem:[#allocation2 + $0x94] sm:$0xf] %vm1105_vm0, %v1078_v44  ;;  %v1673_v57 = vld [vmem:[%s3542_s0 + $0x89c] sm:$0xf] }
  0x8a   :  { %v180_v54 = vmax.bf16 %v1228_v49, %v51_v48  ;;  %v1292_v55 = vld [vmem:[%s3542_s0 + $0x2a8] sm:$0xf]  ;;  %v822_v56 = vmax.bf16 %v1545_v41, %v693_v45  ;;  %v1546_v58 = vld [vmem:[%s3542_s0 + $0x6a0] sm:$0xf]  ;;  %v437_v59 = vmax.bf16 %v1355_v43, %v308_v47  ;;  %v1079_v61 = vmax.bf16 %v1672_v40, %v950_v50  ;;  %v1483_v63 = vld [vmem:[%s3542_s0 + $0x5a4] sm:$0xf] }
  0x8b   :  { %v1356_v60 = vld [vmem:[%s3542_s0 + $0x3a8] sm:$0xf]  ;;  %v694_v62 = vmax.bf16 %v1482_v46, %v565_v52  ;;  %v52_v1 = vld [vmem:[%s3542_s0 + $0xac] sm:$0xf]  ;;  %v1610_v4 = vld [vmem:[%s3542_s0 + $0x7a0] sm:$0xf] }
  0x8c   :  { %v309_v0 = vmax.bf16 %v1292_v55, %v180_v54  ;;  %v1229_v2 = vld [vmem:[%s3542_s0 + $0x1ac] sm:$0xf]  ;;  %v951_v3 = vmax.bf16 %v1609_v51, %v822_v56  ;;  %v566_v5 = vmax.bf16 %v1419_v53, %v437_v59  ;;  %v1420_v6 = vld [vmem:[%s3542_s0 + $0x4a8] sm:$0xf]  ;;  %1144 = vst.msk [vmem:[#allocation2 + $0x98] sm:$0xf] %vm1105_vm0, %v1079_v61 }
  0x8d   :  { %v181_v7 = vmax.bf16 %v1229_v2, %v52_v1  ;;  %v1293_v8 = vld [vmem:[%s3542_s0 + $0x2ac] sm:$0xf]  ;;  %v823_v9 = vmax.bf16 %v1546_v58, %v694_v62  ;;  %v1674_v10 = vld [vmem:[%s3542_s0 + $0x8a0] sm:$0xf]  ;;  %v1547_v11 = vld [vmem:[%s3542_s0 + $0x6a4] sm:$0xf] }
  0x8e   :  { %v438_v12 = vmax.bf16 %v1356_v60, %v309_v0  ;;  %v1357_v13 = vld [vmem:[%s3542_s0 + $0x3ac] sm:$0xf]  ;;  %v1080_v14 = vmax.bf16 %v1673_v57, %v951_v3  ;;  %v695_v15 = vmax.bf16 %v1483_v63, %v566_v5  ;;  %v1484_v16 = vld [vmem:[%s3542_s0 + $0x5a8] sm:$0xf]  ;;  %v53_v18 = vld [vmem:[%s3542_s0 + $0xb0] sm:$0xf] }
  0x8f   :  { %v310_v17 = vmax.bf16 %v1293_v8, %v181_v7  ;;  %v1230_v19 = vld [vmem:[%s3542_s0 + $0x1b0] sm:$0xf]  ;;  %v952_v20 = vmax.bf16 %v1610_v4, %v823_v9  ;;  %v1611_v21 = vld [vmem:[%s3542_s0 + $0x7a4] sm:$0xf]  ;;  %v1421_v23 = vld [vmem:[%s3542_s0 + $0x4ac] sm:$0xf] }
  0x90   :  { %v567_v22 = vmax.bf16 %v1420_v6, %v438_v12  ;;  %v182_v24 = vmax.bf16 %v1230_v19, %v53_v18  ;;  %v1294_v25 = vld [vmem:[%s3542_s0 + $0x2b0] sm:$0xf]  ;;  %1145 = vst.msk [vmem:[#allocation2 + $0x9c] sm:$0xf] %vm1105_vm0, %v1080_v14  ;;  %v824_v26 = vmax.bf16 %v1547_v11, %v695_v15  ;;  %v1675_v27 = vld [vmem:[%s3542_s0 + $0x8a4] sm:$0xf] }
  0x91   :  { %v1548_v28 = vld [vmem:[%s3542_s0 + $0x6a8] sm:$0xf]  ;;  %v439_v29 = vmax.bf16 %v1357_v13, %v310_v17  ;;  %v1358_v30 = vld [vmem:[%s3542_s0 + $0x3b0] sm:$0xf]  ;;  %v1081_v31 = vmax.bf16 %v1674_v10, %v952_v20  ;;  %v1485_v33 = vld [vmem:[%s3542_s0 + $0x5ac] sm:$0xf] }
  0x92   :  { %v696_v32 = vmax.bf16 %v1484_v16, %v567_v22  ;;  %v311_v34 = vmax.bf16 %v1294_v25, %v182_v24  ;;  %v54_v35 = vld [vmem:[%s3542_s0 + $0xb4] sm:$0xf]  ;;  %v953_v37 = vmax.bf16 %v1611_v21, %v824_v26  ;;  %v1612_v38 = vld [vmem:[%s3542_s0 + $0x7a8] sm:$0xf]  ;;  %v1422_v40 = vld [vmem:[%s3542_s0 + $0x4b0] sm:$0xf] }
  0x93   :  { %v1231_v36 = vld [vmem:[%s3542_s0 + $0x1b4] sm:$0xf]  ;;  %v568_v39 = vmax.bf16 %v1421_v23, %v439_v29  ;;  %1146 = vst.msk [vmem:[#allocation2 + $0xa0] sm:$0xf] %vm1105_vm0, %v1081_v31  ;;  %v1676_v44 = vld [vmem:[%s3542_s0 + $0x8a8] sm:$0xf] }
  0x94   :  { %v183_v41 = vmax.bf16 %v1231_v36, %v54_v35  ;;  %v1295_v42 = vld [vmem:[%s3542_s0 + $0x2b4] sm:$0xf]  ;;  %v825_v43 = vmax.bf16 %v1548_v28, %v696_v32  ;;  %v1549_v45 = vld [vmem:[%s3542_s0 + $0x6ac] sm:$0xf]  ;;  %v440_v46 = vmax.bf16 %v1358_v30, %v311_v34  ;;  %v1082_v48 = vmax.bf16 %v1675_v27, %v953_v37  ;;  %v1486_v50 = vld [vmem:[%s3542_s0 + $0x5b0] sm:$0xf] }
  0x95   :  { %v1359_v47 = vld [vmem:[%s3542_s0 + $0x3b4] sm:$0xf]  ;;  %v697_v49 = vmax.bf16 %v1485_v33, %v568_v39  ;;  %v55_v52 = vld [vmem:[%s3542_s0 + $0xb8] sm:$0xf]  ;;  %v1613_v55 = vld [vmem:[%s3542_s0 + $0x7ac] sm:$0xf] }
  0x96   :  { %v312_v51 = vmax.bf16 %v1295_v42, %v183_v41  ;;  %v1232_v53 = vld [vmem:[%s3542_s0 + $0x1b8] sm:$0xf]  ;;  %v954_v54 = vmax.bf16 %v1612_v38, %v825_v43  ;;  %v569_v56 = vmax.bf16 %v1422_v40, %v440_v46  ;;  %v1423_v57 = vld [vmem:[%s3542_s0 + $0x4b4] sm:$0xf]  ;;  %1147 = vst.msk [vmem:[#allocation2 + $0xa4] sm:$0xf] %vm1105_vm0, %v1082_v48 }
  0x97   :  { %v184_v58 = vmax.bf16 %v1232_v53, %v55_v52  ;;  %v1296_v59 = vld [vmem:[%s3542_s0 + $0x2b8] sm:$0xf]  ;;  %v826_v60 = vmax.bf16 %v1549_v45, %v697_v49  ;;  %v1677_v61 = vld [vmem:[%s3542_s0 + $0x8ac] sm:$0xf]  ;;  %v1550_v62 = vld [vmem:[%s3542_s0 + $0x6b0] sm:$0xf] }
  0x98   :  { %v441_v63 = vmax.bf16 %v1359_v47, %v312_v51  ;;  %v1360_v0 = vld [vmem:[%s3542_s0 + $0x3b8] sm:$0xf]  ;;  %v1083_v1 = vmax.bf16 %v1676_v44, %v954_v54  ;;  %v698_v2 = vmax.bf16 %v1486_v50, %v569_v56  ;;  %v1487_v3 = vld [vmem:[%s3542_s0 + $0x5b4] sm:$0xf]  ;;  %v56_v5 = vld [vmem:[%s3542_s0 + $0xbc] sm:$0xf] }
  0x99   :  { %v313_v4 = vmax.bf16 %v1296_v59, %v184_v58  ;;  %v1233_v6 = vld [vmem:[%s3542_s0 + $0x1bc] sm:$0xf]  ;;  %v955_v7 = vmax.bf16 %v1613_v55, %v826_v60  ;;  %v1614_v8 = vld [vmem:[%s3542_s0 + $0x7b0] sm:$0xf]  ;;  %v1424_v10 = vld [vmem:[%s3542_s0 + $0x4b8] sm:$0xf] }
  0x9a   :  { %v570_v9 = vmax.bf16 %v1423_v57, %v441_v63  ;;  %v185_v11 = vmax.bf16 %v1233_v6, %v56_v5  ;;  %v1297_v12 = vld [vmem:[%s3542_s0 + $0x2bc] sm:$0xf]  ;;  %1148 = vst.msk [vmem:[#allocation2 + $0xa8] sm:$0xf] %vm1105_vm0, %v1083_v1  ;;  %v827_v13 = vmax.bf16 %v1550_v62, %v698_v2  ;;  %v1678_v14 = vld [vmem:[%s3542_s0 + $0x8b0] sm:$0xf] }
  0x9b   :  { %v1551_v15 = vld [vmem:[%s3542_s0 + $0x6b4] sm:$0xf]  ;;  %v442_v16 = vmax.bf16 %v1360_v0, %v313_v4  ;;  %v1361_v17 = vld [vmem:[%s3542_s0 + $0x3bc] sm:$0xf]  ;;  %v1084_v18 = vmax.bf16 %v1677_v61, %v955_v7  ;;  %v1488_v20 = vld [vmem:[%s3542_s0 + $0x5b8] sm:$0xf] }
  0x9c   :  { %v699_v19 = vmax.bf16 %v1487_v3, %v570_v9  ;;  %v314_v21 = vmax.bf16 %v1297_v12, %v185_v11  ;;  %v57_v22 = vld [vmem:[%s3542_s0 + $0xc0] sm:$0xf]  ;;  %v956_v24 = vmax.bf16 %v1614_v8, %v827_v13  ;;  %v1615_v25 = vld [vmem:[%s3542_s0 + $0x7b4] sm:$0xf]  ;;  %v1425_v27 = vld [vmem:[%s3542_s0 + $0x4bc] sm:$0xf] }
  0x9d   :  { %v1234_v23 = vld [vmem:[%s3542_s0 + $0x1c0] sm:$0xf]  ;;  %v571_v26 = vmax.bf16 %v1424_v10, %v442_v16  ;;  %1149 = vst.msk [vmem:[#allocation2 + $0xac] sm:$0xf] %vm1105_vm0, %v1084_v18  ;;  %v1679_v31 = vld [vmem:[%s3542_s0 + $0x8b4] sm:$0xf] }
  0x9e   :  { %v186_v28 = vmax.bf16 %v1234_v23, %v57_v22  ;;  %v1298_v29 = vld [vmem:[%s3542_s0 + $0x2c0] sm:$0xf]  ;;  %v828_v30 = vmax.bf16 %v1551_v15, %v699_v19  ;;  %v1552_v32 = vld [vmem:[%s3542_s0 + $0x6b8] sm:$0xf]  ;;  %v443_v33 = vmax.bf16 %v1361_v17, %v314_v21  ;;  %v1085_v35 = vmax.bf16 %v1678_v14, %v956_v24  ;;  %v1489_v37 = vld [vmem:[%s3542_s0 + $0x5bc] sm:$0xf] }
  0x9f   :  { %v1362_v34 = vld [vmem:[%s3542_s0 + $0x3c0] sm:$0xf]  ;;  %v700_v36 = vmax.bf16 %v1488_v20, %v571_v26  ;;  %v58_v39 = vld [vmem:[%s3542_s0 + $0xc4] sm:$0xf]  ;;  %v1616_v42 = vld [vmem:[%s3542_s0 + $0x7b8] sm:$0xf] }
  0xa0   :  { %v315_v38 = vmax.bf16 %v1298_v29, %v186_v28  ;;  %v1235_v40 = vld [vmem:[%s3542_s0 + $0x1c4] sm:$0xf]  ;;  %v957_v41 = vmax.bf16 %v1615_v25, %v828_v30  ;;  %v572_v43 = vmax.bf16 %v1425_v27, %v443_v33  ;;  %v1426_v44 = vld [vmem:[%s3542_s0 + $0x4c0] sm:$0xf]  ;;  %1150 = vst.msk [vmem:[#allocation2 + $0xb0] sm:$0xf] %vm1105_vm0, %v1085_v35 }
  0xa1   :  { %v187_v45 = vmax.bf16 %v1235_v40, %v58_v39  ;;  %v1299_v46 = vld [vmem:[%s3542_s0 + $0x2c4] sm:$0xf]  ;;  %v829_v47 = vmax.bf16 %v1552_v32, %v700_v36  ;;  %v1680_v48 = vld [vmem:[%s3542_s0 + $0x8b8] sm:$0xf]  ;;  %v1553_v49 = vld [vmem:[%s3542_s0 + $0x6bc] sm:$0xf] }
  0xa2   :  { %v444_v50 = vmax.bf16 %v1362_v34, %v315_v38  ;;  %v1363_v51 = vld [vmem:[%s3542_s0 + $0x3c4] sm:$0xf]  ;;  %v1086_v52 = vmax.bf16 %v1679_v31, %v957_v41  ;;  %v701_v53 = vmax.bf16 %v1489_v37, %v572_v43  ;;  %v1490_v54 = vld [vmem:[%s3542_s0 + $0x5c0] sm:$0xf]  ;;  %v59_v56 = vld [vmem:[%s3542_s0 + $0xc8] sm:$0xf] }
  0xa3   :  { %v316_v55 = vmax.bf16 %v1299_v46, %v187_v45  ;;  %v1236_v57 = vld [vmem:[%s3542_s0 + $0x1c8] sm:$0xf]  ;;  %v958_v58 = vmax.bf16 %v1616_v42, %v829_v47  ;;  %v1617_v59 = vld [vmem:[%s3542_s0 + $0x7bc] sm:$0xf]  ;;  %v1427_v61 = vld [vmem:[%s3542_s0 + $0x4c4] sm:$0xf] }
  0xa4   :  { %v573_v60 = vmax.bf16 %v1426_v44, %v444_v50  ;;  %v188_v62 = vmax.bf16 %v1236_v57, %v59_v56  ;;  %v1300_v63 = vld [vmem:[%s3542_s0 + $0x2c8] sm:$0xf]  ;;  %1151 = vst.msk [vmem:[#allocation2 + $0xb4] sm:$0xf] %vm1105_vm0, %v1086_v52  ;;  %v830_v0 = vmax.bf16 %v1553_v49, %v701_v53  ;;  %v1681_v1 = vld [vmem:[%s3542_s0 + $0x8bc] sm:$0xf] }
  0xa5   :  { %v1554_v2 = vld [vmem:[%s3542_s0 + $0x6c0] sm:$0xf]  ;;  %v445_v3 = vmax.bf16 %v1363_v51, %v316_v55  ;;  %v1364_v4 = vld [vmem:[%s3542_s0 + $0x3c8] sm:$0xf]  ;;  %v1087_v5 = vmax.bf16 %v1680_v48, %v958_v58  ;;  %v1491_v7 = vld [vmem:[%s3542_s0 + $0x5c4] sm:$0xf] }
  0xa6   :  { %v702_v6 = vmax.bf16 %v1490_v54, %v573_v60  ;;  %v317_v8 = vmax.bf16 %v1300_v63, %v188_v62  ;;  %v60_v9 = vld [vmem:[%s3542_s0 + $0xcc] sm:$0xf]  ;;  %v959_v11 = vmax.bf16 %v1617_v59, %v830_v0  ;;  %v1618_v12 = vld [vmem:[%s3542_s0 + $0x7c0] sm:$0xf]  ;;  %v1428_v14 = vld [vmem:[%s3542_s0 + $0x4c8] sm:$0xf] }
  0xa7   :  { %v1237_v10 = vld [vmem:[%s3542_s0 + $0x1cc] sm:$0xf]  ;;  %v574_v13 = vmax.bf16 %v1427_v61, %v445_v3  ;;  %1152 = vst.msk [vmem:[#allocation2 + $0xb8] sm:$0xf] %vm1105_vm0, %v1087_v5  ;;  %v1682_v18 = vld [vmem:[%s3542_s0 + $0x8c0] sm:$0xf] }
  0xa8   :  { %v189_v15 = vmax.bf16 %v1237_v10, %v60_v9  ;;  %v1301_v16 = vld [vmem:[%s3542_s0 + $0x2cc] sm:$0xf]  ;;  %v831_v17 = vmax.bf16 %v1554_v2, %v702_v6  ;;  %v1555_v19 = vld [vmem:[%s3542_s0 + $0x6c4] sm:$0xf]  ;;  %v446_v20 = vmax.bf16 %v1364_v4, %v317_v8  ;;  %v1088_v22 = vmax.bf16 %v1681_v1, %v959_v11  ;;  %v1492_v24 = vld [vmem:[%s3542_s0 + $0x5c8] sm:$0xf] }
  0xa9   :  { %v1365_v21 = vld [vmem:[%s3542_s0 + $0x3cc] sm:$0xf]  ;;  %v703_v23 = vmax.bf16 %v1491_v7, %v574_v13  ;;  %v61_v26 = vld [vmem:[%s3542_s0 + $0xd0] sm:$0xf]  ;;  %v1619_v29 = vld [vmem:[%s3542_s0 + $0x7c4] sm:$0xf] }
  0xaa   :  { %v318_v25 = vmax.bf16 %v1301_v16, %v189_v15  ;;  %v1238_v27 = vld [vmem:[%s3542_s0 + $0x1d0] sm:$0xf]  ;;  %v960_v28 = vmax.bf16 %v1618_v12, %v831_v17  ;;  %v575_v30 = vmax.bf16 %v1428_v14, %v446_v20  ;;  %v1429_v31 = vld [vmem:[%s3542_s0 + $0x4cc] sm:$0xf]  ;;  %1153 = vst.msk [vmem:[#allocation2 + $0xbc] sm:$0xf] %vm1105_vm0, %v1088_v22 }
  0xab   :  { %v190_v32 = vmax.bf16 %v1238_v27, %v61_v26  ;;  %v1302_v33 = vld [vmem:[%s3542_s0 + $0x2d0] sm:$0xf]  ;;  %v832_v34 = vmax.bf16 %v1555_v19, %v703_v23  ;;  %v1683_v35 = vld [vmem:[%s3542_s0 + $0x8c4] sm:$0xf]  ;;  %v1556_v36 = vld [vmem:[%s3542_s0 + $0x6c8] sm:$0xf] }
  0xac   :  { %v447_v37 = vmax.bf16 %v1365_v21, %v318_v25  ;;  %v1366_v38 = vld [vmem:[%s3542_s0 + $0x3d0] sm:$0xf]  ;;  %v1089_v39 = vmax.bf16 %v1682_v18, %v960_v28  ;;  %v704_v40 = vmax.bf16 %v1492_v24, %v575_v30  ;;  %v1493_v41 = vld [vmem:[%s3542_s0 + $0x5cc] sm:$0xf]  ;;  %v62_v43 = vld [vmem:[%s3542_s0 + $0xd4] sm:$0xf] }
  0xad   :  { %v319_v42 = vmax.bf16 %v1302_v33, %v190_v32  ;;  %v1239_v44 = vld [vmem:[%s3542_s0 + $0x1d4] sm:$0xf]  ;;  %v961_v45 = vmax.bf16 %v1619_v29, %v832_v34  ;;  %v1620_v46 = vld [vmem:[%s3542_s0 + $0x7c8] sm:$0xf]  ;;  %v1430_v48 = vld [vmem:[%s3542_s0 + $0x4d0] sm:$0xf] }
  0xae   :  { %v576_v47 = vmax.bf16 %v1429_v31, %v447_v37  ;;  %v191_v49 = vmax.bf16 %v1239_v44, %v62_v43  ;;  %v1303_v50 = vld [vmem:[%s3542_s0 + $0x2d4] sm:$0xf]  ;;  %1154 = vst.msk [vmem:[#allocation2 + $0xc0] sm:$0xf] %vm1105_vm0, %v1089_v39  ;;  %v833_v51 = vmax.bf16 %v1556_v36, %v704_v40  ;;  %v1684_v52 = vld [vmem:[%s3542_s0 + $0x8c8] sm:$0xf] }
  0xaf   :  { %v1557_v53 = vld [vmem:[%s3542_s0 + $0x6cc] sm:$0xf]  ;;  %v448_v54 = vmax.bf16 %v1366_v38, %v319_v42  ;;  %v1367_v55 = vld [vmem:[%s3542_s0 + $0x3d4] sm:$0xf]  ;;  %v1090_v56 = vmax.bf16 %v1683_v35, %v961_v45  ;;  %v1494_v58 = vld [vmem:[%s3542_s0 + $0x5d0] sm:$0xf] }
  0xb0   :  { %v705_v57 = vmax.bf16 %v1493_v41, %v576_v47  ;;  %v320_v59 = vmax.bf16 %v1303_v50, %v191_v49  ;;  %v63_v60 = vld [vmem:[%s3542_s0 + $0xd8] sm:$0xf]  ;;  %v962_v62 = vmax.bf16 %v1620_v46, %v833_v51  ;;  %v1621_v63 = vld [vmem:[%s3542_s0 + $0x7cc] sm:$0xf]  ;;  %v1431_v1 = vld [vmem:[%s3542_s0 + $0x4d4] sm:$0xf] }
  0xb1   :  { %v1240_v61 = vld [vmem:[%s3542_s0 + $0x1d8] sm:$0xf]  ;;  %v577_v0 = vmax.bf16 %v1430_v48, %v448_v54  ;;  %1155 = vst.msk [vmem:[#allocation2 + $0xc4] sm:$0xf] %vm1105_vm0, %v1090_v56  ;;  %v1685_v5 = vld [vmem:[%s3542_s0 + $0x8cc] sm:$0xf] }
  0xb2   :  { %v192_v2 = vmax.bf16 %v1240_v61, %v63_v60  ;;  %v1304_v3 = vld [vmem:[%s3542_s0 + $0x2d8] sm:$0xf]  ;;  %v834_v4 = vmax.bf16 %v1557_v53, %v705_v57  ;;  %v1558_v6 = vld [vmem:[%s3542_s0 + $0x6d0] sm:$0xf]  ;;  %v449_v7 = vmax.bf16 %v1367_v55, %v320_v59  ;;  %v1091_v9 = vmax.bf16 %v1684_v52, %v962_v62  ;;  %v1495_v11 = vld [vmem:[%s3542_s0 + $0x5d4] sm:$0xf] }
  0xb3   :  { %v1368_v8 = vld [vmem:[%s3542_s0 + $0x3d8] sm:$0xf]  ;;  %v706_v10 = vmax.bf16 %v1494_v58, %v577_v0  ;;  %v64_v13 = vld [vmem:[%s3542_s0 + $0xdc] sm:$0xf]  ;;  %v1622_v16 = vld [vmem:[%s3542_s0 + $0x7d0] sm:$0xf] }
  0xb4   :  { %v321_v12 = vmax.bf16 %v1304_v3, %v192_v2  ;;  %v1241_v14 = vld [vmem:[%s3542_s0 + $0x1dc] sm:$0xf]  ;;  %v963_v15 = vmax.bf16 %v1621_v63, %v834_v4  ;;  %v578_v17 = vmax.bf16 %v1431_v1, %v449_v7  ;;  %v1432_v18 = vld [vmem:[%s3542_s0 + $0x4d8] sm:$0xf]  ;;  %1156 = vst.msk [vmem:[#allocation2 + $0xc8] sm:$0xf] %vm1105_vm0, %v1091_v9 }
  0xb5   :  { %v193_v19 = vmax.bf16 %v1241_v14, %v64_v13  ;;  %v1305_v20 = vld [vmem:[%s3542_s0 + $0x2dc] sm:$0xf]  ;;  %v835_v21 = vmax.bf16 %v1558_v6, %v706_v10  ;;  %v1686_v22 = vld [vmem:[%s3542_s0 + $0x8d0] sm:$0xf]  ;;  %v1559_v23 = vld [vmem:[%s3542_s0 + $0x6d4] sm:$0xf] }
  0xb6   :  { %v450_v24 = vmax.bf16 %v1368_v8, %v321_v12  ;;  %v1369_v25 = vld [vmem:[%s3542_s0 + $0x3dc] sm:$0xf]  ;;  %v1092_v26 = vmax.bf16 %v1685_v5, %v963_v15  ;;  %v707_v27 = vmax.bf16 %v1495_v11, %v578_v17  ;;  %v1496_v28 = vld [vmem:[%s3542_s0 + $0x5d8] sm:$0xf]  ;;  %v65_v30 = vld [vmem:[%s3542_s0 + $0xe0] sm:$0xf] }
  0xb7   :  { %v322_v29 = vmax.bf16 %v1305_v20, %v193_v19  ;;  %v1242_v31 = vld [vmem:[%s3542_s0 + $0x1e0] sm:$0xf]  ;;  %v964_v32 = vmax.bf16 %v1622_v16, %v835_v21  ;;  %v1623_v33 = vld [vmem:[%s3542_s0 + $0x7d4] sm:$0xf]  ;;  %v1433_v35 = vld [vmem:[%s3542_s0 + $0x4dc] sm:$0xf] }
  0xb8   :  { %v579_v34 = vmax.bf16 %v1432_v18, %v450_v24  ;;  %v194_v36 = vmax.bf16 %v1242_v31, %v65_v30  ;;  %v1306_v37 = vld [vmem:[%s3542_s0 + $0x2e0] sm:$0xf]  ;;  %1157 = vst.msk [vmem:[#allocation2 + $0xcc] sm:$0xf] %vm1105_vm0, %v1092_v26  ;;  %v836_v38 = vmax.bf16 %v1559_v23, %v707_v27  ;;  %v1687_v39 = vld [vmem:[%s3542_s0 + $0x8d4] sm:$0xf] }
  0xb9   :  { %v1560_v40 = vld [vmem:[%s3542_s0 + $0x6d8] sm:$0xf]  ;;  %v451_v41 = vmax.bf16 %v1369_v25, %v322_v29  ;;  %v1370_v42 = vld [vmem:[%s3542_s0 + $0x3e0] sm:$0xf]  ;;  %v1093_v43 = vmax.bf16 %v1686_v22, %v964_v32  ;;  %v1497_v45 = vld [vmem:[%s3542_s0 + $0x5dc] sm:$0xf] }
  0xba   :  { %v708_v44 = vmax.bf16 %v1496_v28, %v579_v34  ;;  %v323_v46 = vmax.bf16 %v1306_v37, %v194_v36  ;;  %v66_v47 = vld [vmem:[%s3542_s0 + $0xe4] sm:$0xf]  ;;  %v965_v49 = vmax.bf16 %v1623_v33, %v836_v38  ;;  %v1624_v50 = vld [vmem:[%s3542_s0 + $0x7d8] sm:$0xf]  ;;  %v1434_v52 = vld [vmem:[%s3542_s0 + $0x4e0] sm:$0xf] }
  0xbb   :  { %v1243_v48 = vld [vmem:[%s3542_s0 + $0x1e4] sm:$0xf]  ;;  %v580_v51 = vmax.bf16 %v1433_v35, %v451_v41  ;;  %1158 = vst.msk [vmem:[#allocation2 + $0xd0] sm:$0xf] %vm1105_vm0, %v1093_v43  ;;  %v1688_v56 = vld [vmem:[%s3542_s0 + $0x8d8] sm:$0xf] }
  0xbc   :  { %v195_v53 = vmax.bf16 %v1243_v48, %v66_v47  ;;  %v1307_v54 = vld [vmem:[%s3542_s0 + $0x2e4] sm:$0xf]  ;;  %v837_v55 = vmax.bf16 %v1560_v40, %v708_v44  ;;  %v1561_v57 = vld [vmem:[%s3542_s0 + $0x6dc] sm:$0xf]  ;;  %v452_v58 = vmax.bf16 %v1370_v42, %v323_v46  ;;  %v1094_v60 = vmax.bf16 %v1687_v39, %v965_v49  ;;  %v1498_v62 = vld [vmem:[%s3542_s0 + $0x5e0] sm:$0xf] }
  0xbd   :  { %v1371_v59 = vld [vmem:[%s3542_s0 + $0x3e4] sm:$0xf]  ;;  %v709_v61 = vmax.bf16 %v1497_v45, %v580_v51  ;;  %v67_v0 = vld [vmem:[%s3542_s0 + $0xe8] sm:$0xf]  ;;  %v1625_v3 = vld [vmem:[%s3542_s0 + $0x7dc] sm:$0xf] }
  0xbe   :  { %v324_v63 = vmax.bf16 %v1307_v54, %v195_v53  ;;  %v1244_v1 = vld [vmem:[%s3542_s0 + $0x1e8] sm:$0xf]  ;;  %v966_v2 = vmax.bf16 %v1624_v50, %v837_v55  ;;  %v581_v4 = vmax.bf16 %v1434_v52, %v452_v58  ;;  %v1435_v5 = vld [vmem:[%s3542_s0 + $0x4e4] sm:$0xf]  ;;  %1159 = vst.msk [vmem:[#allocation2 + $0xd4] sm:$0xf] %vm1105_vm0, %v1094_v60 }
  0xbf   :  { %v196_v6 = vmax.bf16 %v1244_v1, %v67_v0  ;;  %v1308_v7 = vld [vmem:[%s3542_s0 + $0x2e8] sm:$0xf]  ;;  %v838_v8 = vmax.bf16 %v1561_v57, %v709_v61  ;;  %v1689_v9 = vld [vmem:[%s3542_s0 + $0x8dc] sm:$0xf]  ;;  %v1562_v10 = vld [vmem:[%s3542_s0 + $0x6e0] sm:$0xf] }
  0xc0   :  { %v453_v11 = vmax.bf16 %v1371_v59, %v324_v63  ;;  %v1372_v12 = vld [vmem:[%s3542_s0 + $0x3e8] sm:$0xf]  ;;  %v1095_v13 = vmax.bf16 %v1688_v56, %v966_v2  ;;  %v710_v14 = vmax.bf16 %v1498_v62, %v581_v4  ;;  %v1499_v15 = vld [vmem:[%s3542_s0 + $0x5e4] sm:$0xf]  ;;  %v68_v17 = vld [vmem:[%s3542_s0 + $0xec] sm:$0xf] }
  0xc1   :  { %v325_v16 = vmax.bf16 %v1308_v7, %v196_v6  ;;  %v1245_v18 = vld [vmem:[%s3542_s0 + $0x1ec] sm:$0xf]  ;;  %v967_v19 = vmax.bf16 %v1625_v3, %v838_v8  ;;  %v1626_v20 = vld [vmem:[%s3542_s0 + $0x7e0] sm:$0xf]  ;;  %v1436_v22 = vld [vmem:[%s3542_s0 + $0x4e8] sm:$0xf] }
  0xc2   :  { %v582_v21 = vmax.bf16 %v1435_v5, %v453_v11  ;;  %v197_v23 = vmax.bf16 %v1245_v18, %v68_v17  ;;  %v1309_v24 = vld [vmem:[%s3542_s0 + $0x2ec] sm:$0xf]  ;;  %1160 = vst.msk [vmem:[#allocation2 + $0xd8] sm:$0xf] %vm1105_vm0, %v1095_v13  ;;  %v839_v25 = vmax.bf16 %v1562_v10, %v710_v14  ;;  %v1690_v26 = vld [vmem:[%s3542_s0 + $0x8e0] sm:$0xf] }
  0xc3   :  { %v1563_v27 = vld [vmem:[%s3542_s0 + $0x6e4] sm:$0xf]  ;;  %v454_v28 = vmax.bf16 %v1372_v12, %v325_v16  ;;  %v1373_v29 = vld [vmem:[%s3542_s0 + $0x3ec] sm:$0xf]  ;;  %v1096_v30 = vmax.bf16 %v1689_v9, %v967_v19  ;;  %v1500_v32 = vld [vmem:[%s3542_s0 + $0x5e8] sm:$0xf] }
  0xc4   :  { %v711_v31 = vmax.bf16 %v1499_v15, %v582_v21  ;;  %v326_v33 = vmax.bf16 %v1309_v24, %v197_v23  ;;  %v69_v34 = vld [vmem:[%s3542_s0 + $0xf0] sm:$0xf]  ;;  %v968_v36 = vmax.bf16 %v1626_v20, %v839_v25  ;;  %v1627_v37 = vld [vmem:[%s3542_s0 + $0x7e4] sm:$0xf]  ;;  %v1437_v39 = vld [vmem:[%s3542_s0 + $0x4ec] sm:$0xf] }
  0xc5   :  { %v1246_v35 = vld [vmem:[%s3542_s0 + $0x1f0] sm:$0xf]  ;;  %v583_v38 = vmax.bf16 %v1436_v22, %v454_v28  ;;  %1161 = vst.msk [vmem:[#allocation2 + $0xdc] sm:$0xf] %vm1105_vm0, %v1096_v30  ;;  %v1691_v43 = vld [vmem:[%s3542_s0 + $0x8e4] sm:$0xf] }
  0xc6   :  { %v198_v40 = vmax.bf16 %v1246_v35, %v69_v34  ;;  %v1310_v41 = vld [vmem:[%s3542_s0 + $0x2f0] sm:$0xf]  ;;  %v840_v42 = vmax.bf16 %v1563_v27, %v711_v31  ;;  %v1564_v44 = vld [vmem:[%s3542_s0 + $0x6e8] sm:$0xf]  ;;  %v455_v45 = vmax.bf16 %v1373_v29, %v326_v33  ;;  %v1097_v47 = vmax.bf16 %v1690_v26, %v968_v36  ;;  %v1501_v49 = vld [vmem:[%s3542_s0 + $0x5ec] sm:$0xf] }
  0xc7   :  { %v1374_v46 = vld [vmem:[%s3542_s0 + $0x3f0] sm:$0xf]  ;;  %v712_v48 = vmax.bf16 %v1500_v32, %v583_v38  ;;  %v70_v51 = vld [vmem:[%s3542_s0 + $0xf4] sm:$0xf]  ;;  %v1628_v54 = vld [vmem:[%s3542_s0 + $0x7e8] sm:$0xf] }
  0xc8   :  { %v327_v50 = vmax.bf16 %v1310_v41, %v198_v40  ;;  %v1247_v52 = vld [vmem:[%s3542_s0 + $0x1f4] sm:$0xf]  ;;  %v969_v53 = vmax.bf16 %v1627_v37, %v840_v42  ;;  %v584_v55 = vmax.bf16 %v1437_v39, %v455_v45  ;;  %v1438_v56 = vld [vmem:[%s3542_s0 + $0x4f0] sm:$0xf]  ;;  %1162 = vst.msk [vmem:[#allocation2 + $0xe0] sm:$0xf] %vm1105_vm0, %v1097_v47 }
  0xc9   :  { %v199_v57 = vmax.bf16 %v1247_v52, %v70_v51  ;;  %v1311_v58 = vld [vmem:[%s3542_s0 + $0x2f4] sm:$0xf]  ;;  %v841_v59 = vmax.bf16 %v1564_v44, %v712_v48  ;;  %v1692_v60 = vld [vmem:[%s3542_s0 + $0x8e8] sm:$0xf]  ;;  %v1565_v61 = vld [vmem:[%s3542_s0 + $0x6ec] sm:$0xf] }
  0xca   :  { %v456_v62 = vmax.bf16 %v1374_v46, %v327_v50  ;;  %v1375_v63 = vld [vmem:[%s3542_s0 + $0x3f4] sm:$0xf]  ;;  %v1098_v0 = vmax.bf16 %v1691_v43, %v969_v53  ;;  %v713_v1 = vmax.bf16 %v1501_v49, %v584_v55  ;;  %v1502_v2 = vld [vmem:[%s3542_s0 + $0x5f0] sm:$0xf]  ;;  %v71_v4 = vld [vmem:[%s3542_s0 + $0xf8] sm:$0xf] }
  0xcb   :  { %v328_v3 = vmax.bf16 %v1311_v58, %v199_v57  ;;  %v1248_v5 = vld [vmem:[%s3542_s0 + $0x1f8] sm:$0xf]  ;;  %v970_v6 = vmax.bf16 %v1628_v54, %v841_v59  ;;  %v1629_v7 = vld [vmem:[%s3542_s0 + $0x7ec] sm:$0xf]  ;;  %v1439_v9 = vld [vmem:[%s3542_s0 + $0x4f4] sm:$0xf] }
  0xcc   :  { %v585_v8 = vmax.bf16 %v1438_v56, %v456_v62  ;;  %v200_v10 = vmax.bf16 %v1248_v5, %v71_v4  ;;  %v1312_v11 = vld [vmem:[%s3542_s0 + $0x2f8] sm:$0xf]  ;;  %1163 = vst.msk [vmem:[#allocation2 + $0xe4] sm:$0xf] %vm1105_vm0, %v1098_v0  ;;  %v842_v12 = vmax.bf16 %v1565_v61, %v713_v1  ;;  %v1693_v13 = vld [vmem:[%s3542_s0 + $0x8ec] sm:$0xf] }
  0xcd   :  { %v1566_v14 = vld [vmem:[%s3542_s0 + $0x6f0] sm:$0xf]  ;;  %v457_v15 = vmax.bf16 %v1375_v63, %v328_v3  ;;  %v1376_v16 = vld [vmem:[%s3542_s0 + $0x3f8] sm:$0xf]  ;;  %v1099_v17 = vmax.bf16 %v1692_v60, %v970_v6  ;;  %v1503_v19 = vld [vmem:[%s3542_s0 + $0x5f4] sm:$0xf] }
  0xce   :  { %v714_v18 = vmax.bf16 %v1502_v2, %v585_v8  ;;  %v329_v20 = vmax.bf16 %v1312_v11, %v200_v10  ;;  %v72_v21 = vld [vmem:[%s3542_s0 + $0xfc] sm:$0xf]  ;;  %v971_v23 = vmax.bf16 %v1629_v7, %v842_v12  ;;  %v1630_v24 = vld [vmem:[%s3542_s0 + $0x7f0] sm:$0xf]  ;;  %v1440_v26 = vld [vmem:[%s3542_s0 + $0x4f8] sm:$0xf] }
  0xcf   :  { %v1249_v22 = vld [vmem:[%s3542_s0 + $0x1fc] sm:$0xf]  ;;  %v586_v25 = vmax.bf16 %v1439_v9, %v457_v15  ;;  %1164 = vst.msk [vmem:[#allocation2 + $0xe8] sm:$0xf] %vm1105_vm0, %v1099_v17  ;;  %v1567_v30 = vld [vmem:[%s3542_s0 + $0x6f4] sm:$0xf] }
  0xd0   :  { %v201_v27 = vmax.bf16 %v1249_v22, %v72_v21  ;;  %v1313_v28 = vld [vmem:[%s3542_s0 + $0x2fc] sm:$0xf]  ;;  %v843_v29 = vmax.bf16 %v1566_v14, %v714_v18  ;;  %v458_v31 = vmax.bf16 %v1376_v16, %v329_v20  ;;  %v1100_v33 = vmax.bf16 %v1693_v13, %v971_v23  ;;  %v1694_v34 = vld [vmem:[%s3542_s0 + $0x8f0] sm:$0xf]  ;;  %v1504_v36 = vld [vmem:[%s3542_s0 + $0x5f8] sm:$0xf] }
  0xd1   :  { %v1377_v32 = vld [vmem:[%s3542_s0 + $0x3fc] sm:$0xf]  ;;  %v715_v35 = vmax.bf16 %v1503_v19, %v586_v25 }
  0xd2   :  { %v330_v37 = vmax.bf16 %v1313_v28, %v201_v27 }
  0xd3   :  { %6 = vsyncpa [#allocation3], 0  ;;  %v972_v38 = vmax.bf16 %v1630_v24, %v843_v29  ;;  %v1631_v39 = vld [vmem:[%s3542_s0 + $0x7f4] sm:$0xf]  ;;  %v587_v40 = vmax.bf16 %v1440_v26, %v458_v31  ;;  %v1441_v41 = vld [vmem:[%s3542_s0 + $0x4fc] sm:$0xf]  ;;  %v844_v42 = vmax.bf16 %v1567_v30, %v715_v35 }
  0xd4   :  { %1165 = vst.msk [vmem:[#allocation2 + $0xec] sm:$0xf] %vm1105_vm0, %v1100_v33  ;;  %v1568_v43 = vld [vmem:[%s3542_s0 + $0x6f8] sm:$0xf]  ;;  %v459_v44 = vmax.bf16 %v1377_v32, %v330_v37  ;;  %v1695_v46 = vld [vmem:[%s3542_s0 + $0x8f4] sm:$0xf] }
  0xd5   :  { %v1101_v45 = vmax.bf16 %v1694_v34, %v972_v38  ;;  %v716_v47 = vmax.bf16 %v1504_v36, %v587_v40  ;;  %v1505_v48 = vld [vmem:[%s3542_s0 + $0x5fc] sm:$0xf]  ;;  %v973_v49 = vmax.bf16 %v1631_v39, %v844_v42  ;;  %v1632_v50 = vld [vmem:[%s3542_s0 + $0x7f8] sm:$0xf]  ;;  %s1725_s27 = smov [#allocation2]  }
  0xd6   :  { %v588_v51 = vmax.bf16 %v1441_v41, %v459_v44  ;;  %v1569_v53 = vld [vmem:[%s3542_s0 + $0x6fc] sm:$0xf]  ;;  %v1696_v55 = vld [vmem:[%s3542_s0 + $0x8f8] sm:$0xf]  ;;  %s1175_s28 = sshll.u32 %s1725_s27, 4  ;;  %s1176_s28 = int_to_ptr.vmem [resolvable:$true] %s1175_s28 }
  0xd7   :  { %1166 = vst.msk [vmem:[#allocation2 + $0xf0] sm:$0xf] %vm1105_vm0, %v1101_v45  ;;  %v845_v52 = vmax.bf16 %v1568_v43, %v716_v47  ;;  %v1102_v54 = vmax.bf16 %v1695_v46, %v973_v49  ;;  %v1633_v58 = vld [vmem:[%s3542_s0 + $0x7fc] sm:$0xf]  ;;  %s1701_s29 = scalar_lea.vmem %s1176_s28, 4096  ;;  %p1706_p1 = scmp.lt.s32.totalorder %s1176_s28, %s1176_s28 }
  0xd8   :  { %v717_v56 = vmax.bf16 %v1505_v48, %v588_v51  ;;  %v1697_v61 = vld [vmem:[%s3542_s0 + $0x8fc] sm:$0xf]  ;;  %p1702_p0 = scmp.ne.s32.totalorder %s1176_s28, %s1701_s29  ;;  %p1707_p2 = scmp.lt.s32.totalorder %s1701_s29, %s1701_s29 }
  0xd9   :  { %v974_v57 = vmax.bf16 %v1632_v50, %v845_v52  ;;  %1167 = vst.msk [vmem:[#allocation2 + $0xf4] sm:$0xf] %vm1105_vm0, %v1102_v54 }
  0xda   :  { %v846_v59 = vmax.bf16 %v1569_v53, %v717_v56  ;;  %p1708_p3 = por %p1707_p2, %p1706_p1 }
  0xdb   :  { %v1103_v60 = vmax.bf16 %v1696_v55, %v974_v57 }
  0xdc   :  { %v975_v62 = vmax.bf16 %v1633_v58, %v846_v59  ;;  %p1709_p4 = pnand %p1708_p3, %p1702_p0 }
  0xdd   :  { %1168 = vst.msk [vmem:[#allocation2 + $0xf8] sm:$0xf] %vm1105_vm0, %v1103_v60 }
  0xde   :  { %v1104_v63 = vmax.bf16 %v1697_v61, %v975_v62 }
  0xe0   :  { %1169 = vst.msk [vmem:[#allocation2 + $0xfc] sm:$0xf] %vm1105_vm0, %v1104_v63 }
  0xe1   :  { %1712 = shalt.err (!%p1709_p4)
}
  0xe2   :  { %s1713_s0 = scalar_lea.hbm %s3543_s1, 4096 }
  0xe3   :  { %p1714_p5 = scmp.ne.s32.totalorder %s3543_s1, %s1713_s0  ;;  %p1717_p6 = scmp.lt.u32.totalorder %s1713_s0, %s3543_s1 }
  0xe5   :  { %p1719_p7 = pnand %p1717_p6, %p1714_p5 }
  0xe7   :  { %1722 = shalt.err (!%p1719_p7)
}
  0xe8   :  { %s1726_s7 = smov 64   ;;  %s1727_s8 = smov 4  }
  0xe9   :  { %1181 = dma.vmem_to_hbm [thread:$0]  %s1176_s28, 4096, %s3543_s1, [#allocation3], %s1726_s7, %s1726_s7, %s1727_s8  }
  0xea   :  { %1723 = dma.done.wait [#allocation3], 4096  }
  0xeb   :  { %1724 = vsyncadd [#allocation3], 4294963200 }
  0xec   :  { %1185 = vsyncpa [#allocation3], 1 }

</bundles_post_ra>
